<compile_context>
chip_gen: v7x
topology: tpu7x:2x2x1
jax: 0.10.0
libtpu: 0.0.40
codegen_flags: <defaults>
</compile_context>

<pallas_src>
import functools

import jax
import jax.numpy as jnp
from jax import lax
from jax.experimental import pallas as pl
from jax.experimental.pallas import tpu as pltpu

F32 = jnp.float32


# ----------------------------- small helpers -----------------------------

def _round8(n):
    return ((n + 7) // 8) * 8


def _relu(v):
    return jnp.maximum(v, 0.0)


def _mm(a, b):
    return jnp.dot(a, b, preferred_element_type=jnp.float32)


def _shift_matrix(length, shift, dtype=jnp.float32):
    """T with T[r, c] = 1 iff c == r + shift, so (x @ T)[:, t] == x[:, t - shift]
    with zeros for t < shift (causal shift)."""
    rows = lax.broadcasted_iota(jnp.int32, (length, length), 0)
    cols = lax.broadcasted_iota(jnp.int32, (length, length), 1)
    return (cols == rows + shift).astype(dtype)


def _maxpool2x2(h):
    """MaxPool2d(2,2) of a square (n, n) tile via 0/1 selection matmuls + max;
    everything stays in vregs (no strided slices, no reshapes)."""
    n = h.shape[0]
    assert h.shape[1] == n and n % 2 == 0
    m = n // 2
    dt = h.dtype
    r = lax.broadcasted_iota(jnp.int32, (n, m), 0)
    c = lax.broadcasted_iota(jnp.int32, (n, m), 1)
    col_even = (r == 2 * c).astype(dt)
    col_odd = (r == 2 * c + 1).astype(dt)
    colmax = jnp.maximum(_mm(h, col_even), _mm(h, col_odd))          # (n, m)
    r2 = lax.broadcasted_iota(jnp.int32, (m, n), 0)
    c2 = lax.broadcasted_iota(jnp.int32, (m, n), 1)
    row_even = (c2 == 2 * r2).astype(dt)
    row_odd = (c2 == 2 * r2 + 1).astype(dt)
    return jnp.maximum(_mm(row_even, colmax), _mm(row_odd, colmax))  # (m, m)


# ------------------------- packed parameter layout -------------------------

def _make_layout(C, L, num_levels):
    """Static offsets shared by init_params (packing) and the kernel (slicing)."""
    lay = {}

    # Lane-major bias slab: one (1, width) row per Linear-type bias (broadcast over rows).
    rows = []
    for i in range(num_levels):
        rows += [(f"t{i}_bB", 128), (f"t{i}_dB", L)]
    rows += [("s_cB", 128), ("s_dB", 128), ("s_gB", 64), ("s_hB", 32),
             ("s_kB", 16), ("s_lB", 4), ("s_fcB", 1), ("linB", 1)]
    lay["brow"] = {n: (i, w) for i, (n, w) in enumerate(rows)}
    lay["n_brow"] = len(rows)

    # Column bias slab: one (height, 1) column per Conv1d-type bias (broadcast over lanes)
    # + the head Linear weight stored as a column (used with a multiply+reduce, no matmul).
    cols = []
    for i in range(num_levels):
        cols += [(f"t{i}_convB", C), (f"t{i}_aB", 128), (f"t{i}_cB", C)]
    cols += [("s_aB", 128), ("s_bB", 128), ("s_eB", 64), ("s_fB", 32),
             ("s_iB", 16), ("s_jB", 4), ("linW", C)]
    lay["bcol"] = {n: (i, h) for i, (n, h) in enumerate(cols)}
    lay["n_bcol"] = len(cols)

    # Spatial_Unit weight slabs grouped by lane width, concatenated along rows
    # (8-aligned row offsets).  name -> (row_start, n_rows)
    Lp = _round8(L)
    lay["w128"] = {"bW": (0, 128), "cWT": (128, L), "dWT": (128 + Lp, 128)}
    lay["w128_rows"] = 128 + Lp + 128
    lay["w64"] = {"eW": (0, 64), "fW": (64, 32), "gWT": (96, 64)}
    lay["w64_rows"] = 160
    lay["w32"] = {"hWT": (0, 64)}
    lay["w32_rows"] = 64
    lay["w16"] = {"iW": (0, 16), "jW": (16, 4), "kWT": (24, 16)}
    lay["w16_rows"] = 40
    lay["w4"] = {"lWT": (0, 16), "fcW2": (16, 4)}
    lay["w4_rows"] = 24
    return lay


# ============================ the fused kernel ============================

def _fused_kernel(x_ref, tconv_ref, taw_ref, tbwt_ref, tcw_ref, tdwt_ref,
                  sp_aw_ref, w128_ref, w64_ref, w32_ref, w16_ref, w4_ref,
                  brow_ref, bcol_ref, o_ref,
                  *, C, L, ksize, dilations, lay):
    x = x_ref[...]                                    # (C, L) — one sample per grid step

    def brow2(name):                                  # (1, width) lane-major bias
        r, width = lay["brow"][name]
        return brow_ref[r:r + 1, 0:width]

    def bcol2(name):                                  # (height, 1) per-row bias / column
        c, height = lay["bcol"][name]
        return bcol_ref[0:height, c:c + 1]

    def wslab(ref, table, name):                      # static slice: no hoist, load at use
        r0, nr = table[name]
        return ref[r0:r0 + nr, :]

    # Causal shift matrices (L, L), built once and shared across levels/taps.
    shift_mats = {}
    for dil in dilations:
        for j in range(ksize):
            sft = (ksize - 1 - j) * dil
            if sft > 0 and sft not in shift_mats:
                shift_mats[sft] = _shift_matrix(L, sft)

    # ================= Temporal_Unit: all levels, VMEM/vreg resident =================
    h = x
    for lvl, dil in enumerate(dilations):
        # temporal_block: dilated causal Conv1d + Chomp1d + ReLU
        acc = bcol2(f"t{lvl}_convB")                                   # (C, 1)
        for j in range(ksize):
            sft = (ksize - 1 - j) * dil
            xin = h if sft == 0 else _mm(h, shift_mats[sft])           # (C, L) shifted
            acc = acc + _mm(tconv_ref[lvl, j], xin)                    # (C, L)
        y1 = _relu(acc)
        # Spatial_Block: Conv1d(C,128,1) / Linear(L,128) / Conv1d(128,C,1) / Linear(128,L)
        sb = _relu(_mm(taw_ref[lvl], h) + bcol2(f"t{lvl}_aB"))         # (128, L)
        sb = _relu(_mm(sb, tbwt_ref[lvl]) + brow2(f"t{lvl}_bB"))       # (128, 128)
        sb = _relu(_mm(tcw_ref[lvl], sb) + bcol2(f"t{lvl}_cB"))        # (C, 128)
        sb = _relu(_mm(sb, tdwt_ref[lvl]) + brow2(f"t{lvl}_dB"))       # (C, L)
        h = _relu(h + y1 + sb)                                         # residual + ReLU

    # ============ head: Linear(num_channels[-1], 1) on y[:, :, -1] ============
    # (C,1)*(C,1) multiply + sublane reduce on VPU/XLU — no N=1 MXU push.
    y_head = jnp.sum(h[:, L - 1:L] * bcol2("linW"), axis=0, keepdims=True) \
        + brow2("linB")                                                # (1, 1)

    # ========================= Spatial_Unit on the raw input =========================
    v = _relu(_mm(sp_aw_ref[...], x) + bcol2("s_aB"))                            # (128, L)
    v = _relu(_mm(wslab(w128_ref, lay["w128"], "bW"), v) + bcol2("s_bB"))        # (128, L)
    v = _relu(_mm(v, wslab(w128_ref, lay["w128"], "cWT")) + brow2("s_cB"))       # (128, 128)
    v = _relu(_mm(v, wslab(w128_ref, lay["w128"], "dWT")) + brow2("s_dB"))       # (128, 128)
    v = _maxpool2x2(v)                                                           # (64, 64)
    v = _relu(_mm(wslab(w64_ref, lay["w64"], "eW"), v) + bcol2("s_eB"))          # (64, 64)
    v = _relu(_mm(wslab(w64_ref, lay["w64"], "fW"), v) + bcol2("s_fB"))          # (32, 64)
    v = _relu(_mm(v, wslab(w64_ref, lay["w64"], "gWT")) + brow2("s_gB"))         # (32, 64)
    v = _relu(_mm(v, wslab(w32_ref, lay["w32"], "hWT")) + brow2("s_hB"))         # (32, 32)
    v = _maxpool2x2(v)                                                           # (16, 16)
    v = _relu(_mm(wslab(w16_ref, lay["w16"], "iW"), v) + bcol2("s_iB"))          # (16, 16)
    v = _relu(_mm(wslab(w16_ref, lay["w16"], "jW"), v) + bcol2("s_jB"))          # (4, 16)
    v = _relu(_mm(v, wslab(w16_ref, lay["w16"], "kWT")) + brow2("s_kB"))         # (4, 16)
    v = _relu(_mm(v, wslab(w4_ref, lay["w4"], "lWT")) + brow2("s_lB"))           # (4, 4)
    # fc(view(-1, 16)): elementwise product with the (4,4)-reshaped fc weight + reduce.
    fc = jnp.sum(v * wslab(w4_ref, lay["w4"], "fcW2"), axis=1, keepdims=True)    # (4, 1)
    y2 = _relu(jnp.sum(fc, axis=0, keepdims=True) + brow2("s_fcB"))              # (1, 1)

    o_ref[...] = (y_head + y2).astype(o_ref.dtype)


# ======================= parameter initialization =======================

class _KeyGen:
    def __init__(self, key):
        self._key = key

    def __call__(self):
        self._key, sub = jax.random.split(self._key)
        return sub


def init_params(key, input_channel, input_length, num_channels, kernel_size):
    """Kernel-ready packed weights:
       temporal weights stacked on a leading level axis, spatial weights concatenated
       into lane-width-grouped slabs, biases packed into a row slab (Linear-type) and a
       column slab (Conv1d-type + head weight)."""
    C, L, k = input_channel, input_length, kernel_size
    nl = len(num_channels)
    for oc in num_channels:
        assert oc == C, ("residual x + y1 in Temporal_module requires "
                         "num_channels[i] == input_channel")
    lay = _make_layout(C, L, nl)
    kg = _KeyGen(key)
    std = 0.01

    def w(*shape):
        return std * jax.random.normal(kg(), shape, F32)

    params = {
        "t_conv_w": w(nl, k, C, C),   # [lvl, j] == torch conv1.weight[:, :, j]   (LHS)
        "t_aw":     w(nl, 128, C),    # Spatial_Block net_a Conv1d(C,128,1)       (LHS)
        "t_bwt":    w(nl, L, 128),    # net_b Linear(L,128) weight^T              (RHS)
        "t_cw":     w(nl, C, 128),    # net_c Conv1d(128,C,1)                     (LHS)
        "t_dwt":    w(nl, 128, L),    # net_d Linear(128,L) weight^T              (RHS)
        "sp_aw":    w(128, C),        # Spatial_Unit net_a Conv1d(C,128,1)        (LHS)
    }

    def slab(rows_key, lanes, entries):
        buf = jnp.zeros((lay[rows_key], lanes), F32)
        for _, (r0, nr) in entries.items():
            buf = buf.at[r0:r0 + nr, :].set(w(nr, lanes))
        return buf

    params["w128"] = slab("w128_rows", 128, lay["w128"])
    params["w64"] = slab("w64_rows", 64, lay["w64"])
    params["w32"] = slab("w32_rows", 32, lay["w32"])
    params["w16"] = slab("w16_rows", 16, lay["w16"])
    params["w4"] = slab("w4_rows", 4, lay["w4"])

    brow = jnp.zeros((lay["n_brow"], 128), F32)
    for _, (r, width) in lay["brow"].items():
        brow = brow.at[r, :width].set(w(width))
    params["brow"] = brow

    bcol = jnp.zeros((128, lay["n_bcol"]), F32)
    for _, (c, height) in lay["bcol"].items():
        bcol = bcol.at[:height, c].set(w(height))
    params["bcol"] = bcol
    return params


# ============================ forward factory ============================

def make_forward(input_channel, input_length, num_channels, kernel_size):
    """One fused pallas_call; batch on a parallel grid axis; all structural
    hyper-params (dilations, kernel_size, slab offsets) are static Python values."""
    C, L, k = input_channel, input_length, kernel_size
    nl = len(num_channels)
    dilations = tuple(2 ** i for i in range(nl))
    lay = _make_layout(C, L, nl)

    kernel = functools.partial(_fused_kernel, C=C, L=L, ksize=k,
                               dilations=dilations, lay=lay)

    def _const_spec(shape):
        nd = len(shape)
        return pl.BlockSpec(shape, lambda b, _nd=nd: (0,) * _nd)

    def forward(params, x):
        B = x.shape[0]
        inputs = (x, params["t_conv_w"], params["t_aw"], params["t_bwt"],
                  params["t_cw"], params["t_dwt"], params["sp_aw"],
                  params["w128"], params["w64"], params["w32"],
                  params["w16"], params["w4"], params["brow"], params["bcol"])
        out = pl.pallas_call(
            kernel,
            grid=(B,),
            in_specs=[pl.BlockSpec((None, C, L), lambda b: (b, 0, 0))]
            + [_const_spec(a.shape) for a in inputs[1:]],
            out_specs=pl.BlockSpec((None, 1, 1), lambda b: (b, 0, 0)),
            out_shape=jax.ShapeDtypeStruct((B, 1, 1), F32),
            compiler_params=pltpu.CompilerParams(
                dimension_semantics=("parallel",)),
        )(*inputs)
        return out[:, 0, :]                          # (B, 1)

    return jax.jit(forward)


# ================================= main =================================

if __name__ == "__main__":
    # Small, module-consistent shapes.  The residual x + y1 in Temporal_module
    # requires num_channels[i] == input_channel.
    B = 2
    input_channel = 4
    input_length = 16
    num_channels = [4, 4]
    kernel_size = 3

    key = jax.random.PRNGKey(0)
    k_param, k_x = jax.random.split(key)

    params = init_params(k_param, input_channel, input_length,
                         num_channels, kernel_size)
    x = jax.random.normal(k_x, (B, input_channel, input_length), F32)

    fwd = make_forward(input_channel, input_length, num_channels, kernel_size)
    out = jax.block_until_ready(fwd(params, x))

    assert out.shape == (B, 1), out.shape
    assert out.dtype == jnp.float32
    assert bool(jnp.all(jnp.isfinite(out)))
    print("KERNEL_OK")
</pallas_src>

<mosaic_0001>
module attributes {stable_mosaic.version = 11 : i64} {
  func.func @_fused_kernel(%arg0: i32, %arg1: memref<1x4x16xf32, #tpu.memory_space<vmem>>, %arg2: memref<2x3x4x4xf32, #tpu.memory_space<vmem>>, %arg3: memref<2x128x4xf32, #tpu.memory_space<vmem>>, %arg4: memref<2x16x128xf32, #tpu.memory_space<vmem>>, %arg5: memref<2x4x128xf32, #tpu.memory_space<vmem>>, %arg6: memref<2x128x16xf32, #tpu.memory_space<vmem>>, %arg7: memref<128x4xf32, #tpu.memory_space<vmem>>, %arg8: memref<272x128xf32, #tpu.memory_space<vmem>>, %arg9: memref<160x64xf32, #tpu.memory_space<vmem>>, %arg10: memref<64x32xf32, #tpu.memory_space<vmem>>, %arg11: memref<40x16xf32, #tpu.memory_space<vmem>>, %arg12: memref<24x4xf32, #tpu.memory_space<vmem>>, %arg13: memref<12x128xf32, #tpu.memory_space<vmem>>, %arg14: memref<128x13xf32, #tpu.memory_space<vmem>>, %arg15: memref<1x1x1xf32, #tpu.memory_space<vmem>>) attributes {dimension_semantics = [#tpu.dimension_semantics<parallel>], iteration_bounds = array<i64: 2>, scalar_prefetch = 0 : i64, scratch_operands = 0 : i64, tpu.core_type = #tpu.core_type<tc>, window_params = [{transform_indices = @transform_0, window_bounds = array<i64: 1, 4, 16>}, {pipeline_mode = #tpu.pipeline_mode<synchronous>, transform_indices = @transform_1, window_bounds = array<i64: 2, 3, 4, 4>}, {pipeline_mode = #tpu.pipeline_mode<synchronous>, transform_indices = @transform_2, window_bounds = array<i64: 2, 128, 4>}, {pipeline_mode = #tpu.pipeline_mode<synchronous>, transform_indices = @transform_3, window_bounds = array<i64: 2, 16, 128>}, {pipeline_mode = #tpu.pipeline_mode<synchronous>, transform_indices = @transform_4, window_bounds = array<i64: 2, 4, 128>}, {pipeline_mode = #tpu.pipeline_mode<synchronous>, transform_indices = @transform_5, window_bounds = array<i64: 2, 128, 16>}, {pipeline_mode = #tpu.pipeline_mode<synchronous>, transform_indices = @transform_6, window_bounds = array<i64: 128, 4>}, {pipeline_mode = #tpu.pipeline_mode<synchronous>, transform_indices = @transform_7, window_bounds = array<i64: 272, 128>}, {pipeline_mode = #tpu.pipeline_mode<synchronous>, transform_indices = @transform_8, window_bounds = array<i64: 160, 64>}, {pipeline_mode = #tpu.pipeline_mode<synchronous>, transform_indices = @transform_9, window_bounds = array<i64: 64, 32>}, {pipeline_mode = #tpu.pipeline_mode<synchronous>, transform_indices = @transform_10, window_bounds = array<i64: 40, 16>}, {pipeline_mode = #tpu.pipeline_mode<synchronous>, transform_indices = @transform_11, window_bounds = array<i64: 24, 4>}, {pipeline_mode = #tpu.pipeline_mode<synchronous>, transform_indices = @transform_12, window_bounds = array<i64: 12, 128>}, {pipeline_mode = #tpu.pipeline_mode<synchronous>, transform_indices = @transform_13, window_bounds = array<i64: 128, 13>}, {transform_indices = @transform_14, window_bounds = array<i64: 1, 1, 1>}]} {
    %c0 = arith.constant 0 : index
    %c0_0 = arith.constant 0 : index
    %c0_1 = arith.constant 0 : index
    %0 = vector.load %arg1[%c0, %c0_0, %c0_1] : memref<1x4x16xf32, #tpu.memory_space<vmem>>, vector<1x4x16xf32>
    %1 = vector.shape_cast %0 : vector<1x4x16xf32> to vector<4x16xf32>
    %2 = tpu.iota {dimensions = array<i32: 0>} : vector<16x16xi32>
    %3 = tpu.iota {dimensions = array<i32: 1>} : vector<16x16xi32>
    %c2_i32 = arith.constant 2 : i32
    %4 = vector.broadcast %c2_i32 : i32 to vector<16x16xi32>
    %5 = arith.addi %2, %4 : vector<16x16xi32>
    %6 = arith.cmpi eq, %3, %5 : vector<16x16xi32>
    %7 = arith.extui %6 : vector<16x16xi1> to vector<16x16xi32>
    %8 = arith.sitofp %7 : vector<16x16xi32> to vector<16x16xf32>
    %9 = tpu.iota {dimensions = array<i32: 0>} : vector<16x16xi32>
    %10 = tpu.iota {dimensions = array<i32: 1>} : vector<16x16xi32>
    %c1_i32 = arith.constant 1 : i32
    %11 = vector.broadcast %c1_i32 : i32 to vector<16x16xi32>
    %12 = arith.addi %9, %11 : vector<16x16xi32>
    %13 = arith.cmpi eq, %10, %12 : vector<16x16xi32>
    %14 = arith.extui %13 : vector<16x16xi1> to vector<16x16xi32>
    %15 = arith.sitofp %14 : vector<16x16xi32> to vector<16x16xf32>
    %16 = tpu.iota {dimensions = array<i32: 0>} : vector<16x16xi32>
    %17 = tpu.iota {dimensions = array<i32: 1>} : vector<16x16xi32>
    %c4_i32 = arith.constant 4 : i32
    %18 = vector.broadcast %c4_i32 : i32 to vector<16x16xi32>
    %19 = arith.addi %16, %18 : vector<16x16xi32>
    %20 = arith.cmpi eq, %17, %19 : vector<16x16xi32>
    %21 = arith.extui %20 : vector<16x16xi1> to vector<16x16xi32>
    %22 = arith.sitofp %21 : vector<16x16xi32> to vector<16x16xf32>
    %c0_2 = arith.constant 0 : index
    %c0_3 = arith.constant 0 : index
    %23 = vector.load %arg14[%c0_2, %c0_3] : memref<128x13xf32, #tpu.memory_space<vmem>>, vector<4x1xf32>
    %cst = arith.constant dense<0.000000e+00> : vector<4x16xf32>
    %24 = tpu.matmul %1, %8, %cst {dimension_numbers = #tpu.dot_dimension_numbers<[1], [0], [0], [1], [0, 0, 1, 1], [], []>} : vector<4x16xf32>, vector<16x16xf32>, vector<4x16xf32> -> vector<4x16xf32>
    %c0_4 = arith.constant 0 : index
    %c0_5 = arith.constant 0 : index
    %c0_6 = arith.constant 0 : index
    %c0_7 = arith.constant 0 : index
    %25 = vector.load %arg2[%c0_4, %c0_5, %c0_6, %c0_7] : memref<2x3x4x4xf32, #tpu.memory_space<vmem>>, vector<1x1x4x4xf32>
    %26 = vector.shape_cast %25 : vector<1x1x4x4xf32> to vector<4x4xf32>
    %cst_8 = arith.constant dense<0.000000e+00> : vector<4x16xf32>
    %27 = tpu.matmul %26, %24, %cst_8 {dimension_numbers = #tpu.dot_dimension_numbers<[1], [0], [0], [1], [0, 0, 1, 1], [], []>} : vector<4x4xf32>, vector<4x16xf32>, vector<4x16xf32> -> vector<4x16xf32>
    %28 = vector.broadcast %23 : vector<4x1xf32> to vector<4x16xf32>
    %29 = arith.addf %28, %27 : vector<4x16xf32>
    %cst_9 = arith.constant dense<0.000000e+00> : vector<4x16xf32>
    %30 = tpu.matmul %1, %15, %cst_9 {dimension_numbers = #tpu.dot_dimension_numbers<[1], [0], [0], [1], [0, 0, 1, 1], [], []>} : vector<4x16xf32>, vector<16x16xf32>, vector<4x16xf32> -> vector<4x16xf32>
    %c0_10 = arith.constant 0 : index
    %c1 = arith.constant 1 : index
    %c0_11 = arith.constant 0 : index
    %c0_12 = arith.constant 0 : index
    %31 = vector.load %arg2[%c0_10, %c1, %c0_11, %c0_12] : memref<2x3x4x4xf32, #tpu.memory_space<vmem>>, vector<1x1x4x4xf32>
    %32 = vector.shape_cast %31 : vector<1x1x4x4xf32> to vector<4x4xf32>
    %cst_13 = arith.constant dense<0.000000e+00> : vector<4x16xf32>
    %33 = tpu.matmul %32, %30, %cst_13 {dimension_numbers = #tpu.dot_dimension_numbers<[1], [0], [0], [1], [0, 0, 1, 1], [], []>} : vector<4x4xf32>, vector<4x16xf32>, vector<4x16xf32> -> vector<4x16xf32>
    %34 = arith.addf %29, %33 : vector<4x16xf32>
    %c0_14 = arith.constant 0 : index
    %c2 = arith.constant 2 : index
    %c0_15 = arith.constant 0 : index
    %c0_16 = arith.constant 0 : index
    %35 = vector.load %arg2[%c0_14, %c2, %c0_15, %c0_16] : memref<2x3x4x4xf32, #tpu.memory_space<vmem>>, vector<1x1x4x4xf32>
    %36 = vector.shape_cast %35 : vector<1x1x4x4xf32> to vector<4x4xf32>
    %cst_17 = arith.constant dense<0.000000e+00> : vector<4x16xf32>
    %37 = tpu.matmul %36, %1, %cst_17 {dimension_numbers = #tpu.dot_dimension_numbers<[1], [0], [0], [1], [0, 0, 1, 1], [], []>} : vector<4x4xf32>, vector<4x16xf32>, vector<4x16xf32> -> vector<4x16xf32>
    %38 = arith.addf %34, %37 : vector<4x16xf32>
    %cst_18 = arith.constant 0.000000e+00 : f32
    %39 = vector.broadcast %cst_18 : f32 to vector<4x16xf32>
    %40 = arith.maximumf %38, %39 : vector<4x16xf32>
    %c0_19 = arith.constant 0 : index
    %c0_20 = arith.constant 0 : index
    %c0_21 = arith.constant 0 : index
    %41 = vector.load %arg3[%c0_19, %c0_20, %c0_21] : memref<2x128x4xf32, #tpu.memory_space<vmem>>, vector<1x128x4xf32>
    %42 = vector.shape_cast %41 : vector<1x128x4xf32> to vector<128x4xf32>
    %cst_22 = arith.constant dense<0.000000e+00> : vector<128x16xf32>
    %43 = tpu.matmul %42, %1, %cst_22 {dimension_numbers = #tpu.dot_dimension_numbers<[1], [0], [0], [1], [0, 0, 1, 1], [], []>} : vector<128x4xf32>, vector<4x16xf32>, vector<128x16xf32> -> vector<128x16xf32>
    %c0_23 = arith.constant 0 : index
    %c1_24 = arith.constant 1 : index
    %44 = vector.load %arg14[%c0_23, %c1_24] : memref<128x13xf32, #tpu.memory_space<vmem>>, vector<128x1xf32>
    %45 = vector.broadcast %44 : vector<128x1xf32> to vector<128x16xf32>
    %46 = arith.addf %43, %45 : vector<128x16xf32>
    %cst_25 = arith.constant 0.000000e+00 : f32
    %47 = vector.broadcast %cst_25 : f32 to vector<128x16xf32>
    %48 = arith.maximumf %46, %47 : vector<128x16xf32>
    %c0_26 = arith.constant 0 : index
    %c0_27 = arith.constant 0 : index
    %c0_28 = arith.constant 0 : index
    %49 = vector.load %arg4[%c0_26, %c0_27, %c0_28] : memref<2x16x128xf32, #tpu.memory_space<vmem>>, vector<1x16x128xf32>
    %50 = vector.shape_cast %49 : vector<1x16x128xf32> to vector<16x128xf32>
    %cst_29 = arith.constant dense<0.000000e+00> : vector<128x128xf32>
    %51 = tpu.matmul %48, %50, %cst_29 {dimension_numbers = #tpu.dot_dimension_numbers<[1], [0], [0], [1], [0, 0, 1, 1], [], []>} : vector<128x16xf32>, vector<16x128xf32>, vector<128x128xf32> -> vector<128x128xf32>
    %c0_30 = arith.constant 0 : index
    %c0_31 = arith.constant 0 : index
    %52 = vector.load %arg13[%c0_30, %c0_31] : memref<12x128xf32, #tpu.memory_space<vmem>>, vector<1x128xf32>
    %53 = vector.broadcast %52 : vector<1x128xf32> to vector<128x128xf32>
    %54 = arith.addf %51, %53 : vector<128x128xf32>
    %cst_32 = arith.constant 0.000000e+00 : f32
    %55 = vector.broadcast %cst_32 : f32 to vector<128x128xf32>
    %56 = arith.maximumf %54, %55 : vector<128x128xf32>
    %c0_33 = arith.constant 0 : index
    %c0_34 = arith.constant 0 : index
    %c0_35 = arith.constant 0 : index
    %57 = vector.load %arg5[%c0_33, %c0_34, %c0_35] : memref<2x4x128xf32, #tpu.memory_space<vmem>>, vector<1x4x128xf32>
    %58 = vector.shape_cast %57 : vector<1x4x128xf32> to vector<4x128xf32>
    %cst_36 = arith.constant dense<0.000000e+00> : vector<4x128xf32>
    %59 = tpu.matmul %58, %56, %cst_36 {dimension_numbers = #tpu.dot_dimension_numbers<[1], [0], [0], [1], [0, 0, 1, 1], [], []>} : vector<4x128xf32>, vector<128x128xf32>, vector<4x128xf32> -> vector<4x128xf32>
    %c0_37 = arith.constant 0 : index
    %c2_38 = arith.constant 2 : index
    %60 = vector.load %arg14[%c0_37, %c2_38] : memref<128x13xf32, #tpu.memory_space<vmem>>, vector<4x1xf32>
    %61 = vector.broadcast %60 : vector<4x1xf32> to vector<4x128xf32>
    %62 = arith.addf %59, %61 : vector<4x128xf32>
    %cst_39 = arith.constant 0.000000e+00 : f32
    %63 = vector.broadcast %cst_39 : f32 to vector<4x128xf32>
    %64 = arith.maximumf %62, %63 : vector<4x128xf32>
    %c0_40 = arith.constant 0 : index
    %c0_41 = arith.constant 0 : index
    %c0_42 = arith.constant 0 : index
    %65 = vector.load %arg6[%c0_40, %c0_41, %c0_42] : memref<2x128x16xf32, #tpu.memory_space<vmem>>, vector<1x128x16xf32>
    %66 = vector.shape_cast %65 : vector<1x128x16xf32> to vector<128x16xf32>
    %cst_43 = arith.constant dense<0.000000e+00> : vector<4x16xf32>
    %67 = tpu.matmul %64, %66, %cst_43 {dimension_numbers = #tpu.dot_dimension_numbers<[1], [0], [0], [1], [0, 0, 1, 1], [], []>} : vector<4x128xf32>, vector<128x16xf32>, vector<4x16xf32> -> vector<4x16xf32>
    %c1_44 = arith.constant 1 : index
    %c0_45 = arith.constant 0 : index
    %68 = vector.load %arg13[%c1_44, %c0_45] : memref<12x128xf32, #tpu.memory_space<vmem>>, vector<1x16xf32>
    %69 = vector.broadcast %68 : vector<1x16xf32> to vector<4x16xf32>
    %70 = arith.addf %67, %69 : vector<4x16xf32>
    %cst_46 = arith.constant 0.000000e+00 : f32
    %71 = vector.broadcast %cst_46 : f32 to vector<4x16xf32>
    %72 = arith.maximumf %70, %71 : vector<4x16xf32>
    %73 = arith.addf %1, %40 : vector<4x16xf32>
    %74 = arith.addf %73, %72 : vector<4x16xf32>
    %cst_47 = arith.constant 0.000000e+00 : f32
    %75 = vector.broadcast %cst_47 : f32 to vector<4x16xf32>
    %76 = arith.maximumf %74, %75 : vector<4x16xf32>
    %c0_48 = arith.constant 0 : index
    %c3 = arith.constant 3 : index
    %77 = vector.load %arg14[%c0_48, %c3] : memref<128x13xf32, #tpu.memory_space<vmem>>, vector<4x1xf32>
    %cst_49 = arith.constant dense<0.000000e+00> : vector<4x16xf32>
    %78 = tpu.matmul %76, %22, %cst_49 {dimension_numbers = #tpu.dot_dimension_numbers<[1], [0], [0], [1], [0, 0, 1, 1], [], []>} : vector<4x16xf32>, vector<16x16xf32>, vector<4x16xf32> -> vector<4x16xf32>
    %c1_50 = arith.constant 1 : index
    %c0_51 = arith.constant 0 : index
    %c0_52 = arith.constant 0 : index
    %c0_53 = arith.constant 0 : index
    %79 = vector.load %arg2[%c1_50, %c0_51, %c0_52, %c0_53] : memref<2x3x4x4xf32, #tpu.memory_space<vmem>>, vector<1x1x4x4xf32>
    %80 = vector.shape_cast %79 : vector<1x1x4x4xf32> to vector<4x4xf32>
    %cst_54 = arith.constant dense<0.000000e+00> : vector<4x16xf32>
    %81 = tpu.matmul %80, %78, %cst_54 {dimension_numbers = #tpu.dot_dimension_numbers<[1], [0], [0], [1], [0, 0, 1, 1], [], []>} : vector<4x4xf32>, vector<4x16xf32>, vector<4x16xf32> -> vector<4x16xf32>
    %82 = vector.broadcast %77 : vector<4x1xf32> to vector<4x16xf32>
    %83 = arith.addf %82, %81 : vector<4x16xf32>
    %cst_55 = arith.constant dense<0.000000e+00> : vector<4x16xf32>
    %84 = tpu.matmul %76, %8, %cst_55 {dimension_numbers = #tpu.dot_dimension_numbers<[1], [0], [0], [1], [0, 0, 1, 1], [], []>} : vector<4x16xf32>, vector<16x16xf32>, vector<4x16xf32> -> vector<4x16xf32>
    %c1_56 = arith.constant 1 : index
    %c1_57 = arith.constant 1 : index
    %c0_58 = arith.constant 0 : index
    %c0_59 = arith.constant 0 : index
    %85 = vector.load %arg2[%c1_56, %c1_57, %c0_58, %c0_59] : memref<2x3x4x4xf32, #tpu.memory_space<vmem>>, vector<1x1x4x4xf32>
    %86 = vector.shape_cast %85 : vector<1x1x4x4xf32> to vector<4x4xf32>
    %cst_60 = arith.constant dense<0.000000e+00> : vector<4x16xf32>
    %87 = tpu.matmul %86, %84, %cst_60 {dimension_numbers = #tpu.dot_dimension_numbers<[1], [0], [0], [1], [0, 0, 1, 1], [], []>} : vector<4x4xf32>, vector<4x16xf32>, vector<4x16xf32> -> vector<4x16xf32>
    %88 = arith.addf %83, %87 : vector<4x16xf32>
    %c1_61 = arith.constant 1 : index
    %c2_62 = arith.constant 2 : index
    %c0_63 = arith.constant 0 : index
    %c0_64 = arith.constant 0 : index
    %89 = vector.load %arg2[%c1_61, %c2_62, %c0_63, %c0_64] : memref<2x3x4x4xf32, #tpu.memory_space<vmem>>, vector<1x1x4x4xf32>
    %90 = vector.shape_cast %89 : vector<1x1x4x4xf32> to vector<4x4xf32>
    %cst_65 = arith.constant dense<0.000000e+00> : vector<4x16xf32>
    %91 = tpu.matmul %90, %76, %cst_65 {dimension_numbers = #tpu.dot_dimension_numbers<[1], [0], [0], [1], [0, 0, 1, 1], [], []>} : vector<4x4xf32>, vector<4x16xf32>, vector<4x16xf32> -> vector<4x16xf32>
    %92 = arith.addf %88, %91 : vector<4x16xf32>
    %cst_66 = arith.constant 0.000000e+00 : f32
    %93 = vector.broadcast %cst_66 : f32 to vector<4x16xf32>
    %94 = arith.maximumf %92, %93 : vector<4x16xf32>
    %c1_67 = arith.constant 1 : index
    %c0_68 = arith.constant 0 : index
    %c0_69 = arith.constant 0 : index
    %95 = vector.load %arg3[%c1_67, %c0_68, %c0_69] : memref<2x128x4xf32, #tpu.memory_space<vmem>>, vector<1x128x4xf32>
    %96 = vector.shape_cast %95 : vector<1x128x4xf32> to vector<128x4xf32>
    %cst_70 = arith.constant dense<0.000000e+00> : vector<128x16xf32>
    %97 = tpu.matmul %96, %76, %cst_70 {dimension_numbers = #tpu.dot_dimension_numbers<[1], [0], [0], [1], [0, 0, 1, 1], [], []>} : vector<128x4xf32>, vector<4x16xf32>, vector<128x16xf32> -> vector<128x16xf32>
    %c0_71 = arith.constant 0 : index
    %c4 = arith.constant 4 : index
    %98 = vector.load %arg14[%c0_71, %c4] : memref<128x13xf32, #tpu.memory_space<vmem>>, vector<128x1xf32>
    %99 = vector.broadcast %98 : vector<128x1xf32> to vector<128x16xf32>
    %100 = arith.addf %97, %99 : vector<128x16xf32>
    %cst_72 = arith.constant 0.000000e+00 : f32
    %101 = vector.broadcast %cst_72 : f32 to vector<128x16xf32>
    %102 = arith.maximumf %100, %101 : vector<128x16xf32>
    %c1_73 = arith.constant 1 : index
    %c0_74 = arith.constant 0 : index
    %c0_75 = arith.constant 0 : index
    %103 = vector.load %arg4[%c1_73, %c0_74, %c0_75] : memref<2x16x128xf32, #tpu.memory_space<vmem>>, vector<1x16x128xf32>
    %104 = vector.shape_cast %103 : vector<1x16x128xf32> to vector<16x128xf32>
    %cst_76 = arith.constant dense<0.000000e+00> : vector<128x128xf32>
    %105 = tpu.matmul %102, %104, %cst_76 {dimension_numbers = #tpu.dot_dimension_numbers<[1], [0], [0], [1], [0, 0, 1, 1], [], []>} : vector<128x16xf32>, vector<16x128xf32>, vector<128x128xf32> -> vector<128x128xf32>
    %c2_77 = arith.constant 2 : index
    %c0_78 = arith.constant 0 : index
    %106 = vector.load %arg13[%c2_77, %c0_78] : memref<12x128xf32, #tpu.memory_space<vmem>>, vector<1x128xf32>
    %107 = vector.broadcast %106 : vector<1x128xf32> to vector<128x128xf32>
    %108 = arith.addf %105, %107 : vector<128x128xf32>
    %cst_79 = arith.constant 0.000000e+00 : f32
    %109 = vector.broadcast %cst_79 : f32 to vector<128x128xf32>
    %110 = arith.maximumf %108, %109 : vector<128x128xf32>
    %c1_80 = arith.constant 1 : index
    %c0_81 = arith.constant 0 : index
    %c0_82 = arith.constant 0 : index
    %111 = vector.load %arg5[%c1_80, %c0_81, %c0_82] : memref<2x4x128xf32, #tpu.memory_space<vmem>>, vector<1x4x128xf32>
    %112 = vector.shape_cast %111 : vector<1x4x128xf32> to vector<4x128xf32>
    %cst_83 = arith.constant dense<0.000000e+00> : vector<4x128xf32>
    %113 = tpu.matmul %112, %110, %cst_83 {dimension_numbers = #tpu.dot_dimension_numbers<[1], [0], [0], [1], [0, 0, 1, 1], [], []>} : vector<4x128xf32>, vector<128x128xf32>, vector<4x128xf32> -> vector<4x128xf32>
    %c0_84 = arith.constant 0 : index
    %c5 = arith.constant 5 : index
    %114 = vector.load %arg14[%c0_84, %c5] : memref<128x13xf32, #tpu.memory_space<vmem>>, vector<4x1xf32>
    %115 = vector.broadcast %114 : vector<4x1xf32> to vector<4x128xf32>
    %116 = arith.addf %113, %115 : vector<4x128xf32>
    %cst_85 = arith.constant 0.000000e+00 : f32
    %117 = vector.broadcast %cst_85 : f32 to vector<4x128xf32>
    %118 = arith.maximumf %116, %117 : vector<4x128xf32>
    %c1_86 = arith.constant 1 : index
    %c0_87 = arith.constant 0 : index
    %c0_88 = arith.constant 0 : index
    %119 = vector.load %arg6[%c1_86, %c0_87, %c0_88] : memref<2x128x16xf32, #tpu.memory_space<vmem>>, vector<1x128x16xf32>
    %120 = vector.shape_cast %119 : vector<1x128x16xf32> to vector<128x16xf32>
    %cst_89 = arith.constant dense<0.000000e+00> : vector<4x16xf32>
    %121 = tpu.matmul %118, %120, %cst_89 {dimension_numbers = #tpu.dot_dimension_numbers<[1], [0], [0], [1], [0, 0, 1, 1], [], []>} : vector<4x128xf32>, vector<128x16xf32>, vector<4x16xf32> -> vector<4x16xf32>
    %c3_90 = arith.constant 3 : index
    %c0_91 = arith.constant 0 : index
    %122 = vector.load %arg13[%c3_90, %c0_91] : memref<12x128xf32, #tpu.memory_space<vmem>>, vector<1x16xf32>
    %123 = vector.broadcast %122 : vector<1x16xf32> to vector<4x16xf32>
    %124 = arith.addf %121, %123 : vector<4x16xf32>
    %cst_92 = arith.constant 0.000000e+00 : f32
    %125 = vector.broadcast %cst_92 : f32 to vector<4x16xf32>
    %126 = arith.maximumf %124, %125 : vector<4x16xf32>
    %127 = arith.addf %76, %94 : vector<4x16xf32>
    %128 = arith.addf %127, %126 : vector<4x16xf32>
    %cst_93 = arith.constant 0.000000e+00 : f32
    %129 = vector.broadcast %cst_93 : f32 to vector<4x16xf32>
    %130 = arith.maximumf %128, %129 : vector<4x16xf32>
    %131 = vector.extract_strided_slice %130 {offsets = [0, 15], sizes = [4, 1], strides = [1, 1]} : vector<4x16xf32> to vector<4x1xf32>
    %c0_94 = arith.constant 0 : index
    %c12 = arith.constant 12 : index
    %132 = vector.load %arg14[%c0_94, %c12] : memref<128x13xf32, #tpu.memory_space<vmem>>, vector<4x1xf32>
    %133 = arith.mulf %131, %132 : vector<4x1xf32>
    %cst_95 = arith.constant dense<0.000000e+00> : vector<1xf32>
    %134 = vector.multi_reduction <add>, %133, %cst_95 [0] : vector<4x1xf32> to vector<1xf32>
    %135 = vector.shape_cast %134 : vector<1xf32> to vector<1x1xf32>
    %c11 = arith.constant 11 : index
    %c0_96 = arith.constant 0 : index
    %136 = vector.load %arg13[%c11, %c0_96] : memref<12x128xf32, #tpu.memory_space<vmem>>, vector<1x1xf32>
    %137 = arith.addf %135, %136 : vector<1x1xf32>
    %c0_97 = arith.constant 0 : index
    %c0_98 = arith.constant 0 : index
    %138 = vector.load %arg7[%c0_97, %c0_98] : memref<128x4xf32, #tpu.memory_space<vmem>>, vector<128x4xf32>
    %cst_99 = arith.constant dense<0.000000e+00> : vector<128x16xf32>
    %139 = tpu.matmul %138, %1, %cst_99 {dimension_numbers = #tpu.dot_dimension_numbers<[1], [0], [0], [1], [0, 0, 1, 1], [], []>} : vector<128x4xf32>, vector<4x16xf32>, vector<128x16xf32> -> vector<128x16xf32>
    %c0_100 = arith.constant 0 : index
    %c6 = arith.constant 6 : index
    %140 = vector.load %arg14[%c0_100, %c6] : memref<128x13xf32, #tpu.memory_space<vmem>>, vector<128x1xf32>
    %141 = vector.broadcast %140 : vector<128x1xf32> to vector<128x16xf32>
    %142 = arith.addf %139, %141 : vector<128x16xf32>
    %cst_101 = arith.constant 0.000000e+00 : f32
    %143 = vector.broadcast %cst_101 : f32 to vector<128x16xf32>
    %144 = arith.maximumf %142, %143 : vector<128x16xf32>
    %c0_102 = arith.constant 0 : index
    %c0_103 = arith.constant 0 : index
    %145 = vector.load %arg8[%c0_102, %c0_103] : memref<272x128xf32, #tpu.memory_space<vmem>>, vector<128x128xf32>
    %cst_104 = arith.constant dense<0.000000e+00> : vector<128x16xf32>
    %146 = tpu.matmul %145, %144, %cst_104 {dimension_numbers = #tpu.dot_dimension_numbers<[1], [0], [0], [1], [0, 0, 1, 1], [], []>} : vector<128x128xf32>, vector<128x16xf32>, vector<128x16xf32> -> vector<128x16xf32>
    %c0_105 = arith.constant 0 : index
    %c7 = arith.constant 7 : index
    %147 = vector.load %arg14[%c0_105, %c7] : memref<128x13xf32, #tpu.memory_space<vmem>>, vector<128x1xf32>
    %148 = vector.broadcast %147 : vector<128x1xf32> to vector<128x16xf32>
    %149 = arith.addf %146, %148 : vector<128x16xf32>
    %cst_106 = arith.constant 0.000000e+00 : f32
    %150 = vector.broadcast %cst_106 : f32 to vector<128x16xf32>
    %151 = arith.maximumf %149, %150 : vector<128x16xf32>
    %c128 = arith.constant 128 : index
    %c0_107 = arith.constant 0 : index
    %152 = vector.load %arg8[%c128, %c0_107] : memref<272x128xf32, #tpu.memory_space<vmem>>, vector<16x128xf32>
    %cst_108 = arith.constant dense<0.000000e+00> : vector<128x128xf32>
    %153 = tpu.matmul %151, %152, %cst_108 {dimension_numbers = #tpu.dot_dimension_numbers<[1], [0], [0], [1], [0, 0, 1, 1], [], []>} : vector<128x16xf32>, vector<16x128xf32>, vector<128x128xf32> -> vector<128x128xf32>
    %c4_109 = arith.constant 4 : index
    %c0_110 = arith.constant 0 : index
    %154 = vector.load %arg13[%c4_109, %c0_110] : memref<12x128xf32, #tpu.memory_space<vmem>>, vector<1x128xf32>
    %155 = vector.broadcast %154 : vector<1x128xf32> to vector<128x128xf32>
    %156 = arith.addf %153, %155 : vector<128x128xf32>
    %cst_111 = arith.constant 0.000000e+00 : f32
    %157 = vector.broadcast %cst_111 : f32 to vector<128x128xf32>
    %158 = arith.maximumf %156, %157 : vector<128x128xf32>
    %c144 = arith.constant 144 : index
    %c0_112 = arith.constant 0 : index
    %159 = vector.load %arg8[%c144, %c0_112] : memref<272x128xf32, #tpu.memory_space<vmem>>, vector<128x128xf32>
    %cst_113 = arith.constant dense<0.000000e+00> : vector<128x128xf32>
    %160 = tpu.matmul %158, %159, %cst_113 {dimension_numbers = #tpu.dot_dimension_numbers<[1], [0], [0], [1], [0, 0, 1, 1], [], []>} : vector<128x128xf32>, vector<128x128xf32>, vector<128x128xf32> -> vector<128x128xf32>
    %c5_114 = arith.constant 5 : index
    %c0_115 = arith.constant 0 : index
    %161 = vector.load %arg13[%c5_114, %c0_115] : memref<12x128xf32, #tpu.memory_space<vmem>>, vector<1x128xf32>
    %162 = vector.broadcast %161 : vector<1x128xf32> to vector<128x128xf32>
    %163 = arith.addf %160, %162 : vector<128x128xf32>
    %cst_116 = arith.constant 0.000000e+00 : f32
    %164 = vector.broadcast %cst_116 : f32 to vector<128x128xf32>
    %165 = arith.maximumf %163, %164 : vector<128x128xf32>
    %166 = tpu.iota {dimensions = array<i32: 0>} : vector<128x64xi32>
    %167 = tpu.iota {dimensions = array<i32: 1>} : vector<128x64xi32>
    %c2_i32_117 = arith.constant 2 : i32
    %168 = vector.broadcast %c2_i32_117 : i32 to vector<128x64xi32>
    %169 = arith.muli %168, %167 : vector<128x64xi32>
    %170 = arith.cmpi eq, %166, %169 : vector<128x64xi32>
    %171 = arith.extui %170 : vector<128x64xi1> to vector<128x64xi32>
    %172 = arith.sitofp %171 : vector<128x64xi32> to vector<128x64xf32>
    %c2_i32_118 = arith.constant 2 : i32
    %173 = vector.broadcast %c2_i32_118 : i32 to vector<128x64xi32>
    %174 = arith.muli %173, %167 : vector<128x64xi32>
    %c1_i32_119 = arith.constant 1 : i32
    %175 = vector.broadcast %c1_i32_119 : i32 to vector<128x64xi32>
    %176 = arith.addi %174, %175 : vector<128x64xi32>
    %177 = arith.cmpi eq, %166, %176 : vector<128x64xi32>
    %178 = arith.extui %177 : vector<128x64xi1> to vector<128x64xi32>
    %179 = arith.sitofp %178 : vector<128x64xi32> to vector<128x64xf32>
    %cst_120 = arith.constant dense<0.000000e+00> : vector<128x64xf32>
    %180 = tpu.matmul %165, %172, %cst_120 {dimension_numbers = #tpu.dot_dimension_numbers<[1], [0], [0], [1], [0, 0, 1, 1], [], []>} : vector<128x128xf32>, vector<128x64xf32>, vector<128x64xf32> -> vector<128x64xf32>
    %cst_121 = arith.constant dense<0.000000e+00> : vector<128x64xf32>
    %181 = tpu.matmul %165, %179, %cst_121 {dimension_numbers = #tpu.dot_dimension_numbers<[1], [0], [0], [1], [0, 0, 1, 1], [], []>} : vector<128x128xf32>, vector<128x64xf32>, vector<128x64xf32> -> vector<128x64xf32>
    %182 = arith.maximumf %180, %181 : vector<128x64xf32>
    %183 = tpu.iota {dimensions = array<i32: 0>} : vector<64x128xi32>
    %184 = tpu.iota {dimensions = array<i32: 1>} : vector<64x128xi32>
    %c2_i32_122 = arith.constant 2 : i32
    %185 = vector.broadcast %c2_i32_122 : i32 to vector<64x128xi32>
    %186 = arith.muli %185, %183 : vector<64x128xi32>
    %187 = arith.cmpi eq, %184, %186 : vector<64x128xi32>
    %188 = arith.extui %187 : vector<64x128xi1> to vector<64x128xi32>
    %189 = arith.sitofp %188 : vector<64x128xi32> to vector<64x128xf32>
    %c2_i32_123 = arith.constant 2 : i32
    %190 = vector.broadcast %c2_i32_123 : i32 to vector<64x128xi32>
    %191 = arith.muli %190, %183 : vector<64x128xi32>
    %c1_i32_124 = arith.constant 1 : i32
    %192 = vector.broadcast %c1_i32_124 : i32 to vector<64x128xi32>
    %193 = arith.addi %191, %192 : vector<64x128xi32>
    %194 = arith.cmpi eq, %184, %193 : vector<64x128xi32>
    %195 = arith.extui %194 : vector<64x128xi1> to vector<64x128xi32>
    %196 = arith.sitofp %195 : vector<64x128xi32> to vector<64x128xf32>
    %cst_125 = arith.constant dense<0.000000e+00> : vector<64x64xf32>
    %197 = tpu.matmul %189, %182, %cst_125 {dimension_numbers = #tpu.dot_dimension_numbers<[1], [0], [0], [1], [0, 0, 1, 1], [], []>} : vector<64x128xf32>, vector<128x64xf32>, vector<64x64xf32> -> vector<64x64xf32>
    %cst_126 = arith.constant dense<0.000000e+00> : vector<64x64xf32>
    %198 = tpu.matmul %196, %182, %cst_126 {dimension_numbers = #tpu.dot_dimension_numbers<[1], [0], [0], [1], [0, 0, 1, 1], [], []>} : vector<64x128xf32>, vector<128x64xf32>, vector<64x64xf32> -> vector<64x64xf32>
    %199 = arith.maximumf %197, %198 : vector<64x64xf32>
    %c0_127 = arith.constant 0 : index
    %c0_128 = arith.constant 0 : index
    %200 = vector.load %arg9[%c0_127, %c0_128] : memref<160x64xf32, #tpu.memory_space<vmem>>, vector<64x64xf32>
    %cst_129 = arith.constant dense<0.000000e+00> : vector<64x64xf32>
    %201 = tpu.matmul %200, %199, %cst_129 {dimension_numbers = #tpu.dot_dimension_numbers<[1], [0], [0], [1], [0, 0, 1, 1], [], []>} : vector<64x64xf32>, vector<64x64xf32>, vector<64x64xf32> -> vector<64x64xf32>
    %c0_130 = arith.constant 0 : index
    %c8 = arith.constant 8 : index
    %202 = vector.load %arg14[%c0_130, %c8] : memref<128x13xf32, #tpu.memory_space<vmem>>, vector<64x1xf32>
    %203 = vector.broadcast %202 : vector<64x1xf32> to vector<64x64xf32>
    %204 = arith.addf %201, %203 : vector<64x64xf32>
    %cst_131 = arith.constant 0.000000e+00 : f32
    %205 = vector.broadcast %cst_131 : f32 to vector<64x64xf32>
    %206 = arith.maximumf %204, %205 : vector<64x64xf32>
    %c64 = arith.constant 64 : index
    %c0_132 = arith.constant 0 : index
    %207 = vector.load %arg9[%c64, %c0_132] : memref<160x64xf32, #tpu.memory_space<vmem>>, vector<32x64xf32>
    %cst_133 = arith.constant dense<0.000000e+00> : vector<32x64xf32>
    %208 = tpu.matmul %207, %206, %cst_133 {dimension_numbers = #tpu.dot_dimension_numbers<[1], [0], [0], [1], [0, 0, 1, 1], [], []>} : vector<32x64xf32>, vector<64x64xf32>, vector<32x64xf32> -> vector<32x64xf32>
    %c0_134 = arith.constant 0 : index
    %c9 = arith.constant 9 : index
    %209 = vector.load %arg14[%c0_134, %c9] : memref<128x13xf32, #tpu.memory_space<vmem>>, vector<32x1xf32>
    %210 = vector.broadcast %209 : vector<32x1xf32> to vector<32x64xf32>
    %211 = arith.addf %208, %210 : vector<32x64xf32>
    %cst_135 = arith.constant 0.000000e+00 : f32
    %212 = vector.broadcast %cst_135 : f32 to vector<32x64xf32>
    %213 = arith.maximumf %211, %212 : vector<32x64xf32>
    %c96 = arith.constant 96 : index
    %c0_136 = arith.constant 0 : index
    %214 = vector.load %arg9[%c96, %c0_136] : memref<160x64xf32, #tpu.memory_space<vmem>>, vector<64x64xf32>
    %cst_137 = arith.constant dense<0.000000e+00> : vector<32x64xf32>
    %215 = tpu.matmul %213, %214, %cst_137 {dimension_numbers = #tpu.dot_dimension_numbers<[1], [0], [0], [1], [0, 0, 1, 1], [], []>} : vector<32x64xf32>, vector<64x64xf32>, vector<32x64xf32> -> vector<32x64xf32>
    %c6_138 = arith.constant 6 : index
    %c0_139 = arith.constant 0 : index
    %216 = vector.load %arg13[%c6_138, %c0_139] : memref<12x128xf32, #tpu.memory_space<vmem>>, vector<1x64xf32>
    %217 = vector.broadcast %216 : vector<1x64xf32> to vector<32x64xf32>
    %218 = arith.addf %215, %217 : vector<32x64xf32>
    %cst_140 = arith.constant 0.000000e+00 : f32
    %219 = vector.broadcast %cst_140 : f32 to vector<32x64xf32>
    %220 = arith.maximumf %218, %219 : vector<32x64xf32>
    %c0_141 = arith.constant 0 : index
    %c0_142 = arith.constant 0 : index
    %221 = vector.load %arg10[%c0_141, %c0_142] : memref<64x32xf32, #tpu.memory_space<vmem>>, vector<64x32xf32>
    %cst_143 = arith.constant dense<0.000000e+00> : vector<32x32xf32>
    %222 = tpu.matmul %220, %221, %cst_143 {dimension_numbers = #tpu.dot_dimension_numbers<[1], [0], [0], [1], [0, 0, 1, 1], [], []>} : vector<32x64xf32>, vector<64x32xf32>, vector<32x32xf32> -> vector<32x32xf32>
    %c7_144 = arith.constant 7 : index
    %c0_145 = arith.constant 0 : index
    %223 = vector.load %arg13[%c7_144, %c0_145] : memref<12x128xf32, #tpu.memory_space<vmem>>, vector<1x32xf32>
    %224 = vector.broadcast %223 : vector<1x32xf32> to vector<32x32xf32>
    %225 = arith.addf %222, %224 : vector<32x32xf32>
    %cst_146 = arith.constant 0.000000e+00 : f32
    %226 = vector.broadcast %cst_146 : f32 to vector<32x32xf32>
    %227 = arith.maximumf %225, %226 : vector<32x32xf32>
    %228 = tpu.iota {dimensions = array<i32: 0>} : vector<32x16xi32>
    %229 = tpu.iota {dimensions = array<i32: 1>} : vector<32x16xi32>
    %c2_i32_147 = arith.constant 2 : i32
    %230 = vector.broadcast %c2_i32_147 : i32 to vector<32x16xi32>
    %231 = arith.muli %230, %229 : vector<32x16xi32>
    %232 = arith.cmpi eq, %228, %231 : vector<32x16xi32>
    %233 = arith.extui %232 : vector<32x16xi1> to vector<32x16xi32>
    %234 = arith.sitofp %233 : vector<32x16xi32> to vector<32x16xf32>
    %c2_i32_148 = arith.constant 2 : i32
    %235 = vector.broadcast %c2_i32_148 : i32 to vector<32x16xi32>
    %236 = arith.muli %235, %229 : vector<32x16xi32>
    %c1_i32_149 = arith.constant 1 : i32
    %237 = vector.broadcast %c1_i32_149 : i32 to vector<32x16xi32>
    %238 = arith.addi %236, %237 : vector<32x16xi32>
    %239 = arith.cmpi eq, %228, %238 : vector<32x16xi32>
    %240 = arith.extui %239 : vector<32x16xi1> to vector<32x16xi32>
    %241 = arith.sitofp %240 : vector<32x16xi32> to vector<32x16xf32>
    %cst_150 = arith.constant dense<0.000000e+00> : vector<32x16xf32>
    %242 = tpu.matmul %227, %234, %cst_150 {dimension_numbers = #tpu.dot_dimension_numbers<[1], [0], [0], [1], [0, 0, 1, 1], [], []>} : vector<32x32xf32>, vector<32x16xf32>, vector<32x16xf32> -> vector<32x16xf32>
    %cst_151 = arith.constant dense<0.000000e+00> : vector<32x16xf32>
    %243 = tpu.matmul %227, %241, %cst_151 {dimension_numbers = #tpu.dot_dimension_numbers<[1], [0], [0], [1], [0, 0, 1, 1], [], []>} : vector<32x32xf32>, vector<32x16xf32>, vector<32x16xf32> -> vector<32x16xf32>
    %244 = arith.maximumf %242, %243 : vector<32x16xf32>
    %245 = tpu.iota {dimensions = array<i32: 0>} : vector<16x32xi32>
    %246 = tpu.iota {dimensions = array<i32: 1>} : vector<16x32xi32>
    %c2_i32_152 = arith.constant 2 : i32
    %247 = vector.broadcast %c2_i32_152 : i32 to vector<16x32xi32>
    %248 = arith.muli %247, %245 : vector<16x32xi32>
    %249 = arith.cmpi eq, %246, %248 : vector<16x32xi32>
    %250 = arith.extui %249 : vector<16x32xi1> to vector<16x32xi32>
    %251 = arith.sitofp %250 : vector<16x32xi32> to vector<16x32xf32>
    %c2_i32_153 = arith.constant 2 : i32
    %252 = vector.broadcast %c2_i32_153 : i32 to vector<16x32xi32>
    %253 = arith.muli %252, %245 : vector<16x32xi32>
    %c1_i32_154 = arith.constant 1 : i32
    %254 = vector.broadcast %c1_i32_154 : i32 to vector<16x32xi32>
    %255 = arith.addi %253, %254 : vector<16x32xi32>
    %256 = arith.cmpi eq, %246, %255 : vector<16x32xi32>
    %257 = arith.extui %256 : vector<16x32xi1> to vector<16x32xi32>
    %258 = arith.sitofp %257 : vector<16x32xi32> to vector<16x32xf32>
    %cst_155 = arith.constant dense<0.000000e+00> : vector<16x16xf32>
    %259 = tpu.matmul %251, %244, %cst_155 {dimension_numbers = #tpu.dot_dimension_numbers<[1], [0], [0], [1], [0, 0, 1, 1], [], []>} : vector<16x32xf32>, vector<32x16xf32>, vector<16x16xf32> -> vector<16x16xf32>
    %cst_156 = arith.constant dense<0.000000e+00> : vector<16x16xf32>
    %260 = tpu.matmul %258, %244, %cst_156 {dimension_numbers = #tpu.dot_dimension_numbers<[1], [0], [0], [1], [0, 0, 1, 1], [], []>} : vector<16x32xf32>, vector<32x16xf32>, vector<16x16xf32> -> vector<16x16xf32>
    %261 = arith.maximumf %259, %260 : vector<16x16xf32>
    %c0_157 = arith.constant 0 : index
    %c0_158 = arith.constant 0 : index
    %262 = vector.load %arg11[%c0_157, %c0_158] : memref<40x16xf32, #tpu.memory_space<vmem>>, vector<16x16xf32>
    %cst_159 = arith.constant dense<0.000000e+00> : vector<16x16xf32>
    %263 = tpu.matmul %262, %261, %cst_159 {dimension_numbers = #tpu.dot_dimension_numbers<[1], [0], [0], [1], [0, 0, 1, 1], [], []>} : vector<16x16xf32>, vector<16x16xf32>, vector<16x16xf32> -> vector<16x16xf32>
    %c0_160 = arith.constant 0 : index
    %c10 = arith.constant 10 : index
    %264 = vector.load %arg14[%c0_160, %c10] : memref<128x13xf32, #tpu.memory_space<vmem>>, vector<16x1xf32>
    %265 = vector.broadcast %264 : vector<16x1xf32> to vector<16x16xf32>
    %266 = arith.addf %263, %265 : vector<16x16xf32>
    %cst_161 = arith.constant 0.000000e+00 : f32
    %267 = vector.broadcast %cst_161 : f32 to vector<16x16xf32>
    %268 = arith.maximumf %266, %267 : vector<16x16xf32>
    %c16 = arith.constant 16 : index
    %c0_162 = arith.constant 0 : index
    %269 = vector.load %arg11[%c16, %c0_162] : memref<40x16xf32, #tpu.memory_space<vmem>>, vector<4x16xf32>
    %cst_163 = arith.constant dense<0.000000e+00> : vector<4x16xf32>
    %270 = tpu.matmul %269, %268, %cst_163 {dimension_numbers = #tpu.dot_dimension_numbers<[1], [0], [0], [1], [0, 0, 1, 1], [], []>} : vector<4x16xf32>, vector<16x16xf32>, vector<4x16xf32> -> vector<4x16xf32>
    %c0_164 = arith.constant 0 : index
    %c11_165 = arith.constant 11 : index
    %271 = vector.load %arg14[%c0_164, %c11_165] : memref<128x13xf32, #tpu.memory_space<vmem>>, vector<4x1xf32>
    %272 = vector.broadcast %271 : vector<4x1xf32> to vector<4x16xf32>
    %273 = arith.addf %270, %272 : vector<4x16xf32>
    %cst_166 = arith.constant 0.000000e+00 : f32
    %274 = vector.broadcast %cst_166 : f32 to vector<4x16xf32>
    %275 = arith.maximumf %273, %274 : vector<4x16xf32>
    %c24 = arith.constant 24 : index
    %c0_167 = arith.constant 0 : index
    %276 = vector.load %arg11[%c24, %c0_167] : memref<40x16xf32, #tpu.memory_space<vmem>>, vector<16x16xf32>
    %cst_168 = arith.constant dense<0.000000e+00> : vector<4x16xf32>
    %277 = tpu.matmul %275, %276, %cst_168 {dimension_numbers = #tpu.dot_dimension_numbers<[1], [0], [0], [1], [0, 0, 1, 1], [], []>} : vector<4x16xf32>, vector<16x16xf32>, vector<4x16xf32> -> vector<4x16xf32>
    %c8_169 = arith.constant 8 : index
    %c0_170 = arith.constant 0 : index
    %278 = vector.load %arg13[%c8_169, %c0_170] : memref<12x128xf32, #tpu.memory_space<vmem>>, vector<1x16xf32>
    %279 = vector.broadcast %278 : vector<1x16xf32> to vector<4x16xf32>
    %280 = arith.addf %277, %279 : vector<4x16xf32>
    %cst_171 = arith.constant 0.000000e+00 : f32
    %281 = vector.broadcast %cst_171 : f32 to vector<4x16xf32>
    %282 = arith.maximumf %280, %281 : vector<4x16xf32>
    %c0_172 = arith.constant 0 : index
    %c0_173 = arith.constant 0 : index
    %283 = vector.load %arg12[%c0_172, %c0_173] : memref<24x4xf32, #tpu.memory_space<vmem>>, vector<16x4xf32>
    %cst_174 = arith.constant dense<0.000000e+00> : vector<4x4xf32>
    %284 = tpu.matmul %282, %283, %cst_174 {dimension_numbers = #tpu.dot_dimension_numbers<[1], [0], [0], [1], [0, 0, 1, 1], [], []>} : vector<4x16xf32>, vector<16x4xf32>, vector<4x4xf32> -> vector<4x4xf32>
    %c9_175 = arith.constant 9 : index
    %c0_176 = arith.constant 0 : index
    %285 = vector.load %arg13[%c9_175, %c0_176] : memref<12x128xf32, #tpu.memory_space<vmem>>, vector<1x4xf32>
    %286 = vector.broadcast %285 : vector<1x4xf32> to vector<4x4xf32>
    %287 = arith.addf %284, %286 : vector<4x4xf32>
    %cst_177 = arith.constant 0.000000e+00 : f32
    %288 = vector.broadcast %cst_177 : f32 to vector<4x4xf32>
    %289 = arith.maximumf %287, %288 : vector<4x4xf32>
    %c16_178 = arith.constant 16 : index
    %c0_179 = arith.constant 0 : index
    %290 = vector.load %arg12[%c16_178, %c0_179] : memref<24x4xf32, #tpu.memory_space<vmem>>, vector<4x4xf32>
    %291 = arith.mulf %289, %290 : vector<4x4xf32>
    %cst_180 = arith.constant dense<0.000000e+00> : vector<4xf32>
    %292 = vector.multi_reduction <add>, %291, %cst_180 [1] : vector<4x4xf32> to vector<4xf32>
    %293 = vector.shape_cast %292 : vector<4xf32> to vector<4x1xf32>
    %cst_181 = arith.constant dense<0.000000e+00> : vector<1xf32>
    %294 = vector.multi_reduction <add>, %293, %cst_181 [0] : vector<4x1xf32> to vector<1xf32>
    %295 = vector.shape_cast %294 : vector<1xf32> to vector<1x1xf32>
    %c10_182 = arith.constant 10 : index
    %c0_183 = arith.constant 0 : index
    %296 = vector.load %arg13[%c10_182, %c0_183] : memref<12x128xf32, #tpu.memory_space<vmem>>, vector<1x1xf32>
    %297 = arith.addf %295, %296 : vector<1x1xf32>
    %cst_184 = arith.constant 0.000000e+00 : f32
    %298 = vector.broadcast %cst_184 : f32 to vector<1x1xf32>
    %299 = arith.maximumf %297, %298 : vector<1x1xf32>
    %300 = arith.addf %137, %299 : vector<1x1xf32>
    %c0_185 = arith.constant 0 : index
    %c0_186 = arith.constant 0 : index
    %c0_187 = arith.constant 0 : index
    %301 = vector.load %arg15[%c0_185, %c0_186, %c0_187] : memref<1x1x1xf32, #tpu.memory_space<vmem>>, vector<1x1x1xf32>
    %302 = vector.shape_cast %301 : vector<1x1x1xf32> to vector<1x1xf32>
    %303 = vector.shape_cast %300 : vector<1x1xf32> to vector<1x1x1xf32>
    tpu.vector_store %arg15[%c0_185, %c0_186, %c0_187], %303 {strides = array<i32>} : memref<1x1x1xf32, #tpu.memory_space<vmem>>, vector<1x1x1xf32>,
    return
  }
  func.func @transform_0(%arg0: i32) -> (i32, i32, i32) {
    %c0_i32 = arith.constant 0 : i32
    %c0_i32_0 = arith.constant 0 : i32
    %c0_i32_1 = arith.constant 0 : i32
    return %arg0, %c0_i32, %c0_i32_0 : i32, i32, i32
  }
  func.func @transform_1(%arg0: i32) -> (i32, i32, i32, i32) {
    %c0_i32 = arith.constant 0 : i32
    %c0_i32_0 = arith.constant 0 : i32
    %c0_i32_1 = arith.constant 0 : i32
    %c0_i32_2 = arith.constant 0 : i32
    %c0_i32_3 = arith.constant 0 : i32
    return %c0_i32, %c0_i32_0, %c0_i32_1, %c0_i32_2 : i32, i32, i32, i32
  }
  func.func @transform_2(%arg0: i32) -> (i32, i32, i32) {
    %c0_i32 = arith.constant 0 : i32
    %c0_i32_0 = arith.constant 0 : i32
    %c0_i32_1 = arith.constant 0 : i32
    %c0_i32_2 = arith.constant 0 : i32
    return %c0_i32, %c0_i32_0, %c0_i32_1 : i32, i32, i32
  }
  func.func @transform_3(%arg0: i32) -> (i32, i32, i32) {
    %c0_i32 = arith.constant 0 : i32
    %c0_i32_0 = arith.constant 0 : i32
    %c0_i32_1 = arith.constant 0 : i32
    %c0_i32_2 = arith.constant 0 : i32
    return %c0_i32, %c0_i32_0, %c0_i32_1 : i32, i32, i32
  }
  func.func @transform_4(%arg0: i32) -> (i32, i32, i32) {
    %c0_i32 = arith.constant 0 : i32
    %c0_i32_0 = arith.constant 0 : i32
    %c0_i32_1 = arith.constant 0 : i32
    %c0_i32_2 = arith.constant 0 : i32
    return %c0_i32, %c0_i32_0, %c0_i32_1 : i32, i32, i32
  }
  func.func @transform_5(%arg0: i32) -> (i32, i32, i32) {
    %c0_i32 = arith.constant 0 : i32
    %c0_i32_0 = arith.constant 0 : i32
    %c0_i32_1 = arith.constant 0 : i32
    %c0_i32_2 = arith.constant 0 : i32
    return %c0_i32, %c0_i32_0, %c0_i32_1 : i32, i32, i32
  }
  func.func @transform_6(%arg0: i32) -> (i32, i32) {
    %c0_i32 = arith.constant 0 : i32
    %c0_i32_0 = arith.constant 0 : i32
    %c0_i32_1 = arith.constant 0 : i32
    return %c0_i32, %c0_i32_0 : i32, i32
  }
  func.func @transform_7(%arg0: i32) -> (i32, i32) {
    %c0_i32 = arith.constant 0 : i32
    %c0_i32_0 = arith.constant 0 : i32
    %c0_i32_1 = arith.constant 0 : i32
    return %c0_i32, %c0_i32_0 : i32, i32
  }
  func.func @transform_8(%arg0: i32) -> (i32, i32) {
    %c0_i32 = arith.constant 0 : i32
    %c0_i32_0 = arith.constant 0 : i32
    %c0_i32_1 = arith.constant 0 : i32
    return %c0_i32, %c0_i32_0 : i32, i32
  }
  func.func @transform_9(%arg0: i32) -> (i32, i32) {
    %c0_i32 = arith.constant 0 : i32
    %c0_i32_0 = arith.constant 0 : i32
    %c0_i32_1 = arith.constant 0 : i32
    return %c0_i32, %c0_i32_0 : i32, i32
  }
  func.func @transform_10(%arg0: i32) -> (i32, i32) {
    %c0_i32 = arith.constant 0 : i32
    %c0_i32_0 = arith.constant 0 : i32
    %c0_i32_1 = arith.constant 0 : i32
    return %c0_i32, %c0_i32_0 : i32, i32
  }
  func.func @transform_11(%arg0: i32) -> (i32, i32) {
    %c0_i32 = arith.constant 0 : i32
    %c0_i32_0 = arith.constant 0 : i32
    %c0_i32_1 = arith.constant 0 : i32
    return %c0_i32, %c0_i32_0 : i32, i32
  }
  func.func @transform_12(%arg0: i32) -> (i32, i32) {
    %c0_i32 = arith.constant 0 : i32
    %c0_i32_0 = arith.constant 0 : i32
    %c0_i32_1 = arith.constant 0 : i32
    return %c0_i32, %c0_i32_0 : i32, i32
  }
  func.func @transform_13(%arg0: i32) -> (i32, i32) {
    %c0_i32 = arith.constant 0 : i32
    %c0_i32_0 = arith.constant 0 : i32
    %c0_i32_1 = arith.constant 0 : i32
    return %c0_i32, %c0_i32_0 : i32, i32
  }
  func.func @transform_14(%arg0: i32) -> (i32, i32, i32) {
    %c0_i32 = arith.constant 0 : i32
    %c0_i32_0 = arith.constant 0 : i32
    %c0_i32_1 = arith.constant 0 : i32
    return %arg0, %c0_i32, %c0_i32_0 : i32, i32, i32
  }
}

</mosaic_0001>

<bundles_post_ra>
// kernel: forward.1
= control target key start
LH: loop header
LB: loop body
LE: loop exit
PB: predicated region body
PF: predicated region fallthrough
CT: control target
= control target key end

     0   :  { %s7842_s29 = smov 0   ;;  %s9368_s0 = inlined_call_operand.vmem [shape: f32[2,4,16], index: 0, kind: input, shape index: {}]   ;;  %s9369_s1 = inlined_call_operand.vmem [shape: f32[2,3,4,4], index: 1, kind: input, shape index: {}]   ;;  %s9370_s2 = inlined_call_operand.vmem [shape: f32[2,128,4], index: 2, kind: input, shape index: {}]   ;;  %s9371_s3 = inlined_call_operand.vmem [shape: f32[2,16,128], index: 3, kind: input, shape index: {}]   ;;  %s9372_s4 = inlined_call_operand.vmem [shape: f32[2,4,128], index: 4, kind: input, shape index: {}]   ;;  %s9373_s5 = inlined_call_operand.vmem [shape: f32[2,128,16], index: 5, kind: input, shape index: {}]   ;;  %s9374_s6 = inlined_call_operand.vmem [shape: f32[128,4], index: 6, kind: input, shape index: {}]   ;;  %s9375_s7 = inlined_call_operand.vmem [shape: f32[272,128], index: 7, kind: input, shape index: {}]   ;;  %s9376_s8 = inlined_call_operand.vmem [shape: f32[160,64], index: 8, kind: input, shape index: {}]   ;;  %s9377_s9 = inlined_call_operand.vmem [shape: f32[64,32], index: 9, kind: input, shape index: {}]   ;;  %s9378_s10 = inlined_call_operand.vmem [shape: f32[40,16], index: 10, kind: input, shape index: {}]   ;;  %s9379_s11 = inlined_call_operand.vmem [shape: f32[24,4], index: 11, kind: input, shape index: {}]   ;;  %s9380_s12 = inlined_call_operand.vmem [shape: f32[12,128], index: 12, kind: input, shape index: {}]   ;;  %s9381_s13 = inlined_call_operand.vmem [shape: f32[128,13], index: 13, kind: input, shape index: {}]   ;;  %s9382_s14 = inlined_call_operand.vmem [shape: f32[2,1,1], index: 14, kind: output, shape index: {}]  }
   0x1 LB: > { %s5611_s30 = sadd.s32 4294967295, %s7745_s29   ;;  %p5615_p0 = scmp.ge.s32.totalorder %s7745_s29, 1  ;;  %s7745_s29 = sphi %s7842_s29, %s24_s29  }
   0x2   : > { %p411_p1 = scmp.lt.s32.totalorder %s7745_s29, 3 }
   0x4   : > { %p412_p2 = pnand %p5615_p0, %p411_p1 }
   0x5   : > { %v462_v0 = vlaneseq (!%p412_p2)  ;;  %p454_p3 = scmp.lt.s32.totalorder (!%p412_p2), %s5611_s30, 1  ;;  %v7747_v1 = vmov (!%p412_p2), 0.0|0.0   ;;  %vm9385_vm0 = vmmov (!%p412_p2), 0   ;;  %v7749_v4 = vmov (!%p412_p2), 0.0   ;;  %v879_v11 = vld [vmem:[%s9370_s2] sm:$0xff] (!%p412_p2)  ;;  %v880_v12 = vld [vmem:[%s9370_s2 + $0x8] sm:$0xff] (!%p412_p2) }
   0x6   : > { %415 = sbr.rel (%p412_p2) target bundleno = 5837 (0x16cd), region = 76  ;;  %7249 = vmatprep.subr.bf16.mxu0 (!%p412_p2), %v7747_v1  ;;  %6409 = vmatprep.mubr.msk.f32.mxu0 (!%p412_p2), %vm9385_vm0, %v7749_v4  ;;  %vm9383_vm3 = vcmask (!%p412_p2), 1043456   ;;  %v7750_v9 = vmov (!%p412_p2), 1.0|1.0   ;;  %vm9384_vm5 = vcmask (!%p412_p2), 130048   ;;  %vm567_vm6 = vcmask (!%p412_p2), 31744  }
   0x7   : > { %v7851_v2 = vshrl.u32 (!%p412_p2), %v462_v0, 7  ;;  %v7853_v3 = vand.u32 (!%p412_p2), 127, %v462_v0  ;;  %6412 = vmatprep.subr.mxu1 (!%p412_p2), %v7749_v4  ;;  %6414 = vmatprep.mubr.msk.f32.mxu1 (!%p412_p2), %vm9385_vm0, %v7749_v4  ;;  %v881_v13 = vld [vmem:[%s9370_s2 + $0x10] sm:$0xff] (!%p412_p2)  ;;  %v882_v14 = vld [vmem:[%s9370_s2 + $0x18] sm:$0xff] (!%p412_p2)  ;;  %v883_v15 = vld [vmem:[%s9370_s2 + $0x20] sm:$0xff] (!%p412_p2)  ;;  %v7751_v28 = vmov (!%p412_p2), 1  }
   0x8   : > { %v884_v16 = vld [vmem:[%s9370_s2 + $0x28] sm:$0xff] (!%p412_p2)  ;;  %v885_v17 = vld [vmem:[%s9370_s2 + $0x30] sm:$0xff] (!%p412_p2)  ;;  %v886_v18 = vld [vmem:[%s9370_s2 + $0x38] sm:$0xff] (!%p412_p2)  ;;  %7708 = vset.pattern.permute.xlu0 (!%p412_p2), %v7751_v28  ;;  %7709 = vset.pattern.permute.xlu1 (!%p412_p2), %v7751_v28  ;;  %s7762_s26 = smov (!%p412_p2), 3   ;;  %s7766_s28 = smov (!%p412_p2), 113  }
   0x9   : > { %v7863_v5 = vadd.s32 (!%p412_p2), 8, %v7851_v2  ;;  %v467_v6 = vadd.s32 (!%p412_p2), 2, %v7851_v2  ;;  %v887_v19 = vld [vmem:[%s9370_s2 + $0x40] sm:$0xff] (!%p412_p2)  ;;  %v888_v20 = vld [vmem:[%s9370_s2 + $0x48] sm:$0xff] (!%p412_p2)  ;;  %v889_v21 = vld [vmem:[%s9370_s2 + $0x50] sm:$0xff] (!%p412_p2)  ;;  %v475_v44 = vadd.s32 (!%p412_p2), 1, %v7851_v2 }
   0xa   : > { %v890_v22 = vld [vmem:[%s9370_s2 + $0x58] sm:$0xff] (!%p412_p2)  ;;  %v891_v23 = vld [vmem:[%s9370_s2 + $0x60] sm:$0xff] (!%p412_p2)  ;;  %v892_v24 = vld [vmem:[%s9370_s2 + $0x68] sm:$0xff] (!%p412_p2) }
   0xb   : > { %v468_v7 = vadd.s32 (!%p412_p2), 2, %v7863_v5  ;;  %vm469_vm1 = vcmp.eq.s32.totalorder (!%p412_p2), %v7853_v3, %v467_v6  ;;  %v893_v25 = vld [vmem:[%s9370_s2 + $0x70] sm:$0xff] (!%p412_p2)  ;;  %v7954_v26 = vld [vmem:[%s9381_s13] sm:$0xff] (!%p412_p2)  ;;  %v894_v27 = vld [vmem:[%s9370_s2 + $0x78] sm:$0xff] (!%p412_p2)  ;;  %v476_v45 = vadd.s32 (!%p412_p2), 1, %v7863_v5  ;;  %vm477_vm7 = vcmp.eq.s32.totalorder (!%p412_p2), %v7853_v3, %v475_v44 }
   0xc   : > { %v7963_v29 = vld [vmem:[%s9381_s13 + $0x10] sm:$0xff] (!%p412_p2)  ;;  %913 = vperm.xlu0 (!%p412_p2), %7708, %v7954_v26   ;;  %v7970_v30 = vld [vmem:[%s9381_s13 + $0x8] sm:$0xff] (!%p412_p2)  ;;  %v7976_v31 = vld [vmem:[%s9381_s13 + $0x18] sm:$0xff] (!%p412_p2) }
   0xd   : > { %s9424_s30 = smov (!%p454_p3, %s5611_s30), 1  ;;  %vm470_vm2 = vcmp.eq.s32.totalorder %v7853_v3, %v468_v7  ;;  %923 = vperm.xlu1 %7709, %v7963_v29   ;;  %v7985_v32 = vld [vmem:[%s9381_s13 + $0x20] sm:$0xff]  ;;  %v7990_v33 = vld [vmem:[%s9381_s13 + $0x28] sm:$0xff]  ;;  %v7997_v34 = vld [vmem:[%s9381_s13 + $0x30] sm:$0xff]  ;;  %vm478_vm8 = vcmp.eq.s32.totalorder %v7853_v3, %v476_v45  ;;  %v7752_v7 = vmov 0  }
   0xe   : > { %s5616_s15 = sshll.u32 %s9424_s30, 2  ;;  %vm7875_vm4 = vmpackc.low %vm470_vm2, %vm469_vm1  ;;  %v8002_v35 = vld [vmem:[%s9381_s13 + $0x38] sm:$0xff]  ;;  %v8009_v36 = vld [vmem:[%s9381_s13 + $0x40] sm:$0xff]  ;;  %s460_s17 = scalar_lea.vmem %s9382_s14, %s9424_s30 }
   0xf   : > { %s7872_s18 = scalar_lea.vmem %s9368_s0, %s5616_s15  ;;  %7251 = vmatpush3.bf16.msk.msra.mxu0 %vm7875_vm4, %v7750_v9  ;;  %v8014_v37 = vld [vmem:[%s9381_s13 + $0x48] sm:$0xff]  ;;  %v8021_v38 = vld [vmem:[%s9381_s13 + $0x50] sm:$0xff]  ;;  %v8026_v39 = vld [vmem:[%s9381_s13 + $0x58] sm:$0xff]  ;;  %s7763_s15 = smov 15  }
  0x10   : > { %v7883_v10 = vld [vmem:[%s7872_s18] sm:$0xf]  ;;  %918 = vperm.xlu0 %7708, %v7970_v30   ;;  %v8038_v41 = vld [vmem:[%s9381_s13 + $0x68] sm:$0xff]  ;;  %v8045_v42 = vld [vmem:[%s9381_s13 + $0x70] sm:$0xff] }
  0x11   : > { %6434 = vmatprep.subr.msk.mxu0 %vm9383_vm3, %v7883_v10  ;;  %928 = vperm.xlu1 %7709, %v7976_v31   ;;  %v8033_v40 = vld [vmem:[%s9381_s13 + $0x60] sm:$0xff]  ;;  %v8050_v43 = vld [vmem:[%s9381_s13 + $0x78] sm:$0xff]  ;;  %vm7253_vm9 = vmpackc.low %vm478_vm8, %vm477_vm7 }
  0x12   : > { %6410 = vmatmul.mubr.msk.f32.vlgmr.msra.gmra.mrb[0].mxu0 %vm9384_vm5, %v7883_v10  ;;  %v566_v46 = vld [vmem:[%s9369_s1] sm:$0xf]  ;;  %v5634_v28 = vld [vmem:[%s9369_s1 + $0x8] sm:$0xf] }
  0x13   : > { %6435 = vmatpush3.msk.msra.mxu0 %vm9383_vm3, %v7883_v10  ;;  %6436 = vmatprep.mubr.msk.f32.mxu0 %vm567_vm6, %v879_v11  ;;  %v8089_v6 = vld [vmem:[%s9381_s13] sm:$0xf] }
  0x14   : > { %7259 = vmatprep.subr.bf16.mxu0 %v7747_v1  ;;  %933 = vperm.xlu0 %7708, %v7985_v32  }
  0x15   : > { %938 = vperm.xlu1 %7709, %v7990_v33  }
  0x16   : > { %6437 = vmatmul.mubr.msk.f32.vlgmr.msra.gmra.mrb[2].mxu0 %vm567_vm6, %v880_v12 }
  0x17   : > { %6439 = vmatprep.mubr.msk.f32.mxu0 %vm567_vm6, %v881_v13 }
  0x18   : > { %943 = vperm.xlu0 %7708, %v7997_v34  }
  0x19   : > { %948 = vperm.xlu1 %7709, %v8002_v35  }
  0x1a   : > { %6440 = vmatmul.mubr.msk.f32.gmra.mrb[4].mxu0 %vm567_vm6, %v882_v14 }
  0x1b   : > { %6442 = vmatprep.mubr.msk.f32.mxu0 %vm567_vm6, %v883_v15  ;;  %v1200_v15 = vld [vmem:[%s9371_s3] sm:$0xff] }
  0x1c   : > { %953 = vperm.xlu0 %7708, %v8009_v36  }
  0x1d   : > { %958 = vperm.xlu1 %7709, %v8014_v37  }
  0x1e   : > { %6443 = vmatmul.mubr.msk.f32.gmra.mrb[6].mxu0 %vm567_vm6, %v884_v16  ;;  %v1201_v16 = vld [vmem:[%s9371_s3 + $0x8] sm:$0xff] }
  0x1f   : > { %6445 = vmatprep.mubr.msk.f32.mxu0 %vm567_vm6, %v885_v17  ;;  %v5631_v17 = vld [vmem:[%s9369_s1 + $0x4] sm:$0xf] }
  0x20   : > { %963 = vperm.xlu0 %7708, %v8021_v38  }
  0x21   : > { %968 = vperm.xlu1 %7709, %v8026_v39  }
  0x22   : > { %6446 = vmatmul.mubr.msk.f32.gmra.mrb[8].mxu0 %vm567_vm6, %v886_v18 }
  0x23   : > { %6448 = vmatprep.mubr.msk.f32.mxu0 %vm567_vm6, %v887_v19 }
  0x24   : > { %973 = vperm.xlu0 %7708, %v8033_v40  }
  0x25   : > { %978 = vperm.xlu1 %7709, %v8038_v41  }
  0x26   : > { %6449 = vmatmul.mubr.msk.f32.gmra.mrb[10].mxu0 %vm567_vm6, %v888_v20  ;;  %v7255_v20 = vpack.c.bf16 %v1201_v16, %v1200_v15 }
  0x27   : > { %6451 = vmatprep.mubr.msk.f32.mxu0 %vm567_vm6, %v889_v21 }
  0x28   : > { %983 = vperm.xlu0 %7708, %v8045_v42  }
  0x29   : > { %988 = vperm.xlu1 %7709, %v8050_v43  }
  0x2a   : > { %6452 = vmatmul.mubr.msk.f32.gmra.mrb[12].mxu0 %vm567_vm6, %v890_v22 }
  0x2b   : > { %6454 = vmatprep.mubr.msk.f32.mxu0 %vm567_vm6, %v891_v23 }
  0x2d   : > { %7711 = vset.pattern.permute.xlu1 %v7752_v7 }
  0x2e   : > { %6455 = vmatmul.mubr.msk.f32.gmra.mrb[14].mxu0 %vm567_vm6, %v892_v24  ;;  %647 = vperm.xlu1 %7711, %v8089_v6  }
  0x2f   : > { %6457 = vmatprep.mubr.msk.f32.mxu0 %vm567_vm6, %v893_v25 }
  0x32   : > { %6458 = vmatmul.mubr.msk.f32.gmra.mrb[16].mxu0 %vm567_vm6, %v894_v27 }
  0x33   : > { %6520 = vmatprep.mubr.msk.f32.mxu0 %vm9385_vm0, %v7749_v4 }
  0x8b   : > { %v914_v11 = vpop.permute.xlu0 %913 }
  0x8c   : > { %v924_v12 = vpop.permute.xlu1 %923 }
  0x8f   : > { %v919_v13 = vpop.permute.xlu0 %918 }
  0x90   : > { %v929_v14 = vpop.permute.xlu1 %928 }
  0x93   : > { %v934_v18 = vpop.permute.xlu0 %933 }
  0x94   : > { %v939_v22 = vpop.permute.xlu1 %938 }
  0x97   : > { %v944_v24 = vpop.permute.xlu0 %943 }
  0x98   : > { %v949_v45 = vpop.permute.xlu1 %948 }
  0xe5   : > { %v562_v47 = vpop.f32.mrb[0].mxu0 }
  0xe6   : > { %v6411_v48 = vpop.f32.mrb[1].mxu0  ;;  %6413 = vmatpush3.msk.msra.mxu1 %vm9383_vm3, %v562_v47 }
  0xe7   : > { %6415 = vmatmul.mubr.msk.f32.vlgmr.msra.gmra.mrb[0].mxu1 %vm567_vm6, %v566_v46  ;;  %7252 = vmatprep.subr.bf16.mxu1 %v7747_v1 }
  0xe8   : > { %7254 = vmatpush3.bf16.msk.msra.mxu1 %vm7253_vm9, %v7750_v9  ;;  %6421 = vmatprep.mubr.msk.f32.mxu1 %vm9385_vm0, %v7749_v4 }
  0xe9   : > { %v6438_v49 = vpop.f32.mrb[2].mxu0  ;;  %6424 = vmatprep.subr.mxu1 %v7749_v4 }
  0xea   : > { %v1105_v50 = vpop.f32.mrb[3].mxu0  ;;  %v1111_v44 = vadd.f32 %v6438_v49, %v919_v13 }
  0xeb   : > { %6422 = vmatmul.mubr.msk.f32.vlgmr.msra.gmra.mrb[2].mxu1 %vm9384_vm5, %v7883_v10  ;;  %v1106_v23 = vadd.f32 %v1105_v50, %v914_v11  ;;  %v954_v50 = vpop.permute.xlu0 %953 }
  0xec   : > { %6426 = vmatprep.mubr.msk.f32.mxu1 %vm9385_vm0, %v7749_v4  ;;  %v1185_v47 = vmax.f32 %v1111_v44, 0.0 }
  0xed   : > { %v6441_v51 = vpop.f32.mrb[4].mxu0  ;;  %v1184_v25 = vmax.f32 %v1106_v23, 0.0 }
  0xee   : > { %v1115_v52 = vpop.f32.mrb[5].mxu0  ;;  %v1121_v48 = vadd.f32 %v6441_v51, %v929_v14 }
  0xef   : > { %v1116_v27 = vadd.f32 %v1115_v52, %v924_v12  ;;  %v959_v52 = vpop.permute.xlu1 %958  ;;  %v964_v15 = vpop.permute.xlu0 %963 }
  0xf0   : > { %v1187_v11 = vmax.f32 %v1121_v48, 0.0  ;;  %v1495_v48 = vld [vmem:[%s9373_s5 + $0x18] sm:$0xff] }
  0xf1   : > { %v6444_v53 = vpop.f32.mrb[6].mxu0  ;;  %v1186_v46 = vmax.f32 %v1116_v27, 0.0 }
  0xf2   : > { %v1125_v54 = vpop.f32.mrb[7].mxu0  ;;  %v1131_v49 = vadd.f32 %v6444_v53, %v939_v22 }
  0xf3   : > { %v1126_v7 = vadd.f32 %v1125_v54, %v934_v18  ;;  %v974_v53 = vpop.permute.xlu0 %973 }
  0xf4   : > { %v1189_v16 = vmax.f32 %v1131_v49, 0.0  ;;  %v1498_v49 = vld [vmem:[%s9373_s5 + $0x30] sm:$0xff] }
  0xf5   : > { %v6447_v55 = vpop.f32.mrb[8].mxu0  ;;  %v1188_v12 = vmax.f32 %v1126_v7, 0.0  ;;  %v1496_v7 = vld [vmem:[%s9373_s5 + $0x20] sm:$0xff] }
  0xf6   : > { %v1135_v56 = vpop.f32.mrb[9].mxu0  ;;  %v1141_v51 = vadd.f32 %v6447_v55, %v949_v45 }
  0xf7   : > { %v1136_v13 = vadd.f32 %v1135_v56, %v944_v24  ;;  %v984_v24 = vpop.permute.xlu0 %983 }
  0xf8   : > { %v1191_v54 = vmax.f32 %v1141_v51, 0.0 }
  0xf9   : > { %v8072_v57 = vpop.f32.mrb[10].mxu0  ;;  %v1190_v14 = vmax.f32 %v1136_v13, 0.0 }
  0xfa   : > { %v1145_v58 = vpop.f32.mrb[11].mxu0  ;;  %v1151_v18 = vadd.f32 %v8072_v57, %v959_v52  ;;  %v1497_v52 = vld [vmem:[%s9373_s5 + $0x28] sm:$0xff] }
  0xfc   : > { %v1193_v55 = vmax.f32 %v1151_v18, 0.0  ;;  %v1505_v18 = vld [vmem:[%s9373_s5 + $0x68] sm:$0xff] }
  0xfd   : > { %v8074_v59 = vpop.f32.mrb[12].mxu0 }
  0xfe   : > { %v8076_v60 = vpop.f32.mrb[13].mxu0 }
  0xff   : > { %v1156_v56 = vadd.f32 %v8076_v60, %v964_v15  ;;  %v1500_v15 = vld [vmem:[%s9373_s5 + $0x40] sm:$0xff] }
 0x101   : > { %v8078_v61 = vpop.f32.mrb[14].mxu0  ;;  %v1194_v22 = vmax.f32 %v1156_v56, 0.0 }
 0x102   : > { %v8080_v62 = vpop.f32.mrb[15].mxu0 }
 0x103   : > { %v1166_v23 = vadd.f32 %v8080_v62, %v974_v53 }
 0x105   : > { %v8082_v63 = vpop.f32.mrb[16].mxu0  ;;  %v1196_v60 = vmax.f32 %v1166_v23, 0.0 }
 0x106   : > { %v8084_v0 = vpop.f32.mrb[17].mxu0 }
 0x107   : > { %v1176_v27 = vadd.f32 %v8084_v0, %v984_v24  ;;  %v1493_v0 = vld [vmem:[%s9373_s5 + $0x8] sm:$0xff] }
 0x109   : > { %v1198_v62 = vmax.f32 %v1176_v27, 0.0 }
 0x1be   : > { %v717_v19 = vpop.f32.mrb[2].mxu1 }
 0x1bf   : > { %v6423_v21 = vpop.f32.mrb[3].mxu1  ;;  %6425 = vmatpush3.msk.msra.mxu1 %vm9383_vm3, %v717_v19  ;;  %v969_v19 = vpop.permute.xlu1 %968 }
 0x1c0   : > { %6427 = vmatmul.mubr.msk.f32.vlgmr.msra.gmra.mrb[0].mxu1 %vm567_vm6, %v5631_v17  ;;  %6429 = vmatprep.subr.mxu1 %v7749_v4  ;;  %v1146_v17 = vadd.f32 %v1145_v58, %v954_v50  ;;  %v1161_v58 = vadd.f32 %v8074_v59, %v969_v19 }
 0x1c1   : > { %6430 = vmatpush3.msk.msra.mxu1 %vm9383_vm3, %v7883_v10  ;;  %6431 = vmatprep.mubr.msk.f32.mxu1 %vm9385_vm0, %v7749_v4 }
 0x1c2   : > { %7256 = vmatprep.subr.bf16.mxu1 %v7255_v20  ;;  %v1195_v57 = vmax.f32 %v1161_v58, 0.0 }
 0x1c3   : > { %v979_v21 = vpop.permute.xlu1 %978 }
 0x1c8   : > { %6432 = vmatmul.mubr.msk.f32.vlgmr.msra.gmra.mrb[0].mxu1 %vm567_vm6, %v5634_v28  ;;  %v989_v28 = vpop.permute.xlu1 %988 }
 0x1c9   : > { %7258 = vmatpush3.bf16.msra.mxu1 %v7255_v20  ;;  %6464 = vmatprep.mubr.msk.f32.mxu1 %vm9384_vm5, %v1184_v25  ;;  %v1192_v20 = vmax.f32 %v1146_v17, 0.0  ;;  %v1171_v25 = vadd.f32 %v8078_v61, %v979_v21  ;;  %v1181_v44 = vadd.f32 %v8082_v63, %v989_v28  ;;  %v1492_v61 = vld [vmem:[%s9373_s5] sm:$0xff]  ;;  %v1494_v63 = vld [vmem:[%s9373_s5 + $0x10] sm:$0xff]  ;;  %v1503_v17 = vld [vmem:[%s9373_s5 + $0x58] sm:$0xff] }
 0x1ca   : > { %7283 = vmatprep.subr.bf16.mxu1 %v7747_v1  ;;  %v7287_v50 = vpack.c.bf16 %v1495_v48, %v1494_v63  ;;  %v8193_v21 = vld [vmem:[%s9380_s12] ss:$0 sm:$0xff] }
 0x1cb   : > { %v1197_v59 = vmax.f32 %v1171_v25, 0.0  ;;  %v1199_v45 = vmax.f32 %v1181_v44, 0.0 }
 0x1cc   : > { %6465 = vmatmul.mubr.msk.f32.vlgmr.msra.gmra.mrb[4].mxu1 %vm9384_vm5, %v1185_v47  ;;  %v7284_v47 = vpack.c.bf16 %v1493_v0, %v1492_v61 }
 0x1cd   : > { %6467 = vmatprep.mubr.msk.f32.mxu1 %vm9384_vm5, %v1186_v46  ;;  %v7753_v46 = vmov 2  }
 0x1ce   : > { %7710 = vset.pattern.permute.xlu0 %v7753_v46  ;;  %7285 = vmatpush3.bf16.msra.mxu1 %v7284_v47 }
 0x1cf   : > { %1418 = vperm.xlu0 %7710, %v8089_v6   ;;  %7286 = vmatprep.subr.bf16.mxu1 %v7747_v1 }
 0x1d0   : > { %6468 = vmatmul.mubr.msk.f32.gmra.mrb[6].mxu1 %vm9384_vm5, %v1187_v11  ;;  %v7290_v11 = vpack.c.bf16 %v1497_v52, %v1496_v7 }
 0x1d1   : > { %6470 = vmatprep.mubr.msk.f32.mxu1 %vm9384_vm5, %v1188_v12  ;;  %v1499_v12 = vld [vmem:[%s9373_s5 + $0x38] sm:$0xff] }
 0x1d2   : > { %7288 = vmatpush3.bf16.msra.mxu1 %v7287_v50  ;;  %v7293_v13 = vpack.c.bf16 %v1499_v12, %v1498_v49 }
 0x1d3   : > { %7289 = vmatprep.subr.bf16.mxu1 %v7747_v1 }
 0x1d4   : > { %6471 = vmatmul.mubr.msk.f32.gmra.mrb[8].mxu1 %vm9384_vm5, %v1189_v16  ;;  %v1501_v16 = vld [vmem:[%s9373_s5 + $0x48] sm:$0xff] }
 0x1d5   : > { %6473 = vmatprep.mubr.msk.f32.mxu1 %vm9384_vm5, %v1190_v14  ;;  %v7296_v51 = vpack.c.bf16 %v1501_v16, %v1500_v15  ;;  %v1502_v14 = vld [vmem:[%s9373_s5 + $0x50] sm:$0xff] }
 0x1d6   : > { %7291 = vmatpush3.bf16.msra.mxu1 %v7290_v11  ;;  %v7299_v19 = vpack.c.bf16 %v1503_v17, %v1502_v14 }
 0x1d7   : > { %7292 = vmatprep.subr.bf16.mxu1 %v7747_v1 }
 0x1d8   : > { %6474 = vmatmul.mubr.msk.f32.gmra.mrb[10].mxu1 %vm9384_vm5, %v1191_v54  ;;  %v1504_v54 = vld [vmem:[%s9373_s5 + $0x60] sm:$0xff] }
 0x1d9   : > { %6476 = vmatprep.mubr.msk.f32.mxu1 %vm9384_vm5, %v1192_v20  ;;  %v7302_v53 = vpack.c.bf16 %v1505_v18, %v1504_v54 }
 0x1da   : > { %7294 = vmatpush3.bf16.msra.mxu1 %v7293_v13 }
 0x1db   : > { %7295 = vmatprep.subr.bf16.mxu1 %v7747_v1 }
 0x1dc   : > { %6477 = vmatmul.mubr.msk.f32.gmra.mrb[12].mxu1 %vm9384_vm5, %v1193_v55 }
 0x1dd   : > { %6479 = vmatprep.mubr.msk.f32.mxu1 %vm9384_vm5, %v1194_v22 }
 0x1de   : > { %7297 = vmatpush3.bf16.msra.mxu1 %v7296_v51 }
 0x1df   : > { %7298 = vmatprep.subr.bf16.mxu1 %v7747_v1 }
 0x1e0   : > { %6480 = vmatmul.mubr.msk.f32.gmra.mrb[14].mxu1 %vm9384_vm5, %v1195_v57 }
 0x1e1   : > { %6482 = vmatprep.mubr.msk.f32.mxu1 %vm9384_vm5, %v1196_v60 }
 0x1e2   : > { %7300 = vmatpush3.bf16.msra.mxu1 %v7299_v19 }
 0x1e3   : > { %7301 = vmatprep.subr.bf16.mxu1 %v7747_v1 }
 0x1e4   : > { %6483 = vmatmul.mubr.msk.f32.gmra.mrb[16].mxu1 %vm9384_vm5, %v1197_v59 }
 0x1e5   : > { %6485 = vmatprep.mubr.msk.f32.mxu1 %vm9384_vm5, %v1198_v62 }
 0x1e6   : > { %7303 = vmatpush3.bf16.msra.mxu1 %v7302_v53 }
 0x1e7   : > { %7304 = vmatprep.subr.bf16.mxu1 %v7747_v1 }
 0x1e8   : > { %6486 = vmatmul.mubr.msk.f32.gmra.mrb[18].mxu1 %vm9384_vm5, %v1199_v45 }
 0x1e9   : > { %6555 = vmatprep.mubr.msk.f32.mxu1 %vm9385_vm0, %v7749_v4 }
 0x29b   : > { %v8188_v20 = vpop.f32.mrb[0].mxu1 }
 0x29c   : > { %v6433_v56 = vpop.f32.mrb[1].mxu1 }
 0x29f   : > { %v6466_v55 = vpop.f32.mrb[4].mxu1 }
 0x2a0   : > { %v1327_v58 = vadd.f32 %v6466_v55, %v8193_v21  ;;  %v1321_v22 = vpop.f32.mrb[5].mxu1 }
 0x2a1   : > { %v1322_v23 = vadd.f32 %v8193_v21, %v1321_v22 }
 0x2a2   : > { %v1401_v24 = vmax.f32 %v1327_v58, 0.0 }
 0x2a3   : > { %v1400_v57 = vmax.f32 %v1322_v23, 0.0  ;;  %v6469_v25 = vpop.f32.mrb[6].mxu1 }
 0x2a4   : > { %v1337_v60 = vadd.f32 %v6469_v25, %v8193_v21  ;;  %v1331_v27 = vpop.f32.mrb[7].mxu1 }
 0x2a5   : > { %v7260_v28 = vpack.c.bf16 %v1401_v24, %v1400_v57  ;;  %v1332_v59 = vadd.f32 %v8193_v21, %v1331_v27 }
 0x2a6   : > { %v1403_v44 = vmax.f32 %v1337_v60, 0.0 }
 0x2a7   : > { %v1402_v62 = vmax.f32 %v1332_v59, 0.0  ;;  %v6472_v45 = vpop.f32.mrb[8].mxu1  ;;  %7261 = vmatpush3.bf16.msra.mxu0 %v7260_v28 }
 0x2a8   : > { %v1347_v61 = vadd.f32 %v6472_v45, %v8193_v21  ;;  %v1341_v0 = vpop.f32.mrb[9].mxu1  ;;  %7262 = vmatprep.subr.bf16.mxu0 %v7747_v1 }
 0x2a9   : > { %v7263_v63 = vpack.c.bf16 %v1403_v44, %v1402_v62  ;;  %v1342_v46 = vadd.f32 %v8193_v21, %v1341_v0 }
 0x2aa   : > { %v1405_v47 = vmax.f32 %v1347_v61, 0.0 }
 0x2ab   : > { %v1404_v48 = vmax.f32 %v1342_v46, 0.0  ;;  %v6475_v50 = vpop.f32.mrb[10].mxu1  ;;  %7264 = vmatpush3.bf16.msra.mxu0 %v7263_v63 }
 0x2ac   : > { %v1357_v7 = vadd.f32 %v6475_v50, %v8193_v21  ;;  %v1351_v52 = vpop.f32.mrb[11].mxu1  ;;  %7265 = vmatprep.subr.bf16.mxu0 %v7747_v1  ;;  %v1507_v50 = vld [vmem:[%s9373_s5 + $0x78] sm:$0xff] }
 0x2ad   : > { %v7266_v11 = vpack.c.bf16 %v1405_v47, %v1404_v48  ;;  %v1352_v49 = vadd.f32 %v8193_v21, %v1351_v52  ;;  %v1416_v48 = vld [vmem:[%s9372_s4] sm:$0xf]  ;;  %v1419_v52 = vpop.permute.xlu0 %1418 }
 0x2ae   : > { %v1407_v12 = vmax.f32 %v1357_v7, 0.0 }
 0x2af   : > { %v1406_v13 = vmax.f32 %v1352_v49, 0.0  ;;  %v6478_v15 = vpop.f32.mrb[12].mxu1  ;;  %7267 = vmatpush3.bf16.msra.mxu0 %v7266_v11 }
 0x2b0   : > { %v1367_v16 = vadd.f32 %v6478_v15, %v8193_v21  ;;  %v1361_v51 = vpop.f32.mrb[13].mxu1  ;;  %7268 = vmatprep.subr.bf16.mxu0 %v7747_v1  ;;  %v483_v15 = vadd.s32 4, %v7851_v2 }
 0x2b1   : > { %v7269_v14 = vpack.c.bf16 %v1407_v12, %v1406_v13  ;;  %v1362_v17 = vadd.f32 %v8193_v21, %v1361_v51  ;;  %v5687_v51 = vld [vmem:[%s9370_s2 + $0x80] sm:$0xff] }
 0x2b2   : > { %v1409_v19 = vmax.f32 %v1367_v16, 0.0  ;;  %v484_v16 = vadd.s32 4, %v7863_v5  ;;  %vm485_vm10 = vcmp.eq.s32.totalorder %v7853_v3, %v483_v15 }
 0x2b3   : > { %v1408_v54 = vmax.f32 %v1362_v17, 0.0  ;;  %v6481_v18 = vpop.f32.mrb[14].mxu1  ;;  %7270 = vmatpush3.bf16.msra.mxu0 %v7269_v14  ;;  %v648_v14 = vpop.permute.xlu1 %647 }
 0x2b4   : > { %v1377_v53 = vadd.f32 %v6481_v18, %v8193_v21  ;;  %v1371_v56 = vpop.f32.mrb[15].mxu1  ;;  %7271 = vmatprep.subr.bf16.mxu0 %v7747_v1  ;;  %vm486_vm11 = vcmp.eq.s32.totalorder %v7853_v3, %v484_v16  ;;  %v7670_v17 = vadd.f32 %v8188_v20, %v648_v14  ;;  %v5689_v20 = vld [vmem:[%s9370_s2 + $0x90] sm:$0xff] }
 0x2b5   : > { %v7272_v55 = vpack.c.bf16 %v1409_v19, %v1408_v54  ;;  %v1372_v58 = vadd.f32 %v8193_v21, %v1371_v56  ;;  %vm7308_vm12 = vmpackc.low %vm486_vm11, %vm485_vm10  ;;  %v5671_v19 = vld [vmem:[%s9380_s12 + $0x1] ss:$0 sm:$0xff] }
 0x2b6   : > { %v1411_v22 = vmax.f32 %v1377_v53, 0.0  ;;  %v878_v54 = vmax.f32 %v7670_v17, 0.0  ;;  %v7756_v17 = vmov 7  }
 0x2b7   : > { %v1410_v23 = vmax.f32 %v1372_v58, 0.0  ;;  %v6484_v24 = vpop.f32.mrb[16].mxu1  ;;  %7273 = vmatpush3.bf16.msra.mxu0 %v7272_v55 }
 0x2b8   : > { %v1387_v57 = vadd.f32 %v6484_v24, %v8193_v21  ;;  %v1381_v25 = vpop.f32.mrb[17].mxu1  ;;  %7274 = vmatprep.subr.bf16.mxu0 %v7747_v1  ;;  %v1584_v55 = vadd.f32 %v878_v54, %v7883_v10  ;;  %v5688_v24 = vld [vmem:[%s9370_s2 + $0x88] sm:$0xff]  ;;  %v5690_v10 = vld [vmem:[%s9370_s2 + $0x98] sm:$0xff] }
 0x2b9   : > { %v7275_v60 = vpack.c.bf16 %v1411_v22, %v1410_v23  ;;  %v1382_v27 = vadd.f32 %v8193_v21, %v1381_v25  ;;  %v5692_v25 = vld [vmem:[%s9370_s2 + $0xa8] sm:$0xff] }
 0x2ba   : > { %v1413_v28 = vmax.f32 %v1387_v57, 0.0  ;;  %v5691_v57 = vld [vmem:[%s9370_s2 + $0xa0] sm:$0xff] }
 0x2bb   : > { %v1412_v59 = vmax.f32 %v1382_v27, 0.0  ;;  %v6487_v44 = vpop.f32.mrb[18].mxu1  ;;  %7276 = vmatpush3.bf16.msra.mxu0 %v7275_v60  ;;  %v5693_v60 = vld [vmem:[%s9370_s2 + $0xb0] sm:$0xff]  ;;  %v5694_v27 = vld [vmem:[%s9370_s2 + $0xb8] sm:$0xff] }
 0x2bc   : > { %v1397_v62 = vadd.f32 %v6487_v44, %v8193_v21  ;;  %v1391_v45 = vpop.f32.mrb[19].mxu1  ;;  %7277 = vmatprep.subr.bf16.mxu0 %v7747_v1  ;;  %v5697_v44 = vld [vmem:[%s9370_s2 + $0xd0] sm:$0xff] }
 0x2bd   : > { %v7278_v61 = vpack.c.bf16 %v1413_v28, %v1412_v59  ;;  %v1392_v0 = vadd.f32 %v8193_v21, %v1391_v45  ;;  %v1506_v21 = vld [vmem:[%s9373_s5 + $0x70] sm:$0xff]  ;;  %v5695_v28 = vld [vmem:[%s9370_s2 + $0xc0] sm:$0xff]  ;;  %v5696_v59 = vld [vmem:[%s9370_s2 + $0xc8] sm:$0xff] }
 0x2be   : > { %v1415_v63 = vmax.f32 %v1397_v62, 0.0  ;;  %v7305_v7 = vpack.c.bf16 %v1507_v50, %v1506_v21  ;;  %v5698_v62 = vld [vmem:[%s9370_s2 + $0xd8] sm:$0xff]  ;;  %v5699_v45 = vld [vmem:[%s9370_s2 + $0xe0] sm:$0xff] }
 0x2bf   : > { %v1414_v46 = vmax.f32 %v1392_v0, 0.0  ;;  %7279 = vmatpush3.bf16.msra.mxu0 %v7278_v61  ;;  %v5700_v61 = vld [vmem:[%s9370_s2 + $0xe8] sm:$0xff]  ;;  %v5701_v0 = vld [vmem:[%s9370_s2 + $0xf0] sm:$0xff] }
 0x2c0   : > { %7280 = vmatprep.subr.bf16.mxu0 %v7747_v1  ;;  %7306 = vmatpush3.bf16.msra.mxu1 %v7305_v7 }
 0x2c1   : > { %v7281_v47 = vpack.c.bf16 %v1415_v63, %v1414_v46  ;;  %v7754_v63 = vmov 4   ;;  %v5702_v46 = vld [vmem:[%s9370_s2 + $0xf8] sm:$0xff] }
 0x2c2   : > { %7712 = vset.pattern.permute.xlu1 %v7754_v63  ;;  %7713 = vset.pattern.permute.xlu0 %v7754_v63 }
 0x2c3   : > { %7282 = vmatpush3.bf16.msra.mxu0 %v7281_v47  ;;  %1989 = vperm.xlu1 %7712, %v7954_v26   ;;  %v7755_v47 = vmov 6  }
 0x2c4   : > { %7307 = vmatprep.subr.bf16.mxu0 %v7747_v1  ;;  %1993 = vperm.xlu0 %7713, %v7970_v30  }
 0x2c6   : > { %6521 = vmatmul.mubr.f32.vlgmr.msra.gmra.mrb[18].mxu0 %v1416_v48 }
 0x2c7   : > { %6562 = vmatprep.mubr.msk.f32.mxu0 %vm9385_vm0, %v7749_v4  ;;  %7309 = vmatpush3.bf16.msk.msra.mxu0 %vm7308_vm12, %v7750_v9 }
 0x2c8   : > { %6565 = vmatprep.subr.mxu0 %v7749_v4  ;;  %1997 = vperm.xlu1 %7712, %v7963_v29  }
 0x2c9   : > { %2005 = vperm.xlu0 %7713, %v7985_v32  }
 0x2cc   : > { %2001 = vperm.xlu1 %7712, %v7976_v31  }
 0x2cd   : > { %2013 = vperm.xlu0 %7713, %v7997_v34  }
 0x2d0   : > { %2009 = vperm.xlu1 %7712, %v7990_v33  }
 0x2d1   : > { %2021 = vperm.xlu0 %7713, %v8009_v36  }
 0x2d4   : > { %2017 = vperm.xlu1 %7712, %v8002_v35  }
 0x2d5   : > { %2029 = vperm.xlu0 %7713, %v8021_v38  }
 0x2d8   : > { %2025 = vperm.xlu1 %7712, %v8014_v37  }
 0x2d9   : > { %2037 = vperm.xlu0 %7713, %v8033_v40  }
 0x2dc   : > { %2033 = vperm.xlu1 %7712, %v8026_v39  }
 0x2dd   : > { %2045 = vperm.xlu0 %7713, %v8045_v42  }
 0x2e0   : > { %2041 = vperm.xlu1 %7712, %v8038_v41  }
 0x2e1   : > { %7714 = vset.pattern.permute.xlu0 %v7755_v47 }
 0x2e2   : > { %2686 = vperm.xlu0 %7714, %v7954_v26  }
 0x2e4   : > { %2049 = vperm.xlu1 %7712, %v8050_v43  }
 0x2e6   : > { %2698 = vperm.xlu0 %7714, %v7976_v31  }
 0x2e8   : > { %7715 = vset.pattern.permute.xlu1 %v7755_v47 }
 0x2e9   : > { %2690 = vperm.xlu1 %7715, %v7970_v30  }
 0x2ea   : > { %2706 = vperm.xlu0 %7714, %v7990_v33  }
 0x2ed   : > { %2694 = vperm.xlu1 %7715, %v7963_v29   ;;  %v5675_v29 = vld [vmem:[%s9369_s1 + $0xc] sm:$0xf] }
 0x2ee   : > { %2714 = vperm.xlu0 %7714, %v8002_v35  }
 0x2f1   : > { %2702 = vperm.xlu1 %7715, %v7985_v32  }
 0x2f2   : > { %2722 = vperm.xlu0 %7714, %v8014_v37  }
 0x2f5   : > { %2710 = vperm.xlu1 %7715, %v7997_v34  }
 0x2f6   : > { %2730 = vperm.xlu0 %7714, %v8026_v39  }
 0x2f9   : > { %2718 = vperm.xlu1 %7715, %v8009_v36  }
 0x2fa   : > { %2738 = vperm.xlu0 %7714, %v8038_v41  }
 0x2fd   : > { %2726 = vperm.xlu1 %7715, %v8021_v38  }
 0x2fe   : > { %2746 = vperm.xlu0 %7714, %v8050_v43  }
 0x301   : > { %2734 = vperm.xlu1 %7715, %v8033_v40  }
 0x302   : > { %7717 = vset.pattern.permute.xlu0 %v7756_v17 }
 0x303   : > { %2975 = vperm.xlu0 %7717, %v7954_v26  }
 0x305   : > { %2742 = vperm.xlu1 %7715, %v8045_v42  }
 0x307   : > { %2987 = vperm.xlu0 %7717, %v7976_v31  }
 0x30b   : > { %2995 = vperm.xlu0 %7717, %v7990_v33   ;;  %v7758_v33 = vmov 9  }
 0x30f   : > { %3003 = vperm.xlu0 %7717, %v8002_v35   ;;  %v7759_v35 = vmov 10  }
 0x313   : > { %3011 = vperm.xlu0 %7717, %v8014_v37   ;;  %v7760_v37 = vmov 3  }
 0x317   : > { %3019 = vperm.xlu0 %7717, %v8026_v39  }
 0x31b   : > { %3027 = vperm.xlu0 %7717, %v8038_v41  }
 0x31f   : > { %3035 = vperm.xlu0 %7717, %v8050_v43   ;;  %v5720_v43 = vld [vmem:[%s9371_s3 + $0x10] sm:$0xff] }
 0x342   : > { %v1990_v39 = vpop.permute.xlu1 %1989 }
 0x343   : > { %v1994_v41 = vpop.permute.xlu0 %1993 }
 0x399   : > { %v1487_v11 = vpop.f32.mrb[18].mxu0 }
 0x39a   : > { %v1488_v49 = vadd.f32 %v1487_v11, %v1419_v52  ;;  %v6522_v12 = vpop.f32.mrb[19].mxu0 }
 0x39c   : > { %v1491_v13 = vmax.f32 %v1488_v49, 0.0 }
 0x39e   : > { %6556 = vmatmul.mubr.f32.vlgmr.msra.gmra.mrb[20].mxu1 %v1491_v13 }
 0x39f   : > { %6589 = vmatprep.mubr.msk.f32.mxu1 %vm567_vm6, %v5687_v51 }
 0x471   : > { %v1579_v18 = vpop.f32.mrb[20].mxu1 }
 0x472   : > { %v1580_v53 = vadd.f32 %v5671_v19, %v1579_v18  ;;  %v6557_v56 = vpop.f32.mrb[21].mxu1  ;;  %v7757_v19 = vmov 8  }
 0x473   : > { %7720 = vset.pattern.permute.xlu0 %v7757_v19 }
 0x474   : > { %v1583_v58 = vmax.f32 %v1580_v53, 0.0  ;;  %4320 = vperm.xlu0 %7720, %v7970_v30  }
 0x476   : > { %v1585_v22 = vadd.f32 %v1584_v55, %v1583_v58 }
 0x478   : > { %v8245_v23 = vmax.f32 %v1585_v22, 0.0  ;;  %4335 = vperm.xlu0 %7720, %v7985_v32   ;;  %v1998_v32 = vpop.permute.xlu1 %1997 }
 0x47a   : > { %6563 = vmatmul.mubr.msk.f32.vlgmr.msra.gmra.mrb[20].mxu0 %vm9384_vm5, %v8245_v23  ;;  %6587 = vmatprep.subr.msk.mxu1 %vm9383_vm3, %v8245_v23 }
 0x47b   : > { %6588 = vmatpush3.msk.msra.mxu1 %vm9383_vm3, %v8245_v23  ;;  %6567 = vmatprep.mubr.msk.f32.mxu0 %vm9385_vm0, %v7749_v4 }
 0x47c   : > { %6590 = vmatmul.mubr.msk.f32.vlgmr.msra.gmra.mrb[22].mxu1 %vm567_vm6, %v5688_v24  ;;  %7317 = vmatprep.subr.bf16.mxu1 %v7747_v1  ;;  %v5684_v24 = vld [vmem:[%s9369_s1 + $0x14] sm:$0xf] }
 0x47d   : > { %6592 = vmatprep.mubr.msk.f32.mxu1 %vm567_vm6, %v5689_v20  ;;  %4345 = vperm.xlu0 %7720, %v7997_v34   ;;  %v2002_v34 = vpop.permute.xlu1 %2001 }
 0x480   : > { %6593 = vmatmul.mubr.msk.f32.gmra.mrb[24].mxu1 %vm567_vm6, %v5690_v10 }
 0x481   : > { %6595 = vmatprep.mubr.msk.f32.mxu1 %vm567_vm6, %v5691_v57  ;;  %7721 = vset.pattern.permute.xlu0 %v7758_v33  ;;  %v2010_v56 = vpop.permute.xlu1 %2009 }
 0x482   : > { %4501 = vperm.xlu0 %7721, %v7954_v26   ;;  %v5721_v26 = vld [vmem:[%s9371_s3 + $0x18] sm:$0xff] }
 0x483   : > { %v7313_v18 = vpack.c.bf16 %v5721_v26, %v5720_v43 }
 0x484   : > { %6596 = vmatmul.mubr.msk.f32.gmra.mrb[26].mxu1 %vm567_vm6, %v5692_v25 }
 0x485   : > { %6598 = vmatprep.mubr.msk.f32.mxu1 %vm567_vm6, %v5693_v60  ;;  %v2018_v10 = vpop.permute.xlu1 %2017 }
 0x486   : > { %4516 = vperm.xlu0 %7721, %v7976_v31   ;;  %v2006_v31 = vpop.permute.xlu0 %2005 }
 0x488   : > { %6599 = vmatmul.mubr.msk.f32.gmra.mrb[28].mxu1 %vm567_vm6, %v5694_v27 }
 0x489   : > { %6601 = vmatprep.mubr.msk.f32.mxu1 %vm567_vm6, %v5695_v28 }
 0x48a   : > { %7724 = vset.pattern.permute.xlu0 %v7759_v35  ;;  %v2014_v58 = vpop.permute.xlu0 %2013 }
 0x48b   : > { %5210 = vperm.xlu0 %7724, %v7970_v30   ;;  %v5681_v30 = vld [vmem:[%s9369_s1 + $0x10] sm:$0xf] }
 0x48c   : > { %6602 = vmatmul.mubr.msk.f32.gmra.mrb[30].mxu1 %vm567_vm6, %v5696_v59 }
 0x48d   : > { %6604 = vmatprep.mubr.msk.f32.mxu1 %vm567_vm6, %v5697_v44  ;;  %v2026_v44 = vpop.permute.xlu1 %2025 }
 0x48e   : > { %v2022_v27 = vpop.permute.xlu0 %2021 }
 0x48f   : > { %7726 = vset.pattern.permute.xlu0 %v7760_v37 }
 0x490   : > { %6605 = vmatmul.mubr.msk.f32.gmra.mrb[32].mxu1 %vm567_vm6, %v5698_v62  ;;  %1739 = vperm.xlu0 %7726, %v8089_v6  }
 0x491   : > { %6607 = vmatprep.mubr.msk.f32.mxu1 %vm567_vm6, %v5699_v45 }
 0x492   : > { %v2030_v63 = vpop.permute.xlu0 %2029 }
 0x494   : > { %6608 = vmatmul.mubr.msk.f32.gmra.mrb[34].mxu1 %vm567_vm6, %v5700_v61 }
 0x495   : > { %6610 = vmatprep.mubr.msk.f32.mxu1 %vm567_vm6, %v5701_v0 }
 0x498   : > { %6611 = vmatmul.mubr.msk.f32.gmra.mrb[36].mxu1 %vm567_vm6, %v5702_v46 }
 0x499   : > { %6673 = vmatprep.mubr.msk.f32.mxu1 %vm9385_vm0, %v7749_v4 }
 0x54d   : > { %v1656_v48 = vpop.f32.mrb[20].mxu0 }
 0x54e   : > { %v6564_v21 = vpop.f32.mrb[21].mxu0  ;;  %6566 = vmatpush3.msk.msra.mxu0 %vm9383_vm3, %v1656_v48 }
 0x54f   : > { %6568 = vmatmul.mubr.msk.f32.vlgmr.msra.gmra.mrb[22].mxu0 %vm567_vm6, %v5675_v29  ;;  %7310 = vmatprep.subr.bf16.mxu0 %v7747_v1  ;;  %v8356_v36 = vpop.f32.mrb[22].mxu1  ;;  %v2034_v29 = vpop.permute.xlu1 %2033 }
 0x550   : > { %7312 = vmatpush3.bf16.msk.msra.mxu0 %vm7875_vm4, %v7750_v9  ;;  %6574 = vmatprep.mubr.msk.f32.mxu0 %vm9385_vm0, %v7749_v4  ;;  %v2166_v38 = vpop.f32.mrb[23].mxu1  ;;  %v2172_v20 = vadd.f32 %v8356_v36, %v1994_v41 }
 0x551   : > { %6577 = vmatprep.subr.mxu0 %v7749_v4  ;;  %v2167_v55 = vadd.f32 %v2166_v38, %v1990_v39 }
 0x552   : > { %v2246_v25 = vmax.f32 %v2172_v20, 0.0  ;;  %v5748_v20 = vld [vmem:[%s9373_s5 + $0xc0] sm:$0xff] }
 0x553   : > { %6575 = vmatmul.mubr.msk.f32.vlgmr.msra.gmra.mrb[24].mxu0 %vm9384_vm5, %v8245_v23  ;;  %v8366_v40 = vpop.f32.mrb[24].mxu1  ;;  %v2245_v22 = vmax.f32 %v2167_v55, 0.0 }
 0x554   : > { %v8368_v42 = vpop.f32.mrb[25].mxu1  ;;  %6579 = vmatprep.mubr.msk.f32.mxu0 %vm9385_vm0, %v7749_v4  ;;  %v2182_v60 = vadd.f32 %v8366_v40, %v2002_v34  ;;  %v2038_v40 = vpop.permute.xlu0 %2037 }
 0x555   : > { %v2177_v57 = vadd.f32 %v8368_v42, %v1998_v32 }
 0x556   : > { %v2248_v62 = vmax.f32 %v2182_v60, 0.0  ;;  %v5750_v60 = vld [vmem:[%s9373_s5 + $0xd0] sm:$0xff] }
 0x557   : > { %v8372_v50 = vpop.f32.mrb[26].mxu1  ;;  %v2247_v28 = vmax.f32 %v2177_v57, 0.0 }
 0x558   : > { %v8374_v8 = vpop.f32.mrb[27].mxu1  ;;  %v2192_v45 = vadd.f32 %v8372_v50, %v2010_v56  ;;  %v2046_v39 = vpop.permute.xlu0 %2045  ;;  %v5745_v56 = vld [vmem:[%s9373_s5 + $0xa8] sm:$0xff] }
 0x559   : > { %v2187_v59 = vadd.f32 %v8374_v8, %v2006_v31  ;;  %v2042_v8 = vpop.permute.xlu1 %2041 }
 0x55a   : > { %v2250_v46 = vmax.f32 %v2192_v45, 0.0 }
 0x55b   : > { %v8376_v7 = vpop.f32.mrb[28].mxu1  ;;  %v2249_v61 = vmax.f32 %v2187_v59, 0.0  ;;  %v7731_v59 = vld [vmem:[%s9381_s13 + $0x30] sm:$0xff] }
 0x55c   : > { %v8378_v52 = vpop.f32.mrb[29].mxu1  ;;  %v2202_v47 = vadd.f32 %v8376_v7, %v2018_v10  ;;  %v5749_v10 = vld [vmem:[%s9373_s5 + $0xc8] sm:$0xff] }
 0x55d   : > { %v2197_v0 = vadd.f32 %v8378_v52, %v2014_v58  ;;  %v5746_v58 = vld [vmem:[%s9373_s5 + $0xb0] sm:$0xff]  ;;  %v7354_v57 = vpack.c.bf16 %v5749_v10, %v5748_v20 }
 0x55e   : > { %v2252_v36 = vmax.f32 %v2202_v47, 0.0 }
 0x55f   : > { %v8380_v11 = vpop.f32.mrb[30].mxu1  ;;  %v2251_v48 = vmax.f32 %v2197_v0, 0.0  ;;  %v7733_v0 = vld [vmem:[%s9381_s13 + $0x50] sm:$0xff] }
 0x560   : > { %v8382_v49 = vpop.f32.mrb[31].mxu1  ;;  %v2212_v38 = vadd.f32 %v8380_v11, %v2026_v44  ;;  %v5752_v44 = vld [vmem:[%s9373_s5 + $0xe0] sm:$0xff] }
 0x561   : > { %v2207_v21 = vadd.f32 %v8382_v49, %v2022_v27  ;;  %v5751_v27 = vld [vmem:[%s9373_s5 + $0xd8] sm:$0xff] }
 0x562   : > { %v2254_v7 = vmax.f32 %v2212_v38, 0.0 }
 0x563   : > { %v8384_v12 = vpop.f32.mrb[32].mxu1  ;;  %v2253_v42 = vmax.f32 %v2207_v21, 0.0 }
 0x564   : > { %v8386_v13 = vpop.f32.mrb[33].mxu1  ;;  %v2222_v52 = vadd.f32 %v8384_v12, %v2034_v29 }
 0x565   : > { %v2217_v50 = vadd.f32 %v8386_v13, %v2030_v63  ;;  %v2050_v13 = vpop.permute.xlu1 %2049  ;;  %v7734_v63 = vld [vmem:[%s9381_s13 + $0x60] sm:$0xff] }
 0x566   : > { %v2256_v11 = vmax.f32 %v2222_v52, 0.0 }
 0x567   : > { %v8388_v15 = vpop.f32.mrb[34].mxu1  ;;  %v2255_v49 = vmax.f32 %v2217_v50, 0.0 }
 0x568   : > { %v8390_v16 = vpop.f32.mrb[35].mxu1  ;;  %v2232_v32 = vadd.f32 %v8388_v15, %v2042_v8  ;;  %v5740_v15 = vld [vmem:[%s9373_s5 + $0x80] sm:$0xff] }
 0x569   : > { %v2227_v37 = vadd.f32 %v8390_v16, %v2038_v40 }
 0x56a   : > { %v2258_v12 = vmax.f32 %v2232_v32, 0.0 }
 0x56b   : > { %v8392_v51 = vpop.f32.mrb[36].mxu1  ;;  %v2257_v41 = vmax.f32 %v2227_v37, 0.0 }
 0x56c   : > { %v8394_v14 = vpop.f32.mrb[37].mxu1  ;;  %v2242_v43 = vadd.f32 %v8392_v51, %v2050_v13  ;;  %v5742_v51 = vld [vmem:[%s9373_s5 + $0x90] sm:$0xff] }
 0x56d   : > { %v2237_v34 = vadd.f32 %v8394_v14, %v2046_v39  ;;  %v5741_v14 = vld [vmem:[%s9373_s5 + $0x88] sm:$0xff] }
 0x56e   : > { %v2260_v26 = vmax.f32 %v2242_v43, 0.0  ;;  %v7342_v31 = vpack.c.bf16 %v5741_v14, %v5740_v15 }
 0x56f   : > { %v2259_v16 = vmax.f32 %v2237_v34, 0.0 }
 0x626   : > { %v1809_v54 = vpop.f32.mrb[24].mxu0 }
 0x627   : > { %v6576_v53 = vpop.f32.mrb[25].mxu0  ;;  %6578 = vmatpush3.msk.msra.mxu0 %vm9383_vm3, %v1809_v54  ;;  %v5743_v54 = vld [vmem:[%s9373_s5 + $0x98] sm:$0xff] }
 0x628   : > { %6580 = vmatmul.mubr.msk.f32.vlgmr.msra.gmra.mrb[22].mxu0 %vm567_vm6, %v5681_v30  ;;  %6582 = vmatprep.subr.mxu0 %v7749_v4  ;;  %v7761_v30 = vmov 5   ;;  %v5744_v53 = vld [vmem:[%s9373_s5 + $0xa0] sm:$0xff] }
 0x629   : > { %6583 = vmatpush3.msk.msra.mxu0 %vm9383_vm3, %v8245_v23  ;;  %6584 = vmatprep.mubr.msk.f32.mxu0 %vm9385_vm0, %v7749_v4  ;;  %v7348_v55 = vpack.c.bf16 %v5745_v56, %v5744_v53 }
 0x62a   : > { %7314 = vmatprep.subr.bf16.mxu0 %v7313_v18  ;;  %7716 = vset.pattern.permute.xlu1 %v7761_v30 }
 0x62b   : > { %2481 = vperm.xlu1 %7716, %v8089_v6   ;;  %v7728_v6 = vld [vmem:[%s9381_s13 + $0x8] sm:$0xff] }
 0x62f   : > { %7718 = vset.pattern.permute.xlu1 %v7756_v17  ;;  %v7729_v17 = vld [vmem:[%s9381_s13 + $0x10] sm:$0xff] }
 0x630   : > { %6585 = vmatmul.mubr.msk.f32.vlgmr.msra.gmra.mrb[22].mxu0 %vm567_vm6, %v5684_v24  ;;  %2979 = vperm.xlu1 %7718, %v7728_v6  }
 0x631   : > { %7316 = vmatpush3.bf16.msra.mxu0 %v7313_v18  ;;  %6617 = vmatprep.mubr.msk.f32.mxu0 %vm9384_vm5, %v2245_v22  ;;  %v7345_v18 = vpack.c.bf16 %v5743_v54, %v5742_v51  ;;  %v5747_v22 = vld [vmem:[%s9373_s5 + $0xb8] sm:$0xff] }
 0x632   : > { %7341 = vmatprep.subr.bf16.mxu0 %v7747_v1  ;;  %v7351_v24 = vpack.c.bf16 %v5747_v22, %v5746_v58 }
 0x634   : > { %6618 = vmatmul.mubr.msk.f32.vlgmr.msra.gmra.mrb[26].mxu0 %vm9384_vm5, %v2246_v25  ;;  %2983 = vperm.xlu1 %7718, %v7729_v17   ;;  %v7730_v25 = vld [vmem:[%s9381_s13 + $0x20] sm:$0xff] }
 0x635   : > { %6620 = vmatprep.mubr.msk.f32.mxu0 %vm9384_vm5, %v2247_v28  ;;  %7343 = vmatpush3.bf16.msra.mxu0 %v7342_v31  ;;  %v7357_v28 = vpack.c.bf16 %v5751_v27, %v5750_v60 }
 0x636   : > { %7344 = vmatprep.subr.bf16.mxu0 %v7747_v1 }
 0x638   : > { %6621 = vmatmul.mubr.msk.f32.gmra.mrb[28].mxu0 %vm9384_vm5, %v2248_v62  ;;  %2991 = vperm.xlu1 %7718, %v7730_v25   ;;  %v5753_v62 = vld [vmem:[%s9373_s5 + $0xe8] sm:$0xff] }
 0x639   : > { %6623 = vmatprep.mubr.msk.f32.mxu0 %vm9384_vm5, %v2249_v61  ;;  %7346 = vmatpush3.bf16.msra.mxu0 %v7345_v18  ;;  %v7360_v45 = vpack.c.bf16 %v5753_v62, %v5752_v44  ;;  %v7732_v61 = vld [vmem:[%s9381_s13 + $0x40] sm:$0xff] }
 0x63a   : > { %7347 = vmatprep.subr.bf16.mxu0 %v7747_v1 }
 0x63c   : > { %6624 = vmatmul.mubr.msk.f32.gmra.mrb[30].mxu0 %vm9384_vm5, %v2250_v46  ;;  %2999 = vperm.xlu1 %7718, %v7731_v59   ;;  %v7735_v46 = vld [vmem:[%s9381_s13 + $0x70] sm:$0xff] }
 0x63d   : > { %6626 = vmatprep.mubr.msk.f32.mxu0 %vm9384_vm5, %v2251_v48  ;;  %7349 = vmatpush3.bf16.msra.mxu0 %v7348_v55  ;;  %v8550_v48 = vld [vmem:[%s9380_s12 + $0x2] ss:$0 sm:$0xff] }
 0x63e   : > { %7350 = vmatprep.subr.bf16.mxu0 %v7747_v1 }
 0x640   : > { %6627 = vmatmul.mubr.msk.f32.gmra.mrb[32].mxu0 %vm9384_vm5, %v2252_v36  ;;  %3007 = vperm.xlu1 %7718, %v7732_v61  }
 0x641   : > { %6629 = vmatprep.mubr.msk.f32.mxu0 %vm9384_vm5, %v2253_v42  ;;  %7352 = vmatpush3.bf16.msra.mxu0 %v7351_v24 }
 0x642   : > { %7353 = vmatprep.subr.bf16.mxu0 %v7747_v1 }
 0x644   : > { %6630 = vmatmul.mubr.msk.f32.gmra.mrb[34].mxu0 %vm9384_vm5, %v2254_v7  ;;  %3015 = vperm.xlu1 %7718, %v7733_v0  }
 0x645   : > { %6632 = vmatprep.mubr.msk.f32.mxu0 %vm9384_vm5, %v2255_v49  ;;  %7355 = vmatpush3.bf16.msra.mxu0 %v7354_v57 }
 0x646   : > { %7356 = vmatprep.subr.bf16.mxu0 %v7747_v1 }
 0x648   : > { %6633 = vmatmul.mubr.msk.f32.gmra.mrb[36].mxu0 %vm9384_vm5, %v2256_v11  ;;  %3023 = vperm.xlu1 %7718, %v7734_v63  }
 0x649   : > { %6635 = vmatprep.mubr.msk.f32.mxu0 %vm9384_vm5, %v2257_v41  ;;  %7358 = vmatpush3.bf16.msra.mxu0 %v7357_v28 }
 0x64a   : > { %7359 = vmatprep.subr.bf16.mxu0 %v7747_v1 }
 0x64c   : > { %6636 = vmatmul.mubr.msk.f32.gmra.mrb[38].mxu0 %vm9384_vm5, %v2258_v12  ;;  %3031 = vperm.xlu1 %7718, %v7735_v46  }
 0x64d   : > { %6638 = vmatprep.mubr.msk.f32.mxu0 %vm9384_vm5, %v2259_v16  ;;  %7361 = vmatpush3.bf16.msra.mxu0 %v7360_v45 }
 0x64e   : > { %7362 = vmatprep.subr.bf16.mxu0 %v7747_v1 }
 0x650   : > { %6639 = vmatmul.mubr.msk.f32.gmra.mrb[40].mxu0 %vm9384_vm5, %v2260_v26  ;;  %7719 = vset.pattern.permute.xlu1 %v7757_v19 }
 0x651   : > { %6708 = vmatprep.mubr.msk.f32.mxu0 %vm9385_vm0, %v7749_v4 }
 0x703   : > { %v8545_v47 = vpop.f32.mrb[22].mxu0 }
 0x704   : > { %v6586_v29 = vpop.f32.mrb[23].mxu0 }
 0x707   : > { %v6619_v21 = vpop.f32.mrb[26].mxu0 }
 0x708   : > { %v2389_v36 = vadd.f32 %v6619_v21, %v8550_v48  ;;  %v2383_v38 = vpop.f32.mrb[27].mxu0 }
 0x709   : > { %v2384_v40 = vadd.f32 %v8550_v48, %v2383_v38 }
 0x70a   : > { %v2463_v42 = vmax.f32 %v2389_v36, 0.0 }
 0x70b   : > { %v2462_v50 = vmax.f32 %v2384_v40, 0.0  ;;  %v6622_v8 = vpop.f32.mrb[28].mxu0  ;;  %v5739_v40 = vld [vmem:[%s9372_s4 + $0x4] sm:$0xf] }
 0x70c   : > { %v2399_v7 = vadd.f32 %v6622_v8, %v8550_v48  ;;  %v2393_v19 = vpop.f32.mrb[29].mxu0  ;;  %v2671_v8 = vld [vmem:[%s9374_s6 + $0x10] sm:$0xff] }
 0x70d   : > { %v7318_v52 = vpack.c.bf16 %v2463_v42, %v2462_v50  ;;  %v2394_v49 = vadd.f32 %v8550_v48, %v2393_v19  ;;  %v7736_v42 = vld [vmem:[%s7872_s18] sm:$0xf] }
 0x70e   : > { %v2465_v37 = vmax.f32 %v2399_v7, 0.0  ;;  %v2669_v50 = vld [vmem:[%s9374_s6] sm:$0xff]  ;;  %v2672_v7 = vld [vmem:[%s9374_s6 + $0x18] sm:$0xff] }
 0x70f   : > { %v2464_v39 = vmax.f32 %v2394_v49, 0.0  ;;  %v6625_v11 = vpop.f32.mrb[30].mxu0  ;;  %7319 = vmatpush3.bf16.msra.mxu1 %v7318_v52  ;;  %v2673_v19 = vld [vmem:[%s9374_s6 + $0x20] sm:$0xff]  ;;  %v2674_v52 = vld [vmem:[%s9374_s6 + $0x28] sm:$0xff]  ;;  %v2675_v49 = vld [vmem:[%s9374_s6 + $0x30] sm:$0xff] }
 0x710   : > { %v2409_v32 = vadd.f32 %v6625_v11, %v8550_v48  ;;  %v2403_v13 = vpop.f32.mrb[31].mxu0  ;;  %7320 = vmatprep.subr.bf16.mxu1 %v7747_v1  ;;  %v2678_v11 = vld [vmem:[%s9374_s6 + $0x48] sm:$0xff] }
 0x711   : > { %v7321_v41 = vpack.c.bf16 %v2465_v37, %v2464_v39  ;;  %v2404_v34 = vadd.f32 %v8550_v48, %v2403_v13  ;;  %v2676_v37 = vld [vmem:[%s9374_s6 + $0x38] sm:$0xff]  ;;  %v2677_v39 = vld [vmem:[%s9374_s6 + $0x40] sm:$0xff] }
 0x712   : > { %v2467_v12 = vmax.f32 %v2409_v32, 0.0  ;;  %v2679_v32 = vld [vmem:[%s9374_s6 + $0x50] sm:$0xff]  ;;  %v2680_v13 = vld [vmem:[%s9374_s6 + $0x58] sm:$0xff] }
 0x713   : > { %v2466_v43 = vmax.f32 %v2404_v34, 0.0  ;;  %v6628_v16 = vpop.f32.mrb[32].mxu0  ;;  %7322 = vmatpush3.bf16.msra.mxu1 %v7321_v41  ;;  %v2681_v41 = vld [vmem:[%s9374_s6 + $0x60] sm:$0xff]  ;;  %v2682_v34 = vld [vmem:[%s9374_s6 + $0x68] sm:$0xff] }
 0x714   : > { %v2419_v26 = vadd.f32 %v6628_v16, %v8550_v48  ;;  %v2413_v15 = vpop.f32.mrb[33].mxu0  ;;  %7323 = vmatprep.subr.bf16.mxu1 %v7747_v1  ;;  %v5754_v16 = vld [vmem:[%s9373_s5 + $0xf0] sm:$0xff] }
 0x715   : > { %v7324_v14 = vpack.c.bf16 %v2467_v12, %v2466_v43  ;;  %v2414_v51 = vadd.f32 %v8550_v48, %v2413_v15  ;;  %v2683_v12 = vld [vmem:[%s9374_s6 + $0x70] sm:$0xff]  ;;  %v2684_v43 = vld [vmem:[%s9374_s6 + $0x78] sm:$0xff] }
 0x716   : > { %v2469_v30 = vmax.f32 %v2419_v26, 0.0  ;;  %v5755_v26 = vld [vmem:[%s9373_s5 + $0xf8] sm:$0xff] }
 0x717   : > { %v2468_v31 = vmax.f32 %v2414_v51, 0.0  ;;  %v6631_v54 = vpop.f32.mrb[34].mxu0  ;;  %7325 = vmatpush3.bf16.msra.mxu1 %v7324_v14  ;;  %v7363_v15 = vpack.c.bf16 %v5755_v26, %v5754_v16  ;;  %v2958_v14 = vld [vmem:[%s9375_s7] sm:$0xff] }
 0x718   : > { %v2429_v18 = vadd.f32 %v6631_v54, %v8550_v48  ;;  %v2423_v53 = vpop.f32.mrb[35].mxu0  ;;  %7326 = vmatprep.subr.bf16.mxu1 %v7747_v1  ;;  %v7737_v51 = vld [vmem:[%s9381_s13] sm:$0xf] }
 0x719   : > { %v7327_v56 = vpack.c.bf16 %v2469_v30, %v2468_v31  ;;  %v2424_v55 = vadd.f32 %v8550_v48, %v2423_v53  ;;  %7364 = vmatpush3.bf16.msra.mxu0 %v7363_v15  ;;  %2651 = vrot.lane.b32.xlu0 %v7737_v51, %s7762_s26  ;;  %v2663_v30 = vld [vmem:[%s9380_s12 + $0xb] sm:$0x1]  ;;  %v2691_v31 = vpop.permute.xlu1 %2690 }
 0x71a   : > { %v2471_v6 = vmax.f32 %v2429_v18, 0.0 }
 0x71b   : > { %v2470_v58 = vmax.f32 %v2424_v55, 0.0  ;;  %v6634_v22 = vpop.f32.mrb[36].mxu0  ;;  %7328 = vmatpush3.bf16.msra.mxu1 %v7327_v56 }
 0x71c   : > { %v2439_v24 = vadd.f32 %v6634_v22, %v8550_v48  ;;  %v2433_v17 = vpop.f32.mrb[37].mxu0  ;;  %7329 = vmatprep.subr.bf16.mxu1 %v7747_v1 }
 0x71d   : > { %v7330_v20 = vpack.c.bf16 %v2471_v6, %v2470_v58  ;;  %v2434_v10 = vadd.f32 %v8550_v48, %v2433_v17  ;;  %2665 = vrot.lane.b32.xlu0 %v2663_v30, %s7763_s15  ;;  %v2695_v54 = vpop.permute.xlu1 %2694  ;;  %v2687_v58 = vpop.permute.xlu0 %2686 }
 0x71e   : > { %v2473_v57 = vmax.f32 %v2439_v24, 0.0 }
 0x71f   : > { %v2472_v25 = vmax.f32 %v2434_v10, 0.0  ;;  %v6637_v60 = vpop.f32.mrb[38].mxu0  ;;  %7331 = vmatpush3.bf16.msra.mxu1 %v7330_v20 }
 0x720   : > { %v2449_v27 = vadd.f32 %v6637_v60, %v8550_v48  ;;  %v2443_v28 = vpop.f32.mrb[39].mxu0  ;;  %7332 = vmatprep.subr.bf16.mxu1 %v7747_v1 }
 0x721   : > { %v7333_v59 = vpack.c.bf16 %v2473_v57, %v2472_v25  ;;  %v2444_v44 = vadd.f32 %v8550_v48, %v2443_v28  ;;  %v2703_v18 = vpop.permute.xlu1 %2702  ;;  %v2699_v24 = vpop.permute.xlu0 %2698 }
 0x722   : > { %v2475_v62 = vmax.f32 %v2449_v27, 0.0 }
 0x723   : > { %v2474_v45 = vmax.f32 %v2444_v44, 0.0  ;;  %v6640_v61 = vpop.f32.mrb[40].mxu0  ;;  %7334 = vmatpush3.bf16.msra.mxu1 %v7333_v59 }
 0x724   : > { %v2459_v0 = vadd.f32 %v6640_v61, %v8550_v48  ;;  %v2453_v63 = vpop.f32.mrb[41].mxu0  ;;  %7335 = vmatprep.subr.bf16.mxu1 %v7747_v1 }
 0x725   : > { %v7336_v46 = vpack.c.bf16 %v2475_v62, %v2474_v45  ;;  %v2454_v29 = vadd.f32 %v8550_v48, %v2453_v63  ;;  %v2670_v48 = vld [vmem:[%s9374_s6 + $0x8] sm:$0xff]  ;;  %v2711_v53 = vpop.permute.xlu1 %2710  ;;  %v2707_v25 = vpop.permute.xlu0 %2706 }
 0x726   : > { %v2477_v21 = vmax.f32 %v2459_v0, 0.0 }
 0x727   : > { %v2476_v36 = vmax.f32 %v2454_v29, 0.0  ;;  %7337 = vmatpush3.bf16.msra.mxu1 %v7336_v46 }
 0x728   : > { %7338 = vmatprep.subr.bf16.mxu1 %v7747_v1 }
 0x729   : > { %v7339_v38 = vpack.c.bf16 %v2477_v21, %v2476_v36  ;;  %v2719_v56 = vpop.permute.xlu1 %2718  ;;  %v2715_v45 = vpop.permute.xlu0 %2714 }
 0x72b   : > { %7340 = vmatpush3.bf16.msra.mxu1 %v7339_v38 }
 0x72c   : > { %6711 = vmatprep.subr.msk.mxu1 %vm9383_vm3, %v7736_v42 }
 0x72d   : > { %v2727_v55 = vpop.permute.xlu1 %2726 }
 0x72e   : > { %6674 = vmatmul.mubr.f32.vlgmr.msra.gmra.mrb[38].mxu1 %v5739_v40 }
 0x72f   : > { %6712 = vmatpush3.msk.msra.mxu1 %vm9383_vm3, %v7736_v42  ;;  %6713 = vmatprep.mubr.msk.f32.mxu1 %vm567_vm6, %v2669_v50 }
 0x731   : > { %v8661_v6 = vpop.permute.xlu1 %2734 }
 0x732   : > { %6714 = vmatmul.mubr.msk.f32.vlgmr.msra.gmra.mrb[40].mxu1 %vm567_vm6, %v2670_v48  ;;  %v2723_v48 = vpop.permute.xlu0 %2722 }
 0x733   : > { %6716 = vmatprep.mubr.msk.f32.mxu1 %vm567_vm6, %v2671_v8 }
 0x735   : > { %v8663_v22 = vpop.permute.xlu1 %2742 }
 0x736   : > { %6717 = vmatmul.mubr.msk.f32.gmra.mrb[42].mxu1 %vm567_vm6, %v2672_v7 }
 0x737   : > { %6719 = vmatprep.mubr.msk.f32.mxu1 %vm567_vm6, %v2673_v19 }
 0x739   : > { %v2482_v17 = vpop.permute.xlu1 %2481 }
 0x73a   : > { %6720 = vmatmul.mubr.msk.f32.gmra.mrb[44].mxu1 %vm567_vm6, %v2674_v52 }
 0x73b   : > { %6722 = vmatprep.mubr.msk.f32.mxu1 %vm567_vm6, %v2675_v49 }
 0x73e   : > { %6723 = vmatmul.mubr.msk.f32.gmra.mrb[46].mxu1 %vm567_vm6, %v2676_v37 }
 0x73f   : > { %6725 = vmatprep.mubr.msk.f32.mxu1 %vm567_vm6, %v2677_v39 }
 0x742   : > { %6726 = vmatmul.mubr.msk.f32.gmra.mrb[48].mxu1 %vm567_vm6, %v2678_v11 }
 0x743   : > { %6728 = vmatprep.mubr.msk.f32.mxu1 %vm567_vm6, %v2679_v32 }
 0x746   : > { %6729 = vmatmul.mubr.msk.f32.gmra.mrb[50].mxu1 %vm567_vm6, %v2680_v13 }
 0x747   : > { %6731 = vmatprep.mubr.msk.f32.mxu1 %vm567_vm6, %v2681_v41  ;;  %v2731_v41 = vpop.permute.xlu0 %2730 }
 0x74a   : > { %6732 = vmatmul.mubr.msk.f32.gmra.mrb[52].mxu1 %vm567_vm6, %v2682_v34 }
 0x74b   : > { %6734 = vmatprep.mubr.msk.f32.mxu1 %vm567_vm6, %v2683_v12 }
 0x74e   : > { %6735 = vmatmul.mubr.msk.f32.gmra.mrb[54].mxu1 %vm567_vm6, %v2684_v43 }
 0x74f   : > { %6769 = vmatprep.mubr.f32.mxu1 %v2958_v14 }
 0x801   : > { %v2550_v20 = vpop.f32.mrb[38].mxu1 }
 0x802   : > { %v2551_v10 = vadd.f32 %v2550_v20, %v2482_v17  ;;  %v6675_v57 = vpop.f32.mrb[39].mxu1 }
 0x804   : > { %v2554_v60 = vmax.f32 %v2551_v10, 0.0 }
 0x805   : > { %v6715_v27 = vpop.f32.mrb[40].mxu1 }
 0x806   : > { %v2869_v28 = vadd.f32 %v6715_v27, %v2691_v31  ;;  %6709 = vmatmul.mubr.f32.vlgmr.msra.gmra.mrb[42].mxu0 %v2554_v60  ;;  %v2863_v59 = vpop.f32.mrb[41].mxu1 }
 0x807   : > { %v2864_v44 = vadd.f32 %v2863_v59, %v2687_v58 }
 0x808   : > { %v2943_v62 = vmax.f32 %v2869_v28, 0.0 }
 0x809   : > { %v2942_v61 = vmax.f32 %v2864_v44, 0.0  ;;  %v6718_v0 = vpop.f32.mrb[42].mxu1 }
 0x80a   : > { %v2879_v63 = vadd.f32 %v6718_v0, %v2699_v24  ;;  %v2873_v46 = vpop.f32.mrb[43].mxu1 }
 0x80b   : > { %v7365_v29 = vpack.c.bf16 %v2943_v62, %v2942_v61  ;;  %v2874_v21 = vadd.f32 %v2873_v46, %v2695_v54  ;;  %v2960_v46 = vld [vmem:[%s9375_s7 + $0x10] sm:$0xff] }
 0x80c   : > { %v2945_v36 = vmax.f32 %v2879_v63, 0.0 }
 0x80d   : > { %v2944_v38 = vmax.f32 %v2874_v21, 0.0  ;;  %v6721_v40 = vpop.f32.mrb[44].mxu1  ;;  %7366 = vmatprep.subr.bf16.mxu1 %v7365_v29  ;;  %v2963_v21 = vld [vmem:[%s9375_s7 + $0x28] sm:$0xff] }
 0x80e   : > { %v2889_v42 = vadd.f32 %v6721_v40, %v2707_v25  ;;  %v2883_v50 = vpop.f32.mrb[45].mxu1  ;;  %7368 = vmatpush3.bf16.msra.mxu1 %v7365_v29  ;;  %v2962_v29 = vld [vmem:[%s9375_s7 + $0x20] sm:$0xff] }
 0x80f   : > { %v7369_v8 = vpack.c.bf16 %v2945_v36, %v2944_v38  ;;  %v2884_v7 = vadd.f32 %v2883_v50, %v2703_v18  ;;  %v2739_v18 = vpop.permute.xlu0 %2738  ;;  %v2964_v36 = vld [vmem:[%s9375_s7 + $0x30] sm:$0xff]  ;;  %v2965_v38 = vld [vmem:[%s9375_s7 + $0x38] sm:$0xff]  ;;  %v2966_v40 = vld [vmem:[%s9375_s7 + $0x40] sm:$0xff] }
 0x810   : > { %v2947_v19 = vmax.f32 %v2889_v42, 0.0  ;;  %v2967_v42 = vld [vmem:[%s9375_s7 + $0x48] sm:$0xff]  ;;  %v2968_v50 = vld [vmem:[%s9375_s7 + $0x50] sm:$0xff] }
 0x811   : > { %v2946_v52 = vmax.f32 %v2884_v7, 0.0  ;;  %v6724_v49 = vpop.f32.mrb[46].mxu1  ;;  %7370 = vmatprep.subr.bf16.mxu1 %v7369_v8  ;;  %v2971_v7 = vld [vmem:[%s9375_s7 + $0x68] sm:$0xff] }
 0x812   : > { %v2899_v37 = vadd.f32 %v6724_v49, %v2715_v45  ;;  %v2893_v39 = vpop.f32.mrb[47].mxu1  ;;  %7372 = vmatpush3.bf16.msra.mxu1 %v7369_v8  ;;  %v2970_v8 = vld [vmem:[%s9375_s7 + $0x60] sm:$0xff] }
 0x813   : > { %v7373_v11 = vpack.c.bf16 %v2947_v19, %v2946_v52  ;;  %v2894_v32 = vadd.f32 %v2893_v39, %v2711_v53  ;;  %v2747_v27 = vpop.permute.xlu0 %2746  ;;  %v2972_v19 = vld [vmem:[%s9375_s7 + $0x70] sm:$0xff]  ;;  %v2973_v52 = vld [vmem:[%s9375_s7 + $0x78] sm:$0xff]  ;;  %v3200_v39 = vld [vmem:[%s9375_s7 + $0x88] sm:$0xff] }
 0x814   : > { %v2949_v13 = vmax.f32 %v2899_v37, 0.0  ;;  %v3199_v37 = vld [vmem:[%s9375_s7 + $0x80] sm:$0xff] }
 0x815   : > { %v2948_v34 = vmax.f32 %v2894_v32, 0.0  ;;  %v6727_v12 = vpop.f32.mrb[48].mxu1  ;;  %7374 = vmatprep.subr.bf16.mxu1 %v7373_v11 }
 0x816   : > { %v2909_v43 = vadd.f32 %v6727_v12, %v2723_v48  ;;  %v2903_v16 = vpop.f32.mrb[49].mxu1  ;;  %7376 = vmatpush3.bf16.msra.mxu1 %v7373_v11  ;;  %v2969_v48 = vld [vmem:[%s9375_s7 + $0x58] sm:$0xff]  ;;  %v7397_v11 = vpack.c.bf16 %v3200_v39, %v3199_v37  ;;  %v3422_v37 = vld [vmem:[%s9375_s7 + $0xc8] sm:$0xff] }
 0x817   : > { %v7377_v26 = vpack.c.bf16 %v2949_v13, %v2948_v34  ;;  %v2904_v15 = vadd.f32 %v2903_v16, %v2719_v56  ;;  %v2976_v49 = vpop.permute.xlu0 %2975  ;;  %v3415_v16 = vld [vmem:[%s9375_s7 + $0x90] sm:$0xff] }
 0x818   : > { %v2951_v14 = vmax.f32 %v2909_v43, 0.0  ;;  %7398 = vmatprep.subr.bf16.mxu0 %v7397_v11 }
 0x819   : > { %v2950_v51 = vmax.f32 %v2904_v15, 0.0  ;;  %v6730_v30 = vpop.f32.mrb[50].mxu1  ;;  %7378 = vmatprep.subr.bf16.mxu1 %v7377_v26  ;;  %7400 = vmatpush3.bf16.msra.mxu0 %v7397_v11 }
 0x81a   : > { %v2919_v31 = vadd.f32 %v6730_v30, %v2731_v41  ;;  %v2913_v54 = vpop.f32.mrb[51].mxu1  ;;  %7380 = vmatpush3.bf16.msra.mxu1 %v7377_v26  ;;  %v3416_v26 = vld [vmem:[%s9375_s7 + $0x98] sm:$0xff] }
 0x81b   : > { %v7381_v58 = vpack.c.bf16 %v2951_v14, %v2950_v51  ;;  %v2914_v53 = vadd.f32 %v2913_v54, %v2727_v55  ;;  %v2988_v32 = vpop.permute.xlu0 %2987  ;;  %v7401_v15 = vpack.c.bf16 %v3416_v26, %v3415_v16 }
 0x81c   : > { %v2953_v24 = vmax.f32 %v2919_v31, 0.0 }
 0x81d   : > { %v2952_v17 = vmax.f32 %v2914_v53, 0.0  ;;  %v6733_v20 = vpop.f32.mrb[52].mxu1  ;;  %7382 = vmatprep.subr.bf16.mxu1 %v7381_v58  ;;  %7402 = vmatprep.subr.bf16.mxu0 %v7401_v15 }
 0x81e   : > { %v2929_v10 = vadd.f32 %v6733_v20, %v2739_v18  ;;  %v2923_v57 = vpop.f32.mrb[53].mxu1  ;;  %7384 = vmatpush3.bf16.msra.mxu1 %v7381_v58 }
 0x81f   : > { %v7385_v25 = vpack.c.bf16 %v2953_v24, %v2952_v17  ;;  %v2924_v56 = vadd.f32 %v2923_v57, %v8661_v6  ;;  %v2959_v6 = vld [vmem:[%s9375_s7 + $0x8] sm:$0xff]  ;;  %v2996_v13 = vpop.permute.xlu0 %2995  ;;  %v5756_v17 = vld [vmem:[%s9380_s12 + $0x3] ss:$0 sm:$0xff] }
 0x820   : > { %v2955_v60 = vmax.f32 %v2929_v10, 0.0 }
 0x821   : > { %v2954_v28 = vmax.f32 %v2924_v56, 0.0  ;;  %v6736_v59 = vpop.f32.mrb[54].mxu1  ;;  %7386 = vmatprep.subr.bf16.mxu1 %v7385_v25 }
 0x822   : > { %v2939_v44 = vadd.f32 %v6736_v59, %v2747_v27  ;;  %v2933_v62 = vpop.f32.mrb[55].mxu1  ;;  %7388 = vmatpush3.bf16.msra.mxu1 %v7385_v25 }
 0x823   : > { %v7389_v45 = vpack.c.bf16 %v2955_v60, %v2954_v28  ;;  %v2934_v55 = vadd.f32 %v2933_v62, %v8663_v22  ;;  %v2961_v22 = vld [vmem:[%s9375_s7 + $0x18] sm:$0xff]  ;;  %v8718_v41 = vpop.permute.xlu0 %3003  ;;  %v2980_v28 = vpop.permute.xlu1 %2979 }
 0x824   : > { %v2957_v61 = vmax.f32 %v2939_v44, 0.0 }
 0x825   : > { %v2956_v0 = vmax.f32 %v2934_v55, 0.0  ;;  %7390 = vmatprep.subr.bf16.mxu1 %v7389_v45 }
 0x826   : > { %7392 = vmatpush3.bf16.msra.mxu1 %v7389_v45 }
 0x827   : > { %v7393_v63 = vpack.c.bf16 %v2957_v61, %v2956_v0  ;;  %v8720_v34 = vpop.permute.xlu0 %3011  ;;  %v2984_v59 = vpop.permute.xlu1 %2983  ;;  %v3417_v61 = vld [vmem:[%s9375_s7 + $0xa0] sm:$0xff]  ;;  %v3418_v0 = vld [vmem:[%s9375_s7 + $0xa8] sm:$0xff] }
 0x829   : > { %7394 = vmatprep.subr.bf16.mxu1 %v7393_v63 }
 0x82a   : > { %7396 = vmatpush3.bf16.msra.mxu1 %v7393_v63 }
 0x82b   : > { %v8722_v12 = vpop.permute.xlu0 %3019  ;;  %v2992_v44 = vpop.permute.xlu1 %2991 }
 0x82d   : > { %6770 = vmatmul.mubr.f32.vlgmr.msra.gmra.mrb[56].mxu1 %v2959_v6 }
 0x82e   : > { %6772 = vmatprep.mubr.f32.mxu1 %v2960_v46 }
 0x82f   : > { %v8724_v43 = vpop.permute.xlu0 %3027  ;;  %v3000_v6 = vpop.permute.xlu1 %2999 }
 0x831   : > { %6773 = vmatmul.mubr.f32.gmra.mrb[58].mxu1 %v2961_v22 }
 0x832   : > { %6775 = vmatprep.mubr.f32.mxu1 %v2962_v29 }
 0x833   : > { %v8732_v14 = vpop.permute.xlu0 %3035  ;;  %v3008_v39 = vpop.permute.xlu1 %3007 }
 0x835   : > { %6776 = vmatmul.mubr.f32.gmra.mrb[60].mxu1 %v2963_v21  ;;  %v7405_v21 = vpack.c.bf16 %v3418_v0, %v3417_v61 }
 0x836   : > { %6778 = vmatprep.mubr.f32.mxu1 %v2964_v36 }
 0x837   : > { %v8734_v51 = vpop.permute.xlu0 %4320 }
 0x839   : > { %6779 = vmatmul.mubr.f32.gmra.mrb[62].mxu1 %v2965_v38  ;;  %v3419_v38 = vld [vmem:[%s9375_s7 + $0xb0] sm:$0xff] }
 0x83a   : > { %6781 = vmatprep.mubr.f32.mxu1 %v2966_v40  ;;  %v3420_v40 = vld [vmem:[%s9375_s7 + $0xb8] sm:$0xff] }
 0x83b   : > { %v8736_v30 = vpop.permute.xlu0 %4335 }
 0x83d   : > { %6782 = vmatmul.mubr.f32.gmra.mrb[64].mxu1 %v2967_v42 }
 0x83e   : > { %6784 = vmatprep.mubr.f32.mxu1 %v2968_v50 }
 0x83f   : > { %v8738_v31 = vpop.permute.xlu0 %4345 }
 0x841   : > { %6785 = vmatmul.mubr.f32.gmra.mrb[66].mxu1 %v2969_v48 }
 0x842   : > { %6787 = vmatprep.mubr.f32.mxu1 %v2970_v8 }
 0x843   : > { %v8740_v54 = vpop.permute.xlu0 %4501 }
 0x845   : > { %6788 = vmatmul.mubr.f32.gmra.mrb[68].mxu1 %v2971_v7 }
 0x846   : > { %6790 = vmatprep.mubr.f32.mxu1 %v2972_v19  ;;  %v7409_v19 = vpack.c.bf16 %v3420_v40, %v3419_v38 }
 0x847   : > { %v8742_v18 = vpop.permute.xlu0 %4516 }
 0x849   : > { %6791 = vmatmul.mubr.f32.gmra.mrb[70].mxu1 %v2973_v52 }
 0x84b   : > { %v8744_v58 = vpop.permute.xlu0 %5210 }
 0x84f   : > { %v1740_v53 = vpop.permute.xlu0 %1739 }
 0x850   : > { %v7671_v24 = vadd.f32 %v8545_v47, %v1740_v53 }
 0x852   : > { %v1970_v20 = vmax.f32 %v7671_v24, 0.0  ;;  %v3423_v24 = vld [vmem:[%s9375_s7 + $0xd0] sm:$0xff] }
 0x854   : > { %v2648_v56 = vadd.f32 %v1970_v20, %v8245_v23 }
 0x8d9   : > { %v2643_v10 = vpop.f32.mrb[42].mxu0 }
 0x8da   : > { %v2644_v57 = vadd.f32 %v5756_v17, %v2643_v10  ;;  %v6710_v25 = vpop.f32.mrb[43].mxu0  ;;  %v3424_v17 = vld [vmem:[%s9375_s7 + $0xd8] sm:$0xff] }
 0x8dc   : > { %v2647_v60 = vmax.f32 %v2644_v57, 0.0 }
 0x8de   : > { %v8751_v27 = vadd.f32 %v2648_v56, %v2647_v60  ;;  %v7417_v60 = vpack.c.bf16 %v3424_v17, %v3423_v24  ;;  %v8850_v24 = vadd.s32 56, %v7851_v2  ;;  %v9393_v17 = vmov 0 }
 0x900   : > { %v6771_v62 = vpop.f32.mrb[56].mxu1 }
 0x901   : > { %v3110_v45 = vadd.f32 %v6771_v62, %v2980_v28  ;;  %v3104_v55 = vpop.f32.mrb[57].mxu1 }
 0x902   : > { %v3105_v47 = vadd.f32 %v3104_v55, %v2976_v49  ;;  %v3421_v49 = vld [vmem:[%s9375_s7 + $0xc0] sm:$0xff] }
 0x903   : > { %v3184_v46 = vmax.f32 %v3110_v45, 0.0 }
 0x904   : > { %v3183_v63 = vmax.f32 %v3105_v47, 0.0  ;;  %v6774_v23 = vpop.f32.mrb[58].mxu1 }
 0x905   : > { %v3120_v22 = vadd.f32 %v6774_v23, %v2988_v32  ;;  %v3114_v29 = vpop.f32.mrb[59].mxu1  ;;  %v3428_v23 = vld [vmem:[%s9375_s7 + $0xf8] sm:$0xff] }
 0x906   : > { %v3115_v36 = vadd.f32 %v3114_v29, %v2984_v59  ;;  %6797 = vmatprep.mubr.msk.f32.mxu0 %vm9384_vm5, %v3183_v63  ;;  %v3425_v59 = vld [vmem:[%s9375_s7 + $0xe0] sm:$0xff]  ;;  %v3427_v63 = vld [vmem:[%s9375_s7 + $0xf0] sm:$0xff] }
 0x907   : > { %6798 = vmatmul.mubr.msk.f32.vlgmr.msra.gmra.mrb[44].mxu0 %vm9384_vm5, %v3184_v46  ;;  %v3186_v48 = vmax.f32 %v3120_v22, 0.0 }
 0x908   : > { %v3185_v42 = vmax.f32 %v3115_v36, 0.0  ;;  %v6777_v50 = vpop.f32.mrb[60].mxu1  ;;  %7404 = vmatpush3.bf16.msra.mxu0 %v7401_v15  ;;  %v7413_v15 = vpack.c.bf16 %v3422_v37, %v3421_v49  ;;  %v7425_v36 = vpack.c.bf16 %v3428_v23, %v3427_v63  ;;  %v3429_v49 = vld [vmem:[%s9375_s7 + $0x100] sm:$0xff] }
 0x909   : > { %v3130_v8 = vadd.f32 %v6777_v50, %v2996_v13  ;;  %v3124_v7 = vpop.f32.mrb[61].mxu1  ;;  %7406 = vmatprep.subr.bf16.mxu0 %v7405_v21 }
 0x90a   : > { %v3125_v52 = vadd.f32 %v3124_v7, %v2992_v44  ;;  %6800 = vmatprep.mubr.msk.f32.mxu0 %vm9384_vm5, %v3185_v42  ;;  %v3426_v44 = vld [vmem:[%s9375_s7 + $0xe8] sm:$0xff] }
 0x90b   : > { %6801 = vmatmul.mubr.msk.f32.gmra.mrb[46].mxu0 %vm9384_vm5, %v3186_v48  ;;  %v3188_v13 = vmax.f32 %v3130_v8, 0.0  ;;  %v7421_v61 = vpack.c.bf16 %v3426_v44, %v3425_v59 }
 0x90c   : > { %v3187_v11 = vmax.f32 %v3125_v52, 0.0  ;;  %v6780_v32 = vpop.f32.mrb[62].mxu1  ;;  %7408 = vmatpush3.bf16.msra.mxu0 %v7405_v21 }
 0x90d   : > { %v3140_v16 = vadd.f32 %v6780_v32, %v8718_v41  ;;  %v3134_v26 = vpop.f32.mrb[63].mxu1  ;;  %7410 = vmatprep.subr.bf16.mxu0 %v7409_v19  ;;  %v3016_v41 = vpop.permute.xlu1 %3015  ;;  %v8823_v32 = vadd.s32 24, %v7851_v2 }
 0x90e   : > { %v3135_v53 = vadd.f32 %v3134_v26, %v3000_v6  ;;  %6803 = vmatprep.mubr.msk.f32.mxu0 %vm9384_vm5, %v3187_v11  ;;  %v8820_v11 = vadd.s32 16, %v7851_v2 }
 0x90f   : > { %6804 = vmatmul.mubr.msk.f32.gmra.mrb[48].mxu0 %vm9384_vm5, %v3188_v13  ;;  %v3190_v57 = vmax.f32 %v3140_v16, 0.0  ;;  %v8826_v13 = vadd.s32 32, %v7851_v2  ;;  %v8829_v16 = vadd.s32 40, %v7851_v2 }
 0x910   : > { %v3189_v20 = vmax.f32 %v3135_v53, 0.0  ;;  %v6783_v10 = vpop.f32.mrb[64].mxu1  ;;  %7412 = vmatpush3.bf16.msra.mxu0 %v7409_v19  ;;  %v8847_v53 = vadd.s32 48, %v7851_v2 }
 0x911   : > { %v3150_v25 = vadd.f32 %v6783_v10, %v8720_v34  ;;  %v3144_v56 = vpop.f32.mrb[65].mxu1  ;;  %7414 = vmatprep.subr.bf16.mxu0 %v7413_v15  ;;  %v3024_v6 = vpop.permute.xlu1 %3023  ;;  %v3603_v10 = vadd.s32 64, %v7851_v2 }
 0x912   : > { %v3145_v28 = vadd.f32 %v3144_v56, %v3008_v39  ;;  %6806 = vmatprep.mubr.msk.f32.mxu0 %vm9384_vm5, %v3189_v20  ;;  %v8817_v39 = vmul.u32 2, %v7853_v3  ;;  %v3606_v56 = vadd.s32 88, %v7851_v2 }
 0x913   : > { %6807 = vmatmul.mubr.msk.f32.gmra.mrb[50].mxu0 %vm9384_vm5, %v3190_v57  ;;  %v3192_v34 = vmax.f32 %v3150_v25, 0.0  ;;  %v3605_v25 = vadd.s32 80, %v7851_v2 }
 0x914   : > { %v3191_v62 = vmax.f32 %v3145_v28, 0.0  ;;  %v6786_v45 = vpop.f32.mrb[66].mxu1  ;;  %7416 = vmatpush3.bf16.msra.mxu0 %v7413_v15  ;;  %vm3612_vm13 = vcmp.eq.s32.totalorder %v7851_v2, %v8817_v39  ;;  %vm3613_vm14 = vcmp.eq.s32.totalorder %v7863_v5, %v8817_v39  ;;  %v8836_v26 = vadd.s32 1, %v8817_v39 }
 0x915   : > { %v3160_v55 = vadd.f32 %v6786_v45, %v8722_v12  ;;  %v3154_v47 = vpop.f32.mrb[67].mxu1  ;;  %7418 = vmatprep.subr.bf16.mxu0 %v7417_v60  ;;  %v3032_v50 = vpop.permute.xlu1 %3031  ;;  %vm3614_vm15 = vcmp.eq.s32.totalorder %v8820_v11, %v8817_v39  ;;  %vm8840_vm1 = vmpackc.low %vm3613_vm14, %vm3612_vm13  ;;  %vm3615_vm2 = vcmp.eq.s32.totalorder %v8823_v32, %v8817_v39  ;;  %vm3616_vm8 = vcmp.eq.s32.totalorder %v8826_v13, %v8817_v39  ;;  %v9032_v45 = vld [vmem:[%s9380_s12 + $0x5] ss:$0 sm:$0xff] }
 0x916   : > { %v3155_v0 = vadd.f32 %v3154_v47, %v3016_v41  ;;  %6809 = vmatprep.mubr.msk.f32.mxu0 %vm9384_vm5, %v3191_v62  ;;  %7434 = vmatprep.subr.msk.bf16.mxu1 %vm8840_vm1, %v7750_v9  ;;  %vm3661_vm4 = vcmp.eq.s32.totalorder %v7851_v2, %v8836_v26  ;;  %vm3662_vm6 = vcmp.eq.s32.totalorder %v7863_v5, %v8836_v26  ;;  %vm8859_vm7 = vmpackc.low %vm3615_vm2, %vm3614_vm15  ;;  %v3604_v41 = vadd.s32 72, %v7851_v2 }
 0x917   : > { %6810 = vmatmul.mubr.msk.f32.gmra.mrb[52].mxu0 %vm9384_vm5, %v3192_v34  ;;  %v3194_v12 = vmax.f32 %v3160_v55, 0.0  ;;  %v9394_v17 = vsel %vm8859_vm7, 4294967295, %v9393_v17  ;;  %vm3617_vm9 = vcmp.eq.s32.totalorder %v8829_v16, %v8817_v39  ;;  %vm8867_vm10 = vmpackc.low %vm3662_vm6, %vm3661_vm4  ;;  %7436 = vmatpush3.bf16.msk.msra.mxu1 %vm8840_vm1, %v7750_v9  ;;  %vm3618_vm12 = vcmp.eq.s32.totalorder %v8847_v53, %v8817_v39  ;;  %v8946_v34 = vld [vmem:[%s9380_s12 + $0x4] ss:$0 sm:$0xff] }
 0x918   : > { %v3193_v46 = vmax.f32 %v3155_v0, 0.0  ;;  %v6789_v22 = vpop.f32.mrb[68].mxu1  ;;  %7420 = vmatpush3.bf16.msra.mxu0 %v7417_v60  ;;  %7438 = vmatprep.subr.msk.bf16.mxu1 %vm8859_vm7, %v7750_v9  ;;  %vm8882_vm11 = vmpackc.low %vm3617_vm9, %vm3616_vm8  ;;  %vm3619_vm13 = vcmp.eq.s32.totalorder %v8850_v24, %v8817_v39  ;;  %vm3669_vm14 = vcmp.eq.s32.totalorder %v3603_v10, %v8836_v26  ;;  %vm3670_vm15 = vcmp.eq.s32.totalorder %v3604_v41, %v8836_v26 }
 0x919   : > { %v3170_v29 = vadd.f32 %v6789_v22, %v8724_v43  ;;  %v3164_v21 = vpop.f32.mrb[69].mxu1  ;;  %7422 = vmatprep.subr.bf16.mxu0 %v7421_v61  ;;  %v3607_v60 = vadd.s32 96, %v7851_v2  ;;  %v3608_v28 = vadd.s32 104, %v7851_v2  ;;  %vm8902_vm2 = vmpackc.low %vm3619_vm13, %vm3618_vm12  ;;  %vm3671_vm4 = vcmp.eq.s32.totalorder %v3605_v25, %v8836_v26 }
 0x91a   : > { %v3165_v38 = vadd.f32 %v3164_v21, %v3024_v6  ;;  %6812 = vmatprep.mubr.msk.f32.mxu0 %vm9384_vm5, %v3193_v46  ;;  %vm3672_vm6 = vcmp.eq.s32.totalorder %v3606_v56, %v8836_v26  ;;  %vm3620_vm8 = vcmp.eq.s32.totalorder %v3603_v10, %v8817_v39  ;;  %vm3621_vm9 = vcmp.eq.s32.totalorder %v3604_v41, %v8817_v39  ;;  %vm8910_vm3 = vmpackc.low %vm3670_vm15, %vm3669_vm14 }
 0x91b   : > { %6813 = vmatmul.mubr.msk.f32.gmra.mrb[54].mxu0 %vm9384_vm5, %v3194_v12  ;;  %v3196_v48 = vmax.f32 %v3170_v29, 0.0  ;;  %7440 = vmatpush3.bf16.msk.msra.mxu1 %vm8859_vm7, %v7750_v9  ;;  %vm3673_vm12 = vcmp.eq.s32.totalorder %v3607_v60, %v8836_v26  ;;  %vm3674_vm13 = vcmp.eq.s32.totalorder %v3608_v28, %v8836_v26  ;;  %vm7449_vm14 = vmpackc.low %vm3621_vm9, %vm3620_vm8  ;;  %vm3622_vm15 = vcmp.eq.s32.totalorder %v3605_v25, %v8817_v39 }
 0x91c   : > { %v3195_v40 = vmax.f32 %v3165_v38, 0.0  ;;  %v6792_v42 = vpop.f32.mrb[70].mxu1  ;;  %7424 = vmatpush3.bf16.msra.mxu0 %v7421_v61  ;;  %7442 = vmatprep.subr.msk.bf16.mxu1 %vm8882_vm11, %v7750_v9  ;;  %vm3623_vm0 = vcmp.eq.s32.totalorder %v3606_v56, %v8817_v39  ;;  %vm8928_vm7 = vmpackc.low %vm3674_vm13, %vm3673_vm12  ;;  %vm3665_vm12 = vcmp.eq.s32.totalorder %v8826_v13, %v8836_v26  ;;  %vm3666_vm13 = vcmp.eq.s32.totalorder %v8829_v16, %v8836_v26 }
 0x91d   : > { %v3180_v8 = vadd.f32 %v6792_v42, %v8732_v14  ;;  %v3174_v7 = vpop.f32.mrb[71].mxu1  ;;  %7426 = vmatprep.subr.bf16.mxu0 %v7425_v36  ;;  %v3430_v14 = vld [vmem:[%s9375_s7 + $0x108] sm:$0xff]  ;;  %v3609_v62 = vadd.s32 112, %v7851_v2 }
 0x91e   : > { %v3175_v19 = vadd.f32 %v3174_v7, %v3032_v50  ;;  %6815 = vmatprep.mubr.msk.f32.mxu0 %vm9384_vm5, %v3195_v40  ;;  %v7429_v37 = vpack.c.bf16 %v3430_v14, %v3429_v49 }
 0x91f   : > { %6816 = vmatmul.mubr.msk.f32.gmra.mrb[56].mxu0 %vm9384_vm5, %v3196_v48  ;;  %v3198_v52 = vmax.f32 %v3180_v8, 0.0  ;;  %7444 = vmatpush3.bf16.msk.msra.mxu1 %vm8882_vm11, %v7750_v9  ;;  %vm7453_vm11 = vmpackc.low %vm3623_vm0, %vm3622_vm15  ;;  %vm3663_vm0 = vcmp.eq.s32.totalorder %v8820_v11, %v8836_v26  ;;  %vm3667_vm15 = vcmp.eq.s32.totalorder %v8847_v53, %v8836_v26 }
 0x920   : > { %v3197_v43 = vmax.f32 %v3175_v19, 0.0  ;;  %7428 = vmatpush3.bf16.msra.mxu0 %v7425_v36  ;;  %7446 = vmatprep.subr.msk.bf16.mxu1 %vm8902_vm2, %v7750_v9 }
 0x921   : > { %7430 = vmatprep.subr.bf16.mxu0 %v7429_v37 }
 0x922   : > { %6818 = vmatprep.mubr.msk.f32.mxu0 %vm9384_vm5, %v3197_v43 }
 0x923   : > { %6819 = vmatmul.mubr.msk.f32.gmra.mrb[58].mxu0 %vm9384_vm5, %v3198_v52  ;;  %vm8922_vm5 = vmpackc.low %vm3672_vm6, %vm3671_vm4  ;;  %7448 = vmatpush3.bf16.msk.msra.mxu1 %vm8902_vm2, %v7750_v9  ;;  %vm3624_vm4 = vcmp.eq.s32.totalorder %v3607_v60, %v8817_v39  ;;  %vm3625_vm6 = vcmp.eq.s32.totalorder %v3608_v28, %v8817_v39  ;;  %vm3664_vm2 = vcmp.eq.s32.totalorder %v8823_v32, %v8836_v26 }
 0x924   : > { %7432 = vmatpush3.bf16.msra.mxu0 %v7429_v37  ;;  %7450 = vmatprep.subr.msk.bf16.mxu1 %vm7449_vm14, %v7750_v9  ;;  %vm7457_vm8 = vmpackc.low %vm3625_vm6, %vm3624_vm4  ;;  %vm3675_vm6 = vcmp.eq.s32.totalorder %v3609_v62, %v8836_v26 }
 0x925   : > { %7466 = vmatprep.subr.msk.bf16.mxu0 %vm8867_vm10, %v7750_v9  ;;  %vm8956_vm9 = vmpackc.low %vm3664_vm2, %vm3663_vm0 }
 0x927   : > { %7452 = vmatpush3.bf16.msk.msra.mxu1 %vm7449_vm14, %v7750_v9  ;;  %vm8972_vm14 = vmpackc.low %vm3666_vm13, %vm3665_vm12 }
 0x928   : > { %7454 = vmatprep.subr.msk.bf16.mxu1 %vm7453_vm11, %v7750_v9 }
 0x92b   : > { %7456 = vmatpush3.bf16.msk.msra.mxu1 %vm7453_vm11, %v7750_v9  ;;  %vm3668_vm11 = vcmp.eq.s32.totalorder %v8850_v24, %v8836_v26 }
 0x92c   : > { %7458 = vmatprep.subr.msk.bf16.mxu1 %vm7457_vm8, %v7750_v9  ;;  %vm7477_vm4 = vmpackc.low %vm3668_vm11, %vm3667_vm15 }
 0x92f   : > { %7460 = vmatpush3.bf16.msk.msra.mxu1 %vm7457_vm8, %v7750_v9 }
 0x9da   : > { %v6799_v55 = vpop.f32.mrb[44].mxu0 }
 0x9db   : > { %v3326_v47 = vadd.f32 %v6799_v55, %v8946_v34  ;;  %v3320_v61 = vpop.f32.mrb[45].mxu0 }
 0x9dc   : > { %v3321_v0 = vadd.f32 %v8946_v34, %v3320_v61 }
 0x9dd   : > { %v3400_v6 = vmax.f32 %v3326_v47, 0.0 }
 0x9de   : > { %v3399_v63 = vmax.f32 %v3321_v0, 0.0  ;;  %v6802_v23 = vpop.f32.mrb[46].mxu0 }
 0x9df   : > { %v3336_v46 = vadd.f32 %v6802_v23, %v8946_v34  ;;  %v3330_v22 = vpop.f32.mrb[47].mxu0 }
 0x9e0   : > { %v3331_v12 = vadd.f32 %v8946_v34, %v3330_v22  ;;  %6853 = vmatprep.mubr.f32.mxu0 %v3399_v63 }
 0x9e1   : > { %6854 = vmatmul.mubr.f32.vlgmr.msra.gmra.mrb[60].mxu0 %v3400_v6  ;;  %v3402_v38 = vmax.f32 %v3336_v46, 0.0 }
 0x9e2   : > { %v3401_v21 = vmax.f32 %v3331_v12, 0.0  ;;  %v6805_v36 = vpop.f32.mrb[48].mxu0  ;;  %7468 = vmatpush3.bf16.msk.msra.mxu0 %vm8867_vm10, %v7750_v9 }
 0x9e3   : > { %v3346_v40 = vadd.f32 %v6805_v36, %v8946_v34  ;;  %v3340_v42 = vpop.f32.mrb[49].mxu0  ;;  %7470 = vmatprep.subr.msk.bf16.mxu0 %vm8956_vm9, %v7750_v9 }
 0x9e4   : > { %v3341_v50 = vadd.f32 %v8946_v34, %v3340_v42  ;;  %6856 = vmatprep.mubr.f32.mxu0 %v3401_v21 }
 0x9e5   : > { %6857 = vmatmul.mubr.f32.gmra.mrb[62].mxu0 %v3402_v38  ;;  %v3404_v19 = vmax.f32 %v3346_v40, 0.0 }
 0x9e6   : > { %v3403_v8 = vmax.f32 %v3341_v50, 0.0  ;;  %v6808_v7 = vpop.f32.mrb[50].mxu0  ;;  %7472 = vmatpush3.bf16.msk.msra.mxu0 %vm8956_vm9, %v7750_v9  ;;  %v3610_v50 = vadd.s32 120, %v7851_v2 }
 0x9e7   : > { %v3356_v43 = vadd.f32 %v6808_v7, %v8946_v34  ;;  %v3350_v52 = vpop.f32.mrb[51].mxu0  ;;  %7474 = vmatprep.subr.msk.bf16.mxu0 %vm8972_vm14, %v7750_v9 }
 0x9e8   : > { %v3351_v49 = vadd.f32 %v8946_v34, %v3350_v52  ;;  %6859 = vmatprep.mubr.f32.mxu0 %v3403_v8  ;;  %vm3676_vm8 = vcmp.eq.s32.totalorder %v3610_v50, %v8836_v26 }
 0x9e9   : > { %6860 = vmatmul.mubr.f32.gmra.mrb[64].mxu0 %v3404_v19  ;;  %v3406_v10 = vmax.f32 %v3356_v43, 0.0  ;;  %vm7493_vm2 = vmpackc.low %vm3676_vm8, %vm3675_vm6 }
 0x9ea   : > { %v3405_v14 = vmax.f32 %v3351_v49, 0.0  ;;  %v6811_v37 = vpop.f32.mrb[52].mxu0  ;;  %7476 = vmatpush3.bf16.msk.msra.mxu0 %vm8972_vm14, %v7750_v9 }
 0x9eb   : > { %v3366_v41 = vadd.f32 %v6811_v37, %v8946_v34  ;;  %v3360_v57 = vpop.f32.mrb[53].mxu0  ;;  %7478 = vmatprep.subr.msk.bf16.mxu0 %vm7477_vm4, %v7750_v9 }
 0x9ec   : > { %v3361_v25 = vadd.f32 %v8946_v34, %v3360_v57  ;;  %6862 = vmatprep.mubr.f32.mxu0 %v3405_v14 }
 0x9ed   : > { %6863 = vmatmul.mubr.f32.gmra.mrb[66].mxu0 %v3406_v10  ;;  %v3408_v28 = vmax.f32 %v3366_v41, 0.0 }
 0x9ee   : > { %v3407_v56 = vmax.f32 %v3361_v25, 0.0  ;;  %v6814_v60 = vpop.f32.mrb[54].mxu0  ;;  %7480 = vmatpush3.bf16.msk.msra.mxu0 %vm7477_vm4, %v7750_v9 }
 0x9ef   : > { %v3376_v59 = vadd.f32 %v6814_v60, %v8946_v34  ;;  %v3370_v55 = vpop.f32.mrb[55].mxu0  ;;  %7482 = vmatprep.subr.msk.bf16.mxu0 %vm8910_vm3, %v7750_v9 }
 0x9f0   : > { %v3371_v47 = vadd.f32 %v8946_v34, %v3370_v55  ;;  %6865 = vmatprep.mubr.f32.mxu0 %v3407_v56 }
 0x9f1   : > { %6866 = vmatmul.mubr.f32.gmra.mrb[68].mxu0 %v3408_v28  ;;  %v3410_v63 = vmax.f32 %v3376_v59, 0.0 }
 0x9f2   : > { %v3409_v61 = vmax.f32 %v3371_v47, 0.0  ;;  %v6817_v0 = vpop.f32.mrb[56].mxu0  ;;  %7484 = vmatpush3.bf16.msk.msra.mxu0 %vm8910_vm3, %v7750_v9  ;;  %vm3626_vm3 = vcmp.eq.s32.totalorder %v3609_v62, %v8817_v39 }
 0x9f3   : > { %v3386_v23 = vadd.f32 %v6817_v0, %v8946_v34  ;;  %v3380_v6 = vpop.f32.mrb[57].mxu0  ;;  %7486 = vmatprep.subr.msk.bf16.mxu0 %vm8922_vm5, %v7750_v9 }
 0x9f4   : > { %v3381_v46 = vadd.f32 %v8946_v34, %v3380_v6  ;;  %6868 = vmatprep.mubr.f32.mxu0 %v3409_v61 }
 0x9f5   : > { %6869 = vmatmul.mubr.f32.gmra.mrb[70].mxu0 %v3410_v63  ;;  %v3412_v44 = vmax.f32 %v3386_v23, 0.0 }
 0x9f6   : > { %v3411_v22 = vmax.f32 %v3381_v46, 0.0  ;;  %v6820_v12 = vpop.f32.mrb[58].mxu0  ;;  %7488 = vmatpush3.bf16.msk.msra.mxu0 %vm8922_vm5, %v7750_v9  ;;  %vm3627_vm5 = vcmp.eq.s32.totalorder %v3610_v50, %v8817_v39 }
 0x9f7   : > { %v3396_v21 = vadd.f32 %v6820_v12, %v8946_v34  ;;  %v3390_v36 = vpop.f32.mrb[59].mxu0  ;;  %7490 = vmatprep.subr.msk.bf16.mxu0 %vm8928_vm7, %v7750_v9  ;;  %vm7461_vm0 = vmpackc.low %vm3627_vm5, %vm3626_vm3 }
 0x9f8   : > { %v3391_v38 = vadd.f32 %v8946_v34, %v3390_v36  ;;  %6871 = vmatprep.mubr.f32.mxu0 %v3411_v22  ;;  %7462 = vmatprep.subr.msk.bf16.mxu1 %vm7461_vm0, %v7750_v9 }
 0x9f9   : > { %6872 = vmatmul.mubr.f32.gmra.mrb[72].mxu0 %v3412_v44  ;;  %v3414_v42 = vmax.f32 %v3396_v21, 0.0  ;;  %7464 = vmatpush3.bf16.msk.msra.mxu1 %vm7461_vm0, %v7750_v9 }
 0x9fa   : > { %v3413_v40 = vmax.f32 %v3391_v38, 0.0  ;;  %7492 = vmatpush3.bf16.msk.msra.mxu0 %vm8928_vm7, %v7750_v9 }
 0x9fb   : > { %7494 = vmatprep.subr.msk.bf16.mxu0 %vm7493_vm2, %v7750_v9 }
 0x9fc   : > { %6874 = vmatprep.mubr.f32.mxu0 %v3413_v40 }
 0x9fd   : > { %6875 = vmatmul.mubr.f32.gmra.mrb[74].mxu0 %v3414_v42 }
 0x9fe   : > { %7496 = vmatpush3.bf16.msk.msra.mxu0 %vm7493_vm2, %v7750_v9 }
 0xab4   : > { %v6855_v39 = vpop.f32.mrb[60].mxu0 }
 0xab5   : > { %v3508_v34 = vadd.f32 %v6855_v39, %v9032_v45  ;;  %v3502_v48 = vpop.f32.mrb[61].mxu0 }
 0xab6   : > { %v3503_v26 = vadd.f32 %v9032_v45, %v3502_v48 }
 0xab7   : > { %v3582_v19 = vmax.f32 %v3508_v34, 0.0 }
 0xab8   : > { %v3581_v8 = vmax.f32 %v3503_v26, 0.0  ;;  %v6858_v7 = vpop.f32.mrb[62].mxu0 }
 0xab9   : > { %v3518_v43 = vadd.f32 %v6858_v7, %v9032_v45  ;;  %v3512_v52 = vpop.f32.mrb[63].mxu0 }
 0xaba   : > { %v3513_v49 = vadd.f32 %v9032_v45, %v3512_v52  ;;  %6909 = vmatprep.mubr.f32.mxu1 %v3581_v8  ;;  %6965 = vmatprep.mubr.f32.mxu0 %v3581_v8 }
 0xabb   : > { %6910 = vmatmul.mubr.f32.vlgmr.msra.gmra.mrb[72].mxu1 %v3582_v19  ;;  %6966 = vmatmul.mubr.f32.vlgmr.msra.gmra.mrb[76].mxu0 %v3582_v19  ;;  %v3584_v10 = vmax.f32 %v3518_v43, 0.0 }
 0xabc   : > { %v3583_v14 = vmax.f32 %v3513_v49, 0.0  ;;  %v6861_v37 = vpop.f32.mrb[64].mxu0 }
 0xabd   : > { %v3528_v41 = vadd.f32 %v6861_v37, %v9032_v45  ;;  %v3522_v57 = vpop.f32.mrb[65].mxu0 }
 0xabe   : > { %v3523_v25 = vadd.f32 %v9032_v45, %v3522_v57  ;;  %6912 = vmatprep.mubr.f32.mxu1 %v3583_v14  ;;  %6968 = vmatprep.mubr.f32.mxu0 %v3583_v14  ;;  %v4015_v14 = vmul.u32 2, %v7851_v2 }
 0xabf   : > { %6913 = vmatmul.mubr.f32.gmra.mrb[74].mxu1 %v3584_v10  ;;  %6969 = vmatmul.mubr.f32.gmra.mrb[78].mxu0 %v3584_v10  ;;  %v3586_v28 = vmax.f32 %v3528_v41, 0.0 }
 0xac0   : > { %v3585_v56 = vmax.f32 %v3523_v25, 0.0  ;;  %v6864_v60 = vpop.f32.mrb[66].mxu0  ;;  %v9051_v37 = vadd.s32 1, %v4015_v14  ;;  %vm9054_vm7 = vcmp.eq.s32.totalorder %v7853_v3, %v4015_v14 }
 0xac1   : > { %v3538_v59 = vadd.f32 %v6864_v60, %v9032_v45  ;;  %v3532_v55 = vpop.f32.mrb[67].mxu0  ;;  %v5856_v20 = vsel %vm9054_vm7, 1.0, %v7749_v4 }
 0xac2   : > { %v3533_v47 = vadd.f32 %v9032_v45, %v3532_v55  ;;  %6915 = vmatprep.mubr.f32.mxu1 %v3585_v56  ;;  %6971 = vmatprep.mubr.f32.mxu0 %v3585_v56  ;;  %vm4055_vm12 = vcmp.eq.s32.totalorder %v7853_v3, %v9051_v37 }
 0xac3   : > { %6916 = vmatmul.mubr.f32.gmra.mrb[76].mxu1 %v3586_v28  ;;  %6972 = vmatmul.mubr.f32.gmra.mrb[80].mxu0 %v3586_v28  ;;  %v3588_v63 = vmax.f32 %v3538_v59, 0.0 }
 0xac4   : > { %v3587_v61 = vmax.f32 %v3533_v47, 0.0  ;;  %v6867_v0 = vpop.f32.mrb[68].mxu0 }
 0xac5   : > { %v3548_v23 = vadd.f32 %v6867_v0, %v9032_v45  ;;  %v3542_v6 = vpop.f32.mrb[69].mxu0 }
 0xac6   : > { %v3543_v46 = vadd.f32 %v9032_v45, %v3542_v6  ;;  %6918 = vmatprep.mubr.f32.mxu1 %v3587_v61  ;;  %6974 = vmatprep.mubr.f32.mxu0 %v3587_v61 }
 0xac7   : > { %6919 = vmatmul.mubr.f32.gmra.mrb[78].mxu1 %v3588_v63  ;;  %6975 = vmatmul.mubr.f32.gmra.mrb[82].mxu0 %v3588_v63  ;;  %v3590_v44 = vmax.f32 %v3548_v23, 0.0 }
 0xac8   : > { %v3589_v22 = vmax.f32 %v3543_v46, 0.0  ;;  %v6870_v12 = vpop.f32.mrb[70].mxu0 }
 0xac9   : > { %v3558_v21 = vadd.f32 %v6870_v12, %v9032_v45  ;;  %v3552_v36 = vpop.f32.mrb[71].mxu0 }
 0xaca   : > { %v3553_v38 = vadd.f32 %v9032_v45, %v3552_v36  ;;  %6921 = vmatprep.mubr.f32.mxu1 %v3589_v22  ;;  %6977 = vmatprep.mubr.f32.mxu0 %v3589_v22 }
 0xacb   : > { %6922 = vmatmul.mubr.f32.gmra.mrb[80].mxu1 %v3590_v44  ;;  %6978 = vmatmul.mubr.f32.gmra.mrb[84].mxu0 %v3590_v44  ;;  %v3592_v62 = vmax.f32 %v3558_v21, 0.0 }
 0xacc   : > { %v3591_v40 = vmax.f32 %v3553_v38, 0.0  ;;  %v6873_v42 = vpop.f32.mrb[72].mxu0 }
 0xacd   : > { %v3568_v50 = vadd.f32 %v6873_v42, %v9032_v45  ;;  %v3562_v39 = vpop.f32.mrb[73].mxu0 }
 0xace   : > { %v3563_v34 = vadd.f32 %v9032_v45, %v3562_v39  ;;  %6924 = vmatprep.mubr.f32.mxu1 %v3591_v40  ;;  %6980 = vmatprep.mubr.f32.mxu0 %v3591_v40 }
 0xacf   : > { %6925 = vmatmul.mubr.f32.gmra.mrb[82].mxu1 %v3592_v62  ;;  %6981 = vmatmul.mubr.f32.gmra.mrb[86].mxu0 %v3592_v62  ;;  %v3594_v8 = vmax.f32 %v3568_v50, 0.0 }
 0xad0   : > { %v3593_v48 = vmax.f32 %v3563_v34, 0.0  ;;  %v6876_v26 = vpop.f32.mrb[74].mxu0 }
 0xad1   : > { %v3578_v7 = vadd.f32 %v6876_v26, %v9032_v45  ;;  %v3572_v19 = vpop.f32.mrb[75].mxu0 }
 0xad2   : > { %v3573_v43 = vadd.f32 %v9032_v45, %v3572_v19  ;;  %6927 = vmatprep.mubr.f32.mxu1 %v3593_v48  ;;  %6983 = vmatprep.mubr.f32.mxu0 %v3593_v48  ;;  %v7764_v45 = vmov 1.0  }
 0xad3   : > { %6928 = vmatmul.mubr.f32.gmra.mrb[84].mxu1 %v3594_v8  ;;  %6984 = vmatmul.mubr.f32.gmra.mrb[88].mxu0 %v3594_v8  ;;  %v3596_v49 = vmax.f32 %v3578_v7, 0.0 }
 0xad4   : > { %v3595_v52 = vmax.f32 %v3573_v43, 0.0 }
 0xad6   : > { %6930 = vmatprep.mubr.f32.mxu1 %v3595_v52  ;;  %6986 = vmatprep.mubr.f32.mxu0 %v3595_v52 }
 0xad7   : > { %6931 = vmatmul.mubr.f32.gmra.mrb[86].mxu1 %v3596_v49  ;;  %6987 = vmatmul.mubr.f32.gmra.mrb[90].mxu0 %v3596_v49 }
 0xad8   : > { %7021 = vmatprep.mubr.msk.f32.mxu1 %vm9054_vm7, %v7764_v45  ;;  %7065 = vmatprep.mubr.msk.f32.mxu0 %vm4055_vm12, %v7764_v45 }
 0xb8e   : > { %v6911_v2 = vpop.f32.mrb[72].mxu1  ;;  %v6967_v41 = vpop.f32.mrb[76].mxu0 }
 0xb8f   : > { %v4000_v57 = vmax.f32 %v6911_v2, %v6967_v41  ;;  %v3775_v25 = vpop.f32.mrb[73].mxu1  ;;  %v3920_v56 = vpop.f32.mrb[77].mxu0 }
 0xb90   : > { %v3999_v60 = vmax.f32 %v3775_v25, %v3920_v56 }
 0xb92   : > { %v7497_v28 = vpack.c.bf16 %v4000_v57, %v3999_v60  ;;  %v6914_v59 = vpop.f32.mrb[74].mxu1  ;;  %v6970_v55 = vpop.f32.mrb[78].mxu0 }
 0xb93   : > { %v4002_v47 = vmax.f32 %v6914_v59, %v6970_v55  ;;  %v3785_v61 = vpop.f32.mrb[75].mxu1  ;;  %v3930_v0 = vpop.f32.mrb[79].mxu0 }
 0xb94   : > { %v4001_v63 = vmax.f32 %v3785_v61, %v3930_v0  ;;  %7498 = vmatprep.subr.bf16.mxu1 %v7497_v28  ;;  %7530 = vmatprep.subr.bf16.mxu0 %v7497_v28  ;;  %v4016_v0 = vmul.u32 2, %v7863_v5  ;;  %v4019_v5 = vmul.u32 2, %v8826_v13 }
 0xb95   : > { %7500 = vmatpush3.bf16.msra.mxu1 %v7497_v28  ;;  %7532 = vmatpush3.bf16.msra.mxu0 %v7497_v28  ;;  %v4021_v13 = vmul.u32 2, %v8847_v53  ;;  %v4022_v53 = vmul.u32 2, %v8850_v24  ;;  %v4297_v24 = vld [vmem:[%s9376_s8] sm:$0xff] }
 0xb96   : > { %v7501_v23 = vpack.c.bf16 %v4002_v47, %v4001_v63  ;;  %v6917_v6 = vpop.f32.mrb[76].mxu1  ;;  %v6973_v46 = vpop.f32.mrb[80].mxu0  ;;  %vm9074_vm13 = vcmp.eq.s32.totalorder %v7853_v3, %v4016_v0  ;;  %vm4027_vm5 = vcmp.eq.s32.totalorder %v7853_v3, %v4019_v5 }
 0xb97   : > { %v4004_v22 = vmax.f32 %v6917_v6, %v6973_v46  ;;  %v3795_v12 = vpop.f32.mrb[77].mxu1  ;;  %v3940_v44 = vpop.f32.mrb[81].mxu0  ;;  %v4017_v46 = vmul.u32 2, %v8820_v11  ;;  %vm4029_vm2 = vcmp.eq.s32.totalorder %v7853_v3, %v4021_v13 }
 0xb98   : > { %v4003_v21 = vmax.f32 %v3795_v12, %v3940_v44  ;;  %7502 = vmatprep.subr.bf16.mxu1 %v7501_v23  ;;  %7534 = vmatprep.subr.bf16.mxu0 %v7501_v23 }
 0xb99   : > { %7504 = vmatpush3.bf16.msra.mxu1 %v7501_v23  ;;  %7536 = vmatpush3.bf16.msra.mxu0 %v7501_v23  ;;  %vm4025_vm15 = vcmp.eq.s32.totalorder %v7853_v3, %v4017_v46 }
 0xb9a   : > { %v7505_v36 = vpack.c.bf16 %v4004_v22, %v4003_v21  ;;  %v6920_v38 = vpop.f32.mrb[78].mxu1  ;;  %v6976_v40 = vpop.f32.mrb[82].mxu0 }
 0xb9b   : > { %v4006_v42 = vmax.f32 %v6920_v38, %v6976_v40  ;;  %v3805_v62 = vpop.f32.mrb[79].mxu1  ;;  %v3950_v50 = vpop.f32.mrb[83].mxu0  ;;  %v4018_v38 = vmul.u32 2, %v8823_v32  ;;  %v4051_v32 = vadd.s32 1, %v4019_v5  ;;  %v4299_v5 = vld [vmem:[%s9376_s8 + $0x10] sm:$0xff] }
 0xb9c   : > { %v4005_v39 = vmax.f32 %v3805_v62, %v3950_v50  ;;  %7506 = vmatprep.subr.bf16.mxu1 %v7505_v36  ;;  %7538 = vmatprep.subr.bf16.mxu0 %v7505_v36  ;;  %v4020_v50 = vmul.u32 2, %v8829_v16 }
 0xb9d   : > { %7508 = vmatpush3.bf16.msra.mxu1 %v7505_v36  ;;  %7540 = vmatpush3.bf16.msra.mxu0 %v7505_v36  ;;  %v9069_v36 = vadd.s32 1, %v4016_v0  ;;  %v4050_v62 = vadd.s32 1, %v4018_v38  ;;  %vm4026_vm4 = vcmp.eq.s32.totalorder %v7853_v3, %v4018_v38  ;;  %vm4059_vm6 = vcmp.eq.s32.totalorder %v7853_v3, %v4051_v32  ;;  %v4302_v32 = vld [vmem:[%s9376_s8 + $0x28] sm:$0xff] }
 0xb9e   : > { %v7509_v34 = vpack.c.bf16 %v4006_v42, %v4005_v39  ;;  %v6923_v48 = vpop.f32.mrb[80].mxu1  ;;  %v6979_v26 = vpop.f32.mrb[84].mxu0  ;;  %v4049_v42 = vadd.s32 1, %v4017_v46  ;;  %v4052_v16 = vadd.s32 1, %v4020_v50  ;;  %v4053_v39 = vadd.s32 1, %v4021_v13  ;;  %v4303_v13 = vld [vmem:[%s9376_s8 + $0x30] sm:$0xff] }
 0xb9f   : > { %v4008_v8 = vmax.f32 %v6923_v48, %v6979_v26  ;;  %v3815_v7 = vpop.f32.mrb[81].mxu1  ;;  %v3960_v19 = vpop.f32.mrb[85].mxu0  ;;  %vm4056_vm14 = vcmp.eq.s32.totalorder %v7853_v3, %v9069_v36  ;;  %vm4058_vm3 = vcmp.eq.s32.totalorder %v7853_v3, %v4050_v62  ;;  %vm4028_vm8 = vcmp.eq.s32.totalorder %v7853_v3, %v4020_v50  ;;  %v9121_v48 = vld [vmem:[%s9381_s13] sm:$0xff]  ;;  %v9127_v26 = vld [vmem:[%s9381_s13 + $0x10] sm:$0xff]  ;;  %v4300_v62 = vld [vmem:[%s9376_s8 + $0x18] sm:$0xff] }
 0xba0   : > { %v4007_v43 = vmax.f32 %v3815_v7, %v3960_v19  ;;  %7510 = vmatprep.subr.bf16.mxu1 %v7509_v34  ;;  %7542 = vmatprep.subr.bf16.mxu0 %v7509_v34  ;;  %vm4057_vm11 = vcmp.eq.s32.totalorder %v7853_v3, %v4049_v42  ;;  %vm4060_vm0 = vcmp.eq.s32.totalorder %v7853_v3, %v4052_v16  ;;  %v4312_v7 = vld [vmem:[%s9381_s13 + $0x38] sm:$0xff]  ;;  %v4298_v42 = vld [vmem:[%s9376_s8 + $0x8] sm:$0xff]  ;;  %v4301_v50 = vld [vmem:[%s9376_s8 + $0x20] sm:$0xff] }
 0xba1   : > { %7512 = vmatpush3.bf16.msra.mxu1 %v7509_v34  ;;  %7544 = vmatpush3.bf16.msra.mxu0 %v7509_v34  ;;  %v4054_v34 = vadd.s32 1, %v4022_v53  ;;  %v4304_v16 = vld [vmem:[%s9376_s8 + $0x38] sm:$0xff] }
 0xba2   : > { %v7513_v52 = vpack.c.bf16 %v4008_v8, %v4007_v43  ;;  %v6926_v49 = vpop.f32.mrb[82].mxu1  ;;  %v6982_v14 = vpop.f32.mrb[86].mxu0  ;;  %4315 = vperm.xlu1 %7719, %v9121_v48   ;;  %v4310_v8 = vld [vmem:[%s9381_s13 + $0x28] sm:$0xff] }
 0xba3   : > { %v4010_v2 = vmax.f32 %v6926_v49, %v6982_v14  ;;  %v3825_v41 = vpop.f32.mrb[83].mxu1  ;;  %v3970_v57 = vpop.f32.mrb[87].mxu0 }
 0xba4   : > { %v4009_v25 = vmax.f32 %v3825_v41, %v3970_v57  ;;  %7514 = vmatprep.subr.bf16.mxu1 %v7513_v52  ;;  %7546 = vmatprep.subr.bf16.mxu0 %v7513_v52 }
 0xba5   : > { %7516 = vmatpush3.bf16.msra.mxu1 %v7513_v52  ;;  %7548 = vmatpush3.bf16.msra.mxu0 %v7513_v52 }
 0xba6   : > { %v7517_v56 = vpack.c.bf16 %v4010_v2, %v4009_v25  ;;  %v6929_v60 = vpop.f32.mrb[84].mxu1  ;;  %v6985_v28 = vpop.f32.mrb[88].mxu0  ;;  %4325 = vperm.xlu1 %7719, %v9127_v26  }
 0xba7   : > { %v4012_v59 = vmax.f32 %v6929_v60, %v6985_v28  ;;  %v3835_v55 = vpop.f32.mrb[85].mxu1  ;;  %v3980_v47 = vpop.f32.mrb[89].mxu0 }
 0xba8   : > { %v4011_v61 = vmax.f32 %v3835_v55, %v3980_v47  ;;  %7518 = vmatprep.subr.bf16.mxu1 %v7517_v56  ;;  %7550 = vmatprep.subr.bf16.mxu0 %v7517_v56 }
 0xba9   : > { %7520 = vmatpush3.bf16.msra.mxu1 %v7517_v56  ;;  %7552 = vmatpush3.bf16.msra.mxu0 %v7517_v56 }
 0xbaa   : > { %v7521_v63 = vpack.c.bf16 %v4012_v59, %v4011_v61  ;;  %v6932_v23 = vpop.f32.mrb[86].mxu1  ;;  %v6988_v6 = vpop.f32.mrb[90].mxu0 }
 0xbab   : > { %v4014_v22 = vmax.f32 %v6932_v23, %v6988_v6  ;;  %v3845_v12 = vpop.f32.mrb[87].mxu1  ;;  %v3990_v44 = vpop.f32.mrb[91].mxu0 }
 0xbac   : > { %v4013_v21 = vmax.f32 %v3845_v12, %v3990_v44  ;;  %7522 = vmatprep.subr.bf16.mxu1 %v7521_v63  ;;  %7554 = vmatprep.subr.bf16.mxu0 %v7521_v63 }
 0xbad   : > { %7524 = vmatpush3.bf16.msra.mxu1 %v7521_v63  ;;  %7556 = vmatpush3.bf16.msra.mxu0 %v7521_v63 }
 0xbae   : > { %v7525_v40 = vpack.c.bf16 %v4014_v22, %v4013_v21 }
 0xbb0   : > { %7526 = vmatprep.subr.bf16.mxu1 %v7525_v40  ;;  %7558 = vmatprep.subr.bf16.mxu0 %v7525_v40 }
 0xbb1   : > { %7528 = vmatpush3.bf16.msra.mxu1 %v7525_v40  ;;  %7560 = vmatpush3.bf16.msra.mxu0 %v7525_v40 }
 0xbb4   : > { %7022 = vmatmul.mubr.msk.f32.vlgmr.msra.gmra.mrb[88].mxu1 %vm9074_vm13, %v7764_v45  ;;  %7066 = vmatmul.mubr.msk.f32.vlgmr.msra.gmra.mrb[92].mxu0 %vm4056_vm14, %v7764_v45 }
 0xbb5   : > { %7024 = vmatprep.mubr.msk.f32.mxu1 %vm4025_vm15, %v7764_v45  ;;  %7068 = vmatprep.mubr.msk.f32.mxu0 %vm4057_vm11, %v7764_v45  ;;  %vm4061_vm15 = vcmp.eq.s32.totalorder %v7853_v3, %v4053_v39  ;;  %vm4030_vm11 = vcmp.eq.s32.totalorder %v7853_v3, %v4022_v53  ;;  %v4491_v53 = vld [vmem:[%s9376_s8 + $0x40] sm:$0xff]  ;;  %v4496_v39 = vld [vmem:[%s9381_s13 + $0x8] sm:$0xff] }
 0xbb8   : > { %7025 = vmatmul.mubr.msk.f32.gmra.mrb[90].mxu1 %vm4026_vm4, %v7764_v45  ;;  %7069 = vmatmul.mubr.msk.f32.gmra.mrb[94].mxu0 %vm4058_vm3, %v7764_v45  ;;  %vm4062_vm4 = vcmp.eq.s32.totalorder %v7853_v3, %v4054_v34  ;;  %vm4353_vm3 = vcmask 523264   ;;  %v4620_v34 = vld [vmem:[%s9376_s8 + $0x60] sm:$0xff] }
 0xbb9   : > { %7027 = vmatprep.mubr.msk.f32.mxu1 %vm4027_vm5, %v7764_v45  ;;  %7071 = vmatprep.mubr.msk.f32.mxu0 %vm4059_vm6, %v7764_v45  ;;  %vm9415_vm5 = vnez %v9394_v17  ;;  %v5900_v17 = vld [vmem:[%s9380_s12 + $0x6] ss:$0 sm:$0xff]  ;;  %vm5539_vm6 = vcmask 27648  }
 0xbbc   : > { %7028 = vmatmul.mubr.msk.f32.gmra.mrb[92].mxu1 %vm4028_vm8, %v7764_v45  ;;  %7072 = vmatmul.mubr.msk.f32.gmra.mrb[96].mxu0 %vm4060_vm0, %v7764_v45  ;;  %vm9422_vm8 = vcmask 1043456   ;;  %vm2655_vm0 = vcmask 126072  }
 0xbbd   : > { %7030 = vmatprep.mubr.msk.f32.mxu1 %vm4029_vm2, %v7764_v45  ;;  %7074 = vmatprep.mubr.msk.f32.mxu0 %vm4061_vm15, %v7764_v45  ;;  %vm5562_vm2 = vcmask 0  }
 0xbc0   : > { %7031 = vmatmul.mubr.msk.f32.gmra.mrb[94].mxu1 %vm4030_vm11, %v7764_v45  ;;  %7075 = vmatmul.mubr.msk.f32.gmra.mrb[98].mxu0 %vm4062_vm4, %v7764_v45  ;;  %v4308_v45 = vld [vmem:[%s9381_s13 + $0x18] sm:$0xff] }
 0xbc1   : > { %7093 = vmatprep.mubr.msk.f32.mxu1 %vm4353_vm3, %v4297_v24  ;;  %4330 = vperm.xlu1 %7719, %v4308_v45   ;;  %v4621_v24 = vld [vmem:[%s9376_s8 + $0x68] sm:$0xff] }
 0xbc2   : > { %7121 = vmatprep.mubr.msk.f32.mxu0 %vm4353_vm3, %v4491_v53  ;;  %v7593_v45 = vpack.c.bf16 %v4621_v24, %v4620_v34  ;;  %v4627_v53 = vld [vmem:[%s9376_s8 + $0x98] sm:$0xff]  ;;  %v4734_v34 = vld [vmem:[%s9377_s9] sm:$0xff]  ;;  %v4735_v24 = vld [vmem:[%s9377_s9 + $0x8] sm:$0xff] }
 0xbc5   : > { %4340 = vperm.xlu1 %7719, %v4310_v8   ;;  %v4622_v8 = vld [vmem:[%s9376_s8 + $0x70] sm:$0xff] }
 0xbc9   : > { %4350 = vperm.xlu1 %7719, %v4312_v7   ;;  %v4623_v7 = vld [vmem:[%s9376_s8 + $0x78] sm:$0xff] }
 0xbcd   : > { %7722 = vset.pattern.permute.xlu1 %v7758_v33 }
 0xbce   : > { %4506 = vperm.xlu1 %7722, %v4496_v39  }
 0xbd2   : > { %4511 = vperm.xlu1 %7722, %v9127_v26  }
 0xbd6   : > { %7723 = vset.pattern.permute.xlu1 %v7759_v35 }
 0xbd7   : > { %5205 = vperm.xlu1 %7723, %v9121_v48  }
 0xc87   : > { %v7023_v19 = vpop.f32.mrb[88].mxu1  ;;  %v7067_v43 = vpop.f32.mrb[92].mxu0 }
 0xc88   : > { %v4290_v52 = vmax.f32 %v7023_v19, %v7067_v43  ;;  %v4145_v49 = vpop.f32.mrb[89].mxu1  ;;  %v4250_v14 = vpop.f32.mrb[93].mxu0  ;;  %v7597_v19 = vpack.c.bf16 %v4623_v7, %v4622_v8  ;;  %v4624_v43 = vld [vmem:[%s9376_s8 + $0x80] sm:$0xff]  ;;  %v7609_v8 = vpack.c.bf16 %v4735_v24, %v4734_v34  ;;  %v4737_v7 = vld [vmem:[%s9377_s9 + $0x18] sm:$0xff]  ;;  %v5864_v34 = vsel %vm4055_vm12, 1.0, %v7749_v4 }
 0xc89   : > { %v4289_v2 = vmax.f32 %v4145_v49, %v4250_v14  ;;  %v4316_v14 = vpop.permute.xlu1 %4315 }
 0xc8b   : > { %v7561_v41 = vpack.c.bf16 %v4290_v52, %v4289_v2  ;;  %v7026_v57 = vpop.f32.mrb[90].mxu1  ;;  %v7070_v25 = vpop.f32.mrb[94].mxu0  ;;  %v4625_v52 = vld [vmem:[%s9376_s8 + $0x88] sm:$0xff] }
 0xc8c   : > { %v4292_v56 = vmax.f32 %v7026_v57, %v7070_v25  ;;  %v4155_v60 = vpop.f32.mrb[91].mxu1  ;;  %v4260_v28 = vpop.f32.mrb[95].mxu0  ;;  %v7601_v49 = vpack.c.bf16 %v4625_v52, %v4624_v43  ;;  %v4738_v43 = vld [vmem:[%s9377_s9 + $0x20] sm:$0xff]  ;;  %v4739_v52 = vld [vmem:[%s9377_s9 + $0x28] sm:$0xff] }
 0xc8d   : > { %v4291_v59 = vmax.f32 %v4155_v60, %v4260_v28  ;;  %7562 = vmatprep.subr.bf16.mxu1 %v7561_v41  ;;  %v4326_v2 = vpop.permute.xlu1 %4325 }
 0xc8e   : > { %7564 = vmatpush3.bf16.msra.mxu1 %v7561_v41 }
 0xc8f   : > { %v7565_v55 = vpack.c.bf16 %v4292_v56, %v4291_v59  ;;  %v7029_v47 = vpop.f32.mrb[92].mxu1  ;;  %v7073_v61 = vpop.f32.mrb[96].mxu0 }
 0xc90   : > { %v4294_v0 = vmax.f32 %v7029_v47, %v7073_v61  ;;  %v4165_v33 = vpop.f32.mrb[93].mxu1  ;;  %v4270_v63 = vpop.f32.mrb[97].mxu0 }
 0xc91   : > { %v4293_v23 = vmax.f32 %v4165_v33, %v4270_v63  ;;  %7566 = vmatprep.subr.bf16.mxu1 %v7565_v55  ;;  %v4331_v41 = vpop.permute.xlu1 %4330 }
 0xc92   : > { %7568 = vmatpush3.bf16.msra.mxu1 %v7565_v55 }
 0xc93   : > { %v7569_v6 = vpack.c.bf16 %v4294_v0, %v4293_v23  ;;  %v7032_v46 = vpop.f32.mrb[94].mxu1  ;;  %v7076_v22 = vpop.f32.mrb[98].mxu0 }
 0xc94   : > { %v4296_v12 = vmax.f32 %v7032_v46, %v7076_v22  ;;  %v4175_v44 = vpop.f32.mrb[95].mxu1  ;;  %v4280_v21 = vpop.f32.mrb[99].mxu0 }
 0xc95   : > { %v4295_v38 = vmax.f32 %v4175_v44, %v4280_v21  ;;  %7570 = vmatprep.subr.bf16.mxu1 %v7569_v6  ;;  %v4341_v61 = vpop.permute.xlu1 %4340 }
 0xc96   : > { %7572 = vmatpush3.bf16.msra.mxu1 %v7569_v6 }
 0xc97   : > { %v7573_v40 = vpack.c.bf16 %v4296_v12, %v4295_v38 }
 0xc99   : > { %7574 = vmatprep.subr.bf16.mxu1 %v7573_v40  ;;  %v4351_v12 = vpop.permute.xlu1 %4350 }
 0xc9a   : > { %7576 = vmatpush3.bf16.msra.mxu1 %v7573_v40 }
 0xc9b   : > { %7594 = vmatprep.subr.bf16.mxu1 %v7593_v45 }
 0xc9d   : > { %7094 = vmatmul.mubr.msk.f32.vlgmr.msra.gmra.mrb[96].mxu1 %vm4353_vm3, %v4298_v42 }
 0xc9e   : > { %7096 = vmatprep.mubr.msk.f32.mxu1 %vm4353_vm3, %v4299_v5  ;;  %7596 = vmatpush3.bf16.msra.mxu1 %v7593_v45  ;;  %v4736_v45 = vld [vmem:[%s9377_s9 + $0x10] sm:$0xff] }
 0xc9f   : > { %7598 = vmatprep.subr.bf16.mxu1 %v7597_v19 }
 0xca1   : > { %7097 = vmatmul.mubr.msk.f32.gmra.mrb[98].mxu1 %vm4353_vm3, %v4300_v62 }
 0xca2   : > { %7099 = vmatprep.mubr.msk.f32.mxu1 %vm4353_vm3, %v4301_v50  ;;  %7600 = vmatpush3.bf16.msra.mxu1 %v7597_v19  ;;  %v7613_v19 = vpack.c.bf16 %v4737_v7, %v4736_v45 }
 0xca3   : > { %7602 = vmatprep.subr.bf16.mxu1 %v7601_v49 }
 0xca5   : > { %7100 = vmatmul.mubr.msk.f32.gmra.mrb[100].mxu1 %vm4353_vm3, %v4302_v32 }
 0xca6   : > { %7102 = vmatprep.mubr.msk.f32.mxu1 %vm4353_vm3, %v4303_v13  ;;  %7604 = vmatpush3.bf16.msra.mxu1 %v7601_v49  ;;  %v4493_v13 = vld [vmem:[%s9376_s8 + $0x50] sm:$0xff]  ;;  %v7617_v49 = vpack.c.bf16 %v4739_v52, %v4738_v43 }
 0xca9   : > { %7103 = vmatmul.mubr.msk.f32.gmra.mrb[102].mxu1 %vm4353_vm3, %v4304_v16  ;;  %v4626_v16 = vld [vmem:[%s9376_s8 + $0x90] sm:$0xff] }
 0xcaa   : > { %v7605_v39 = vpack.c.bf16 %v4627_v53, %v4626_v16 }
 0xcac   : > { %7606 = vmatprep.subr.bf16.mxu1 %v7605_v39 }
 0xcad   : > { %7608 = vmatpush3.bf16.msra.mxu1 %v7605_v39 }
 0xcae   : > { %7626 = vmatprep.subr.msk.bf16.mxu1 %vm8840_vm1, %v7750_v9 }
 0xd70   : > { %v7095_v57 = vpop.f32.mrb[96].mxu1 }
 0xd71   : > { %v4450_v25 = vadd.f32 %v7095_v57, %v8734_v51  ;;  %v4444_v56 = vpop.f32.mrb[97].mxu1 }
 0xd72   : > { %v4445_v60 = vadd.f32 %v4444_v56, %v4316_v14  ;;  %v4507_v14 = vpop.permute.xlu1 %4506 }
 0xd73   : > { %v4484_v28 = vmax.f32 %v4450_v25, 0.0 }
 0xd74   : > { %v4483_v59 = vmax.f32 %v4445_v60, 0.0  ;;  %v7098_v26 = vpop.f32.mrb[98].mxu1 }
 0xd75   : > { %v4460_v55 = vadd.f32 %v7098_v26, %v4331_v41  ;;  %v4454_v47 = vpop.f32.mrb[99].mxu1 }
 0xd76   : > { %v7577_v0 = vpack.c.bf16 %v4484_v28, %v4483_v59  ;;  %v4455_v33 = vadd.f32 %v4454_v47, %v4326_v2  ;;  %v4512_v59 = vpop.permute.xlu1 %4511 }
 0xd77   : > { %v4486_v35 = vmax.f32 %v4460_v55, 0.0 }
 0xd78   : > { %v4485_v63 = vmax.f32 %v4455_v33, 0.0  ;;  %v7101_v48 = vpop.f32.mrb[100].mxu1  ;;  %7578 = vmatprep.subr.bf16.mxu0 %v7577_v0 }
 0xd79   : > { %v4470_v23 = vadd.f32 %v7101_v48, %v4341_v61  ;;  %v4464_v6 = vpop.f32.mrb[101].mxu1  ;;  %7580 = vmatpush3.bf16.msra.mxu0 %v7577_v0 }
 0xd7a   : > { %v7581_v46 = vpack.c.bf16 %v4486_v35, %v4485_v63  ;;  %v4465_v51 = vadd.f32 %v4464_v6, %v8736_v30  ;;  %v4492_v30 = vld [vmem:[%s9376_s8 + $0x48] sm:$0xff] }
 0xd7b   : > { %v4488_v22 = vmax.f32 %v4470_v23, 0.0 }
 0xd7c   : > { %v4487_v44 = vmax.f32 %v4465_v51, 0.0  ;;  %v7104_v21 = vpop.f32.mrb[102].mxu1  ;;  %7582 = vmatprep.subr.bf16.mxu0 %v7581_v46 }
 0xd7d   : > { %v4480_v38 = vadd.f32 %v7104_v21, %v4351_v12  ;;  %v4474_v40 = vpop.f32.mrb[103].mxu1  ;;  %7584 = vmatpush3.bf16.msra.mxu0 %v7581_v46 }
 0xd7e   : > { %v7585_v42 = vpack.c.bf16 %v4488_v22, %v4487_v44  ;;  %v4475_v5 = vadd.f32 %v4474_v40, %v8738_v31  ;;  %v4494_v31 = vld [vmem:[%s9376_s8 + $0x58] sm:$0xff] }
 0xd7f   : > { %v4490_v62 = vmax.f32 %v4480_v38, 0.0  ;;  %v5905_v38 = vld [vmem:[%s9380_s12 + $0x7] ss:$0 sm:$0xff] }
 0xd80   : > { %v4489_v50 = vmax.f32 %v4475_v5, 0.0  ;;  %7586 = vmatprep.subr.bf16.mxu0 %v7585_v42 }
 0xd81   : > { %7588 = vmatpush3.bf16.msra.mxu0 %v7585_v42 }
 0xd82   : > { %v7589_v32 = vpack.c.bf16 %v4490_v62, %v4489_v50 }
 0xd84   : > { %7590 = vmatprep.subr.bf16.mxu0 %v7589_v32 }
 0xd85   : > { %7592 = vmatpush3.bf16.msra.mxu0 %v7589_v32 }
 0xd86   : > { %7610 = vmatprep.subr.bf16.mxu0 %v7609_v8 }
 0xd88   : > { %7122 = vmatmul.mubr.msk.f32.vlgmr.msra.gmra.mrb[100].mxu0 %vm4353_vm3, %v4492_v30 }
 0xd89   : > { %7124 = vmatprep.mubr.msk.f32.mxu0 %vm4353_vm3, %v4493_v13  ;;  %7612 = vmatpush3.bf16.msra.mxu0 %v7609_v8 }
 0xd8a   : > { %7614 = vmatprep.subr.bf16.mxu0 %v7613_v19 }
 0xd8c   : > { %7125 = vmatmul.mubr.msk.f32.gmra.mrb[102].mxu0 %vm4353_vm3, %v4494_v31 }
 0xd8d   : > { %7616 = vmatpush3.bf16.msra.mxu0 %v7613_v19 }
 0xd8e   : > { %7618 = vmatprep.subr.bf16.mxu0 %v7617_v49 }
 0xd91   : > { %7620 = vmatpush3.bf16.msra.mxu0 %v7617_v49 }
 0xe5b   : > { %v7123_v2 = vpop.f32.mrb[100].mxu0 }
 0xe5c   : > { %v4603_v41 = vadd.f32 %v7123_v2, %v4507_v14  ;;  %v4597_v57 = vpop.f32.mrb[101].mxu0 }
 0xe5d   : > { %v4598_v25 = vadd.f32 %v4597_v57, %v8740_v54  ;;  %v4740_v54 = vld [vmem:[%s9377_s9 + $0x30] sm:$0xff]  ;;  %v5865_v57 = vsel %vm4056_vm14, 1.0, %v7749_v4 }
 0xe5e   : > { %v4617_v28 = vmax.f32 %v4603_v41, 0.0  ;;  %v5857_v41 = vsel %vm9074_vm13, 1.0, %v7749_v4 }
 0xe5f   : > { %v4616_v56 = vmax.f32 %v4598_v25, 0.0  ;;  %v7126_v60 = vpop.f32.mrb[102].mxu0  ;;  %v5199_v25 = vld [vmem:[%s9378_s10] sm:$0xff] }
 0xe60   : > { %v4613_v26 = vadd.f32 %v7126_v60, %v8742_v18  ;;  %v4607_v55 = vpop.f32.mrb[103].mxu0  ;;  %v4741_v18 = vld [vmem:[%s9377_s9 + $0x38] sm:$0xff] }
 0xe61   : > { %v4608_v47 = vadd.f32 %v4607_v55, %v4512_v59  ;;  %7143 = vmatprep.mubr.msk.f32.mxu1 %vm4353_vm3, %v4616_v56  ;;  %v7621_v15 = vpack.c.bf16 %v4741_v18, %v4740_v54  ;;  %v7765_v55 = vmov 11  }
 0xe62   : > { %7144 = vmatmul.mubr.msk.f32.vlgmr.msra.gmra.mrb[104].mxu1 %vm4353_vm3, %v4617_v28  ;;  %v4619_v0 = vmax.f32 %v4613_v26, 0.0  ;;  %v5200_v26 = vld [vmem:[%s9378_s10 + $0x8] sm:$0xff]  ;;  %7725 = vset.pattern.permute.xlu1 %v7765_v55 }
 0xe63   : > { %v4618_v61 = vmax.f32 %v4608_v47, 0.0  ;;  %7628 = vmatpush3.bf16.msk.msra.mxu1 %vm8840_vm1, %v7750_v9  ;;  %7622 = vmatprep.subr.bf16.mxu0 %v7621_v15  ;;  %vm4848_vm1 = vcmask 261120   ;;  %v7738_v47 = vld [vmem:[%s9381_s13] sm:$0xf] }
 0xe64   : > { %7630 = vmatprep.subr.msk.bf16.mxu1 %vm9415_vm5, %v7750_v9  ;;  %7624 = vmatpush3.bf16.msra.mxu0 %v7621_v15 }
 0xe65   : > { %7146 = vmatprep.mubr.msk.f32.mxu1 %vm4353_vm3, %v4618_v61  ;;  %7727 = vset.pattern.permute.xlu0 %v7765_v55  ;;  %v5206_v61 = vpop.permute.xlu1 %5205 }
 0xe66   : > { %7147 = vmatmul.mubr.msk.f32.gmra.mrb[106].mxu1 %vm4353_vm3, %v4619_v0  ;;  %5298 = vperm.xlu1 %7725, %v7738_v47  }
 0xe67   : > { %7632 = vmatpush3.bf16.msk.msra.mxu1 %vm9415_vm5, %v7750_v9 }
 0xe68   : > { %7634 = vmatprep.subr.msk.bf16.mxu1 %vm8867_vm10, %v7750_v9 }
 0xf35   : > { %v7145_v33 = vpop.f32.mrb[104].mxu1 }
 0xf36   : > { %v4717_v35 = vadd.f32 %v7145_v33, %v5900_v17  ;;  %v4711_v63 = vpop.f32.mrb[105].mxu1 }
 0xf37   : > { %v4712_v48 = vadd.f32 %v5900_v17, %v4711_v63  ;;  %v5296_v63 = vld [vmem:[%s9378_s10 + $0x10] sm:$0xf] }
 0xf38   : > { %v4731_v46 = vmax.f32 %v4717_v35, 0.0 }
 0xf39   : > { %v4730_v23 = vmax.f32 %v4712_v48, 0.0  ;;  %v7148_v6 = vpop.f32.mrb[106].mxu1  ;;  %v5376_v48 = vld [vmem:[%s9378_s10 + $0x20] sm:$0xff] }
 0xf3a   : > { %v4727_v51 = vadd.f32 %v7148_v6, %v5900_v17  ;;  %v4721_v22 = vpop.f32.mrb[107].mxu1  ;;  %v5299_v6 = vpop.permute.xlu1 %5298 }
 0xf3b   : > { %v4722_v12 = vadd.f32 %v5900_v17, %v4721_v22  ;;  %7165 = vmatprep.mubr.msk.f32.mxu0 %vm4353_vm3, %v4730_v23 }
 0xf3c   : > { %7166 = vmatmul.mubr.msk.f32.vlgmr.msra.gmra.mrb[104].mxu0 %vm4353_vm3, %v4731_v46  ;;  %v4733_v21 = vmax.f32 %v4727_v51, 0.0 }
 0xf3d   : > { %v4732_v44 = vmax.f32 %v4722_v12, 0.0  ;;  %v5457_v12 = vld [vmem:[%s9379_s11 + $0x8] sm:$0xff] }
 0xf3f   : > { %7168 = vmatprep.mubr.msk.f32.mxu0 %vm4353_vm3, %v4732_v44 }
 0xf40   : > { %7169 = vmatmul.mubr.msk.f32.gmra.mrb[106].mxu0 %vm4353_vm3, %v4733_v21  ;;  %v5933_v21 = vld [vmem:[%s9380_s12 + $0x8] ss:$0 sm:$0xff] }
 0xf41   : > { %7207 = vmatprep.mubr.msk.f32.mxu0 %vm4848_vm1, %v5856_v20 }
0x100f   : > { %v7167_v40 = vpop.f32.mrb[104].mxu0 }
0x1010   : > { %v4831_v42 = vadd.f32 %v7167_v40, %v5905_v38  ;;  %v4825_v5 = vpop.f32.mrb[105].mxu0 }
0x1011   : > { %v4826_v62 = vadd.f32 %v5905_v38, %v4825_v5 }
0x1012   : > { %v4845_v30 = vmax.f32 %v4831_v42, 0.0 }
0x1013   : > { %v4844_v50 = vmax.f32 %v4826_v62, 0.0  ;;  %v7170_v32 = vpop.f32.mrb[106].mxu0  ;;  %v5935_v62 = vld [vmem:[%s9380_s12 + $0x9] ss:$0 sm:$0xff] }
0x1014   : > { %v4841_v13 = vadd.f32 %v7170_v32, %v5905_v38  ;;  %v4835_v31 = vpop.f32.mrb[107].mxu0 }
0x1015   : > { %v4836_v16 = vadd.f32 %v5905_v38, %v4835_v31  ;;  %7179 = vmatprep.mubr.msk.f32.mxu1 %vm4848_vm1, %v4844_v50 }
0x1016   : > { %7180 = vmatmul.mubr.msk.f32.vlgmr.msra.gmra.mrb[108].mxu1 %vm4848_vm1, %v4845_v30  ;;  %v4847_v39 = vmax.f32 %v4841_v13, 0.0  ;;  %v5537_v13 = vld [vmem:[%s9379_s11 + $0x10] sm:$0xf] }
0x1017   : > { %v4846_v53 = vmax.f32 %v4836_v16, 0.0  ;;  %7636 = vmatpush3.bf16.msk.msra.mxu1 %vm8867_vm10, %v7750_v9  ;;  %vm9416_vm10 = vmmov 0  }
0x1018   : > { %7638 = vmatprep.subr.msk.bf16.mxu1 %vm8956_vm9, %v7750_v9 }
0x1019   : > { %7182 = vmatprep.mubr.msk.f32.mxu1 %vm4848_vm1, %v4846_v53 }
0x101a   : > { %7183 = vmatmul.mubr.msk.f32.gmra.mrb[110].mxu1 %vm4848_vm1, %v4847_v39 }
0x101b   : > { %7640 = vmatpush3.bf16.msk.msra.mxu1 %vm8956_vm9, %v7750_v9  ;;  %7193 = vmatprep.mubr.msk.f32.mxu1 %vm4848_vm1, %v4844_v50  ;;  %vm9417_vm9 = vcmask 130048  }
0x101c   : > { %vm9418_vm7 = vmmov %vm9417_vm9 }
0x101d   : > { %vm9419_vm12 = vmmov %vm9418_vm7 }
0x101e   : > { %7194 = vmatmul.mubr.msk.f32.vlgmr.msra.gmra.mrb[112].mxu1 %vm4848_vm1, %v4845_v30  ;;  %vm9420_vm13 = vmmov %vm9418_vm7 }
0x101f   : > { %7196 = vmatprep.mubr.msk.f32.mxu1 %vm4848_vm1, %v4846_v53  ;;  %vm9421_vm14 = vmmov %vm9418_vm7 }
0x1022   : > { %7197 = vmatmul.mubr.msk.f32.gmra.mrb[114].mxu1 %vm4848_vm1, %v4847_v39 }
0x1023   : > { %7218 = vmatprep.mubr.msk.f32.mxu1 %vm4848_vm1, %v5864_v34 }
0x10e9   : > { %v7181_v9 = vpop.f32.mrb[108].mxu1 }
0x10ea   : > { %v4927_v29 = vpop.f32.mrb[109].mxu1 }
0x10ed   : > { %v7184_v24 = vpop.f32.mrb[110].mxu1 }
0x10ee   : > { %v4937_v45 = vpop.f32.mrb[111].mxu1 }
0x10f1   : > { %v7195_v8 = vpop.f32.mrb[112].mxu1 }
0x10f2   : > { %v5032_v7 = vmax.f32 %v7181_v9, %v7195_v8  ;;  %v5012_v19 = vpop.f32.mrb[113].mxu1  ;;  %v5550_v8 = vld [vmem:[%s9380_s12 + $0xa] sm:$0x1] }
0x10f3   : > { %v5031_v43 = vmax.f32 %v4927_v29, %v5012_v19 }
0x10f5   : > { %v7641_v52 = vpack.c.bf16 %v5032_v7, %v5031_v43  ;;  %v7198_v10 = vpop.f32.mrb[114].mxu1 }
0x10f6   : > { %v5034_v49 = vmax.f32 %v7184_v24, %v7198_v10  ;;  %v5022_v14 = vpop.f32.mrb[115].mxu1  ;;  %v2652_v10 = vpop.permute.xlu0 %2651 }
0x10f7   : > { %v5033_v2 = vmax.f32 %v4937_v45, %v5022_v14  ;;  %7642 = vmatprep.subr.bf16.mxu0 %v7641_v52  ;;  %7650 = vmatprep.subr.bf16.mxu1 %v7641_v52 }
0x10f8   : > { %7644 = vmatpush3.bf16.msra.mxu0 %v7641_v52  ;;  %7652 = vmatpush3.bf16.msra.mxu1 %v7641_v52  ;;  %v2650_v52 = vmax.f32 %v8751_v27, 0.0 }
0x10f9   : > { %v7645_v37 = vpack.c.bf16 %v5034_v49, %v5033_v2 }
0x10fa   : > { %v2654_v49 = vmul.f32 %v2652_v10, %v2650_v52 }
0x10fb   : > { %7646 = vmatprep.subr.bf16.mxu0 %v7645_v37  ;;  %7654 = vmatprep.subr.bf16.mxu1 %v7645_v37 }
0x10fc   : > { %7648 = vmatpush3.bf16.msra.mxu0 %v7645_v37  ;;  %7656 = vmatpush3.bf16.msra.mxu1 %v7645_v37  ;;  %v2656_v14 = vsel %vm2655_vm0, %v2654_v49, 0.0 }
0x10fd   : > { %7664 = vmatprep.subr.bf16.mxu1 %v7747_v1  ;;  %v2657_v2 = vrot.slane %v2656_v14, 4 }
0x10ff   : > { %7208 = vmatmul.mubr.msk.f32.vlgmr.msra.gmra.mrb[108].mxu0 %vm4848_vm1, %v5857_v41  ;;  %7219 = vmatmul.mubr.msk.f32.vlgmr.msra.gmra.mrb[116].mxu1 %vm4848_vm1, %v5865_v57  ;;  %v2658_v37 = vadd.f32 %v2657_v2, %v2656_v14 }
0x1100   : > { %7239 = vmatprep.mubr.msk.f32.mxu1 %vm9416_vm10, %v7749_v4  ;;  %7225 = vmatprep.mubr.msk.f32.mxu0 %vm9417_vm9, %v5199_v25 }
0x1101   : > { %v2659_v41 = vrot.slane %v2658_v37, 2 }
0x1103   : > { %v2660_v57 = vadd.f32 %v2659_v41, %v2658_v37 }
0x1105   : > { %v2661_v25 = vrot.slane %v2660_v57, 1 }
0x11d2   : > { %v7209_v11 = vpop.f32.mrb[108].mxu0  ;;  %v7220_v56 = vpop.f32.mrb[116].mxu1 }
0x11d3   : > { %v5198_v60 = vmax.f32 %v7209_v11, %v7220_v56  ;;  %v5107_v3 = vpop.f32.mrb[109].mxu0  ;;  %v5188_v36 = vpop.f32.mrb[117].mxu1  ;;  %v2662_v11 = vadd.f32 %v2661_v25, %v2660_v57 }
0x11d4   : > { %v5197_v28 = vmax.f32 %v5107_v3, %v5188_v36  ;;  %v2666_v56 = vpop.permute.xlu0 %2665 }
0x11d6   : > { %v7657_v59 = vpack.c.bf16 %v5198_v60, %v5197_v28  ;;  %v2668_v60 = vadd.f32 %v2666_v56, %v2662_v11 }
0x11d8   : > { %7658 = vmatprep.subr.bf16.mxu0 %v7657_v59 }
0x11d9   : > { %7660 = vmatpush3.bf16.msra.mxu0 %v7657_v59 }
0x11da   : > { %7661 = vmatprep.subr.bf16.mxu0 %v7747_v1 }
0x11dc   : > { %7226 = vmatmul.mubr.msk.f32.vlgmr.msra.gmra.mrb[110].mxu0 %vm9418_vm7, %v5200_v26 }
0x11dd   : > { %7232 = vmatprep.mubr.msk.f32.mxu0 %vm9416_vm10, %v7749_v4 }
0x12af   : > { %v7227_v0 = vpop.f32.mrb[110].mxu0 }
0x12b0   : > { %v5291_v54 = vadd.f32 %v7227_v0, %v8744_v58  ;;  %v5285_v18 = vpop.f32.mrb[111].mxu0  ;;  %v5375_v58 = vld [vmem:[%s9378_s10 + $0x18] sm:$0xff] }
0x12b1   : > { %v5286_v15 = vadd.f32 %v5285_v18, %v5206_v61  ;;  %v7665_v23 = vpack.c.bf16 %v5376_v48, %v5375_v58 }
0x12b2   : > { %v5295_v17 = vmax.f32 %v5291_v54, 0.0 }
0x12b3   : > { %v5294_v33 = vmax.f32 %v5286_v15, 0.0  ;;  %7666 = vmatpush3.bf16.msra.mxu1 %v7665_v23 }
0x12b5   : > { %v7662_v35 = vpack.c.bf16 %v5295_v17, %v5294_v33 }
0x12b7   : > { %7663 = vmatpush3.bf16.msra.mxu0 %v7662_v35 }
0x12b8   : > { %7667 = vmatprep.subr.bf16.mxu0 %v7747_v1 }
0x12ba   : > { %7233 = vmatmul.mubr.msk.f32.vlgmr.msra.gmra.mrb[112].mxu0 %vm9419_vm12, %v5296_v63 }
0x12bb   : > { %7246 = vmatprep.mubr.msk.f32.mxu0 %vm9416_vm10, %v7749_v4  ;;  %v5456_v4 = vld [vmem:[%s9379_s11] sm:$0xff] }
0x12bc   : > { %v7668_v44 = vpack.c.bf16 %v5457_v12, %v5456_v4 }
0x12be   : > { %7669 = vmatpush3.bf16.msra.mxu0 %v7668_v44 }
0x138d   : > { %v5370_v46 = vpop.f32.mrb[112].mxu0 }
0x138e   : > { %v5371_v51 = vadd.f32 %v5370_v46, %v5299_v6  ;;  %v7234_v22 = vpop.f32.mrb[113].mxu0 }
0x1390   : > { %v5374_v1 = vmax.f32 %v5371_v51, 0.0 }
0x1392   : > { %7240 = vmatmul.mubr.msk.f32.vlgmr.msra.gmra.mrb[118].mxu1 %vm9420_vm13, %v5374_v1 }
0x1465   : > { %v5451_v38 = vpop.f32.mrb[118].mxu1 }
0x1466   : > { %v5452_v40 = vadd.f32 %v5933_v21, %v5451_v38  ;;  %v7241_v42 = vpop.f32.mrb[119].mxu1 }
0x1468   : > { %v5455_v5 = vmax.f32 %v5452_v40, 0.0 }
0x146a   : > { %7247 = vmatmul.mubr.msk.f32.vlgmr.msra.gmra.mrb[114].mxu0 %vm9421_vm14, %v5455_v5 }
0x153d   : > { %v5532_v50 = vpop.f32.mrb[114].mxu0 }
0x153e   : > { %v5533_v32 = vadd.f32 %v5935_v62, %v5532_v50  ;;  %v7248_v30 = vpop.f32.mrb[115].mxu0 }
0x1540   : > { %v5536_v31 = vmax.f32 %v5533_v32, 0.0 }
0x1542   : > { %v5538_v16 = vmul.f32 %v5537_v13, %v5536_v31 }
0x1544   : > { %v5540_v53 = vsel %vm5539_vm6, %v5538_v16, 0.0 }
0x1545   : > { %5541 = vadd.xlane.f32.xlu1 %v5540_v53 }
0x15d2   : > { %v5542_v39 = vpop.xlane.xlu1 %5541 }
0x15d3   : > { %v5543_v20 = vsel %vm9422_vm8, %v5542_v39, 0.0 }
0x15d4   : > { %v5544_v34 = vrot.slane %v5543_v20, 4 }
0x15d6   : > { %v5545_v9 = vadd.f32 %v5544_v34, %v5543_v20 }
0x15d8   : > { %v5546_v29 = vrot.slane %v5545_v9, 2 }
0x15da   : > { %v5547_v24 = vadd.f32 %v5546_v29, %v5545_v9 }
0x15dc   : > { %v5548_v45 = vrot.slane %v5547_v24, 1 }
0x15de   : > { %v5549_v7 = vadd.f32 %v5548_v45, %v5547_v24 }
0x15e0   : > { %v5551_v19 = vadd.f32 %v5550_v8, %v5549_v7 }
0x15e2   : > { %v5552_v43 = vmax.f32 %v5551_v19, 0.0 }
0x15e4   : > { %5554 = vrot.lane.b32.xlu0 %v5552_v43, %s7763_s15 }
0x1656   : > { %v5555_v3 = vpop.permute.xlu0 %5554 }
0x1657   : > { %v5557_v36 = vadd.f32 %v5555_v3, %v2668_v60 }
0x1659   : > { %5559 = vrot.lane.b32.xlu0 %v5557_v36, %s7766_s28 }
0x16cb   : > { %v5560_v27 = vpop.permute.xlu0 %5559 }
0x16cc   : > { %5563 = vst.msk [vmem:[%s460_s17] sm:$0x1] %vm5562_vm2, %v5560_v27 }
0x16cd PF: > { %s24_s29 = sadd.s32 1, %s7745_s29  }
0x16ce   : > { %p21_p4 = scmp.ge.s32.totalorder %s24_s29, 4  }
0x16d0   :  { %23 = sbr.rel (!%p21_p4) target bundleno = 1 (0x1), region = 115 }

</bundles_post_ra>
